<compile_context>
chip_gen: v5e
topology: v5e:2x2
jax: 0.10.0
libtpu: 0.0.40
codegen_flags: <defaults>
</compile_context>

<pallas_src>
import jax
import jax.numpy as jnp
from jax import lax
from jax.experimental import pallas as pl
from jax.experimental.pallas import tpu as pltpu


# ----------------------------------------------------------------------------
# Fused Pallas kernel: PointNet backbone -> softmax -> GMM statistics.
# One grid step processes Bb clouds; all (bf16) weights live in VMEM.
# Output per cloud: one 128-lane row = J packs of [pi, mu_x, mu_y, mu_z, sig, 0, 0, 0].
# ----------------------------------------------------------------------------
def backbone_gmm_kernel(feat_ref, pts_ref,
                        w1, b1, w2, b2, w3, b3, w4, b4,
                        w5a, w5b, b5, w6, b6, w7, b7, w8, b8,
                        out_ref):
    Bb, N, d_in = feat_ref.shape
    x = feat_ref[...].reshape(Bb * N, d_in)              # bf16, rows = Bb*N

    def lin_relu(h_bf16, w, b):
        # MXU matmul with f32 accumulation; bias-add + ReLU, then one cast so
        # the activation chain stays bf16 (halves vreg / VMEM pressure).
        y = jnp.dot(h_bf16, w[...], preferred_element_type=jnp.float32) + b[...]
        return jnp.maximum(y, 0.0).astype(jnp.bfloat16)

    # encoder: Conv1dBNReLU(d_in,64) -> (64,128) -> (128,256) -> (256,d_model)
    h = lin_relu(x, w1, b1)
    h = lin_relu(h, w2, b2)
    h = lin_relu(h, w3, b3)
    f_loc = lin_relu(h, w4, b4)                          # (Bb*N, d_model) bf16

    # per-cloud global max pooling over points (torch: f.max(dim=2)).
    # N is expected to be a multiple of 8 so this reshape is a free index remap.
    f_glob = jnp.max(f_loc.reshape(Bb, N, -1), axis=1)   # (Bb, d_model)

    # decoder: concat([f_loc, f_glob]) @ w5  ==  f_loc @ w5a + f_glob @ w5b
    h = jnp.dot(f_loc, w5a[...], preferred_element_type=jnp.float32)   # (Bb*N, 512)
    hg = jnp.dot(f_glob, w5b[...], preferred_element_type=jnp.float32)  # (Bb, 512)
    # stay 2D: broadcast f_glob contribution to rows (no reshape of the 512-wide h)
    hg_rows = jnp.broadcast_to(hg[:, None, :], (Bb, N, hg.shape[-1])).reshape(Bb * N, -1)
    h = jnp.maximum(h + hg_rows + b5[...], 0.0).astype(jnp.bfloat16)    # (Bb*N, 512)
    h = lin_relu(h, w6, b6)                                             # (Bb*N, 256)
    h = lin_relu(h, w7, b7)                                             # (Bb*N, 128)
    logits = jnp.dot(h, w8[...], preferred_element_type=jnp.float32) + b8[...]  # (Bb*N, J)
    J = logits.shape[-1]

    # softmax over clusters (torch: F.softmax(..., dim=2) after transpose).
    m = jnp.max(logits, axis=-1, keepdims=True)
    e = jnp.exp(logits - m)
    s = jnp.sum(e, axis=-1, keepdims=True)
    inv_s = pl.reciprocal(s, approx=True)
    inv_s = inv_s * (2.0 - s * inv_s)                    # Newton step -> near-exact
    gamma = (e * inv_s).reshape(Bb, N, J)                # (Bb, N, J) f32

    # build geom = [x, y, z, 1, |p|^2, 0, 0, 0] in-kernel (cheap VPU ops).
    pts = pts_ref[...]                                   # (Bb, N, 3) f32
    p2 = jnp.sum(pts * pts, axis=-1, keepdims=True)      # (Bb, N, 1)
    ones = jnp.ones_like(p2)
    zeros3 = jnp.zeros((Bb, N, 3), jnp.float32)
    geom = jnp.concatenate([pts, ones, p2, zeros3], axis=-1)   # (Bb, N, 8)

    # gmm_params: ONE batched contraction replaces Bb tiny matmuls.
    # stats cols: [sum g*p (3), Npi, sum g*|p|^2, 0, 0, 0]
    stats = jnp.einsum('bnj,bnc->bjc', gamma, geom,
                       preferred_element_type=jnp.float32)     # (Bb, J, 8)

    inv_n = 1.0 / float(N)
    npi = stats[..., 3:4] + 1e-8                         # epsilon guard
    inv = pl.reciprocal(npi, approx=True)
    inv = inv * (2.0 - npi * inv)                        # one Newton step
    mu = stats[..., 0:3] * inv                           # (Bb, J, 3)
    pi = stats[..., 3:4] * inv_n                         # (Bb, J, 1)
    # sum_n g_nj |p_n - mu_j|^2 / Npi_j == (sum_n g_nj |p_n|^2)/Npi_j - |mu_j|^2
    sig = stats[..., 4:5] * inv - jnp.sum(mu * mu, axis=-1, keepdims=True)
    sig = jnp.maximum(sig, 0.0)                          # guard fp cancellation

    packed = jnp.concatenate([pi, mu, sig, jnp.zeros_like(mu)], axis=-1)  # (Bb, J, 8)
    # single lane-dense (J*8 = 128 wide) store -> unmasked vst, clean writeback.
    out_ref[...] = packed.reshape(out_ref.shape)


# ----------------------------------------------------------------------------
# Per-generation row budget and Bb selection.
# ----------------------------------------------------------------------------
def _row_budget_and_min_grid():
    try:
        kind = jax.devices()[0].device_kind.lower()
    except Exception:
        kind = ""
    if "v7" in kind:
        return 1024, 2    # 2 TCs/chip: keep grid>=2; 64 MiB VMEM bounds the tile
    if "v5" in kind:
        return 512, 1     # single TC, 16 MiB default scoped VMEM, no bf16 VPU
    return 1024, 1        # v6e & default: single TC, 32 MiB default scoped VMEM


def _pick_block_batch(total_b, n, target_rows, min_grid):
    """Largest divisor of total_b with Bb*N <= target_rows and grid >= min_grid."""
    def pick(mg):
        best = 0
        for cand in range(1, total_b + 1):
            if total_b % cand:
                continue
            if cand * n <= target_rows and total_b // cand >= mg:
                best = cand
        return best
    return pick(min_grid) or pick(1) or 1


def _cost_estimate(TB, N, d_input, d_model, J):
    rows = TB * N
    mm = [(d_input, 64), (64, 128), (128, 256), (256, d_model),
          (d_model, 512), (512, 256), (256, 128), (128, J)]
    flops = 2 * rows * sum(a * b for a, b in mm)
    flops += 2 * TB * d_model * 512              # f_glob branch of decoder layer 1
    flops += 2 * rows * J * 8                    # statistics contraction
    transcendentals = rows * J + rows + 2 * TB * J
    w_bytes = sum(a * b * 2 + b * 4 for a, b in mm) + d_model * 512 * 2
    bytes_accessed = rows * d_input * 2 + rows * 3 * 4 + w_bytes + TB * J * 8 * 4
    return pl.CostEstimate(flops=int(flops),
                           transcendentals=int(transcendentals),
                           bytes_accessed=int(bytes_accessed))


def run_backbone_gmm(feats, pts, layers, d_model):
    """feats: (TB, N, d_input); pts: (TB, N, 3) -> packed stats (TB, J, 8)."""
    TB, N, d_input = feats.shape
    (w1, b1), (w2, b2), (w3, b3), (w4, b4), (w5, b5), (w6, b6), (w7, b7), (w8, b8) = layers
    w5a, w5b = w5[:d_model], w5[d_model:]
    J = w8.shape[1]

    # bf16 activations into the MXU; f32 accumulation happens in the kernel.
    feats_lp = feats.astype(jnp.bfloat16)
    pts = pts.astype(jnp.float32)

    target_rows, min_grid = _row_budget_and_min_grid()
    Bb = _pick_block_batch(TB, N, target_rows, min_grid)
    grid = (TB // Bb,)

    args = [feats_lp, pts,
            w1, b1, w2, b2, w3, b3, w4, b4, w5a, w5b, b5, w6, b6, w7, b7, w8, b8]
    in_specs = [pl.BlockSpec((Bb, N, d_input), lambda b: (b, 0, 0)),
                pl.BlockSpec((Bb, N, 3), lambda b: (b, 0, 0))]
    # Weights/biases: full blocks, constant index_map -> DMA'd only once.
    in_specs += [pl.BlockSpec(a.shape, lambda b: (0, 0)) for a in args[2:]]

    packed = pl.pallas_call(
        backbone_gmm_kernel,
        grid=grid,
        in_specs=in_specs,
        out_specs=pl.BlockSpec((Bb, 1, J * 8), lambda b: (b, 0, 0)),
        out_shape=jax.ShapeDtypeStruct((TB, 1, J * 8), jnp.float32),
        compiler_params=pltpu.CompilerParams(dimension_semantics=("parallel",)),
        cost_estimate=_cost_estimate(TB, N, d_input, d_model, J),
    )(*args)
    return packed.reshape(TB, J, 8)


# ----------------------------------------------------------------------------
# gmm_register: needs 3x3 SVD / det -> plain JAX (no Pallas equivalent).
# sigma is isotropic (sig * I), so sigma^-1 is just a scalar reciprocal.
# ----------------------------------------------------------------------------
def gmm_register_iso(pi_s, mu_s, mu_t, sig_t):
    c_s = jnp.einsum('bj,bjk->bk', pi_s, mu_s)             # (B,3)
    c_t = jnp.einsum('bj,bjk->bk', pi_s, mu_t)             # (B,3)
    w = pi_s / jnp.maximum(sig_t, 1e-8)                    # (B,J)
    ds = mu_s - c_s[:, None, :]
    dt = mu_t - c_t[:, None, :]
    Ms = jnp.einsum('bj,bji,bjk->bik', w, ds, dt)          # (B,3,3)

    U, _, Vh = jnp.linalg.svd(Ms)                          # torch.svd: A = U S V^T
    V = jnp.swapaxes(Vh, -1, -2)
    Ut = jnp.swapaxes(U, -1, -2)
    det = jnp.linalg.det(V @ Ut)
    S = jnp.tile(jnp.eye(3, dtype=Ms.dtype)[None], (Ms.shape[0], 1, 1))
    S = S.at[:, 2, 2].set(det)
    R = V @ S @ Ut
    t = c_t[:, :, None] - R @ c_s[:, :, None]              # (B,3,1)
    bot = jnp.tile(jnp.array([[[0.0, 0.0, 0.0, 1.0]]], dtype=Ms.dtype),
                   (Ms.shape[0], 1, 1))
    return jnp.concatenate([jnp.concatenate([R, t], axis=2), bot], axis=1)


# ----------------------------------------------------------------------------
# Parameter construction (deterministic, BN folded in eval mode, bf16 weights)
# ----------------------------------------------------------------------------
def fold_bn(W, g, beta, rmean, rvar, eps=1e-5):
    s = g / jnp.sqrt(rvar + eps)
    w_eff = (W * s[:, None]).T.astype(jnp.bfloat16)        # (Cin, Cout) bf16
    b_eff = (beta - rmean * s)[None, :].astype(jnp.float32)
    return w_eff, b_eff


def make_params(key, d_input, d_model, n_clusters):
    dims = [(d_input, 64), (64, 128), (128, 256), (256, d_model),
            (2 * d_model, 512), (512, 256), (256, 128)]
    keys = jax.random.split(key, len(dims) + 1)
    layers = []
    for (cin, cout), k in zip(dims, keys[:-1]):
        k1, k2, k3, k4, k5 = jax.random.split(k, 5)
        W = jax.random.normal(k1, (cout, cin), jnp.float32) / jnp.sqrt(cin)
        g = 1.0 + 0.1 * jax.random.normal(k2, (cout,), jnp.float32)
        beta = 0.1 * jax.random.normal(k3, (cout,), jnp.float32)
        rm = 0.1 * jax.random.normal(k4, (cout,), jnp.float32)
        rv = 1.0 + 0.1 * jnp.abs(jax.random.normal(k5, (cout,), jnp.float32))
        layers.append(fold_bn(W, g, beta, rm, rv))
    kf1, kf2 = jax.random.split(keys[-1])
    W8 = jax.random.normal(kf1, (n_clusters, 128), jnp.float32) / jnp.sqrt(128.0)
    b8 = 0.1 * jax.random.normal(kf2, (n_clusters,), jnp.float32)
    layers.append((W8.T.astype(jnp.bfloat16), b8[None, :].astype(jnp.float32)))
    return layers


# ----------------------------------------------------------------------------
# DeepGMR forward (use_rri=True path); template+source fused into one call.
# ----------------------------------------------------------------------------
def deepgmr_forward(template, source, layers, d_model):
    B = template.shape[0]
    clouds = jnp.concatenate([template, source], axis=0)    # (2B, N, 3+4K)
    pts = clouds[..., :3]
    feats = clouds[..., 3:]                                 # channels-last features

    packed = run_backbone_gmm(feats, pts, layers, d_model)  # (2B, J, 8)
    pi = packed[..., 0]                                     # (2B, J)
    mu = packed[..., 1:4]                                   # (2B, J, 3)
    sig = packed[..., 4]                                    # (2B, J) isotropic scalar

    t_pi, s_pi = pi[:B], pi[B:]
    t_mu, s_mu = mu[:B], mu[B:]
    t_sig, s_sig = sig[:B], sig[B:]

    est_T_inverse = gmm_register_iso(t_pi, t_mu, s_mu, s_sig)
    est_T = gmm_register_iso(s_pi, s_mu, t_mu, t_sig)

    R = est_T[:, :3, :3]
    t = est_T[:, :3, 3]
    src_pts = source[..., :3]
    transformed_source = jnp.einsum('bij,bnj->bni', R, src_pts) + t[:, None, :]

    # torch layout for the residual: (B, 4K, N)
    r = jnp.swapaxes(template[..., 3:], 1, 2) - jnp.swapaxes(source[..., 3:], 1, 2)

    return {
        'est_R': R,
        'est_t': t,
        'est_R_inverse': est_T_inverse[:, :3, :3],
        'est_t_inverese': est_T_inverse[:, :3, 3],
        'est_T': est_T,
        'est_T_inverse': est_T_inverse,
        'r': r,
        'transformed_source': transformed_source,
    }


if __name__ == "__main__":
    # Small shapes: B=2, N=16 points, K=4 nearest neighbors -> d_input = 16,
    # d_model = 64, n_clusters = 16. Input clouds: (B, N, 3 + 4K) = (2, 16, 19).
    B, N, K = 2, 16, 4
    d_input = 4 * K
    d_model = 64
    n_clusters = 16

    key = jax.random.PRNGKey(0)
    k_params, k_tmpl, k_src = jax.random.split(key, 3)
    layers = make_params(k_params, d_input, d_model, n_clusters)

    template = jax.random.normal(k_tmpl, (B, N, 3 + d_input), jnp.float32)
    source = jax.random.normal(k_src, (B, N, 3 + d_input), jnp.float32)

    result = deepgmr_forward(template, source, layers, d_model)
    jax.block_until_ready(result)

    # light sanity checks
    assert result['est_T'].shape == (B, 4, 4)
    assert result['transformed_source'].shape == (B, N, 3)
    assert result['r'].shape == (B, d_input, N)
    print("KERNEL_OK")
</pallas_src>

<mosaic_0001>
module attributes {stable_mosaic.version = 11 : i64} {
  func.func @backbone_gmm_kernel(%arg0: i32, %arg1: memref<4x16x16xbf16, #tpu.memory_space<vmem>>, %arg2: memref<4x16x3xf32, #tpu.memory_space<vmem>>, %arg3: memref<16x64xbf16, #tpu.memory_space<vmem>>, %arg4: memref<1x64xf32, #tpu.memory_space<vmem>>, %arg5: memref<64x128xbf16, #tpu.memory_space<vmem>>, %arg6: memref<1x128xf32, #tpu.memory_space<vmem>>, %arg7: memref<128x256xbf16, #tpu.memory_space<vmem>>, %arg8: memref<1x256xf32, #tpu.memory_space<vmem>>, %arg9: memref<256x64xbf16, #tpu.memory_space<vmem>>, %arg10: memref<1x64xf32, #tpu.memory_space<vmem>>, %arg11: memref<64x512xbf16, #tpu.memory_space<vmem>>, %arg12: memref<64x512xbf16, #tpu.memory_space<vmem>>, %arg13: memref<1x512xf32, #tpu.memory_space<vmem>>, %arg14: memref<512x256xbf16, #tpu.memory_space<vmem>>, %arg15: memref<1x256xf32, #tpu.memory_space<vmem>>, %arg16: memref<256x128xbf16, #tpu.memory_space<vmem>>, %arg17: memref<1x128xf32, #tpu.memory_space<vmem>>, %arg18: memref<128x16xbf16, #tpu.memory_space<vmem>>, %arg19: memref<1x16xf32, #tpu.memory_space<vmem>>, %arg20: memref<4x1x128xf32, #tpu.memory_space<vmem>>) attributes {dimension_semantics = [#tpu.dimension_semantics<parallel>], iteration_bounds = array<i64: 1>, scalar_prefetch = 0 : i64, scratch_operands = 0 : i64, tpu.core_type = #tpu.core_type<tc>, window_params = [{transform_indices = @transform_0, window_bounds = array<i64: 4, 16, 16>}, {transform_indices = @transform_1, window_bounds = array<i64: 4, 16, 3>}, {pipeline_mode = #tpu.pipeline_mode<synchronous>, transform_indices = @transform_2, window_bounds = array<i64: 16, 64>}, {pipeline_mode = #tpu.pipeline_mode<synchronous>, transform_indices = @transform_3, window_bounds = array<i64: 1, 64>}, {pipeline_mode = #tpu.pipeline_mode<synchronous>, transform_indices = @transform_4, window_bounds = array<i64: 64, 128>}, {pipeline_mode = #tpu.pipeline_mode<synchronous>, transform_indices = @transform_5, window_bounds = array<i64: 1, 128>}, {pipeline_mode = #tpu.pipeline_mode<synchronous>, transform_indices = @transform_6, window_bounds = array<i64: 128, 256>}, {pipeline_mode = #tpu.pipeline_mode<synchronous>, transform_indices = @transform_7, window_bounds = array<i64: 1, 256>}, {pipeline_mode = #tpu.pipeline_mode<synchronous>, transform_indices = @transform_8, window_bounds = array<i64: 256, 64>}, {pipeline_mode = #tpu.pipeline_mode<synchronous>, transform_indices = @transform_9, window_bounds = array<i64: 1, 64>}, {pipeline_mode = #tpu.pipeline_mode<synchronous>, transform_indices = @transform_10, window_bounds = array<i64: 64, 512>}, {pipeline_mode = #tpu.pipeline_mode<synchronous>, transform_indices = @transform_11, window_bounds = array<i64: 64, 512>}, {pipeline_mode = #tpu.pipeline_mode<synchronous>, transform_indices = @transform_12, window_bounds = array<i64: 1, 512>}, {pipeline_mode = #tpu.pipeline_mode<synchronous>, transform_indices = @transform_13, window_bounds = array<i64: 512, 256>}, {pipeline_mode = #tpu.pipeline_mode<synchronous>, transform_indices = @transform_14, window_bounds = array<i64: 1, 256>}, {pipeline_mode = #tpu.pipeline_mode<synchronous>, transform_indices = @transform_15, window_bounds = array<i64: 256, 128>}, {pipeline_mode = #tpu.pipeline_mode<synchronous>, transform_indices = @transform_16, window_bounds = array<i64: 1, 128>}, {pipeline_mode = #tpu.pipeline_mode<synchronous>, transform_indices = @transform_17, window_bounds = array<i64: 128, 16>}, {pipeline_mode = #tpu.pipeline_mode<synchronous>, transform_indices = @transform_18, window_bounds = array<i64: 1, 16>}, {transform_indices = @transform_19, window_bounds = array<i64: 4, 1, 128>}]} {
    %c0 = arith.constant 0 : index
    %c0_0 = arith.constant 0 : index
    %c0_1 = arith.constant 0 : index
    %0 = vector.load %arg1[%c0, %c0_0, %c0_1] : memref<4x16x16xbf16, #tpu.memory_space<vmem>>, vector<4x16x16xbf16>
    %1 = vector.shape_cast %0 : vector<4x16x16xbf16> to vector<64x16xbf16>
    %c0_2 = arith.constant 0 : index
    %c0_3 = arith.constant 0 : index
    %2 = vector.load %arg3[%c0_2, %c0_3] : memref<16x64xbf16, #tpu.memory_space<vmem>>, vector<16x64xbf16>
    %cst = arith.constant dense<0.000000e+00> : vector<64x64xf32>
    %3 = tpu.matmul %1, %2, %cst {dimension_numbers = #tpu.dot_dimension_numbers<[1], [0], [0], [1], [0, 0, 1, 1], [], []>} : vector<64x16xbf16>, vector<16x64xbf16>, vector<64x64xf32> -> vector<64x64xf32>
    %c0_4 = arith.constant 0 : index
    %c0_5 = arith.constant 0 : index
    %4 = vector.load %arg4[%c0_4, %c0_5] : memref<1x64xf32, #tpu.memory_space<vmem>>, vector<1x64xf32>
    %5 = vector.broadcast %4 : vector<1x64xf32> to vector<64x64xf32>
    %6 = arith.addf %3, %5 : vector<64x64xf32>
    %cst_6 = arith.constant 0.000000e+00 : f32
    %7 = vector.broadcast %cst_6 : f32 to vector<64x64xf32>
    %8 = arith.maximumf %6, %7 : vector<64x64xf32>
    %9 = arith.truncf %8 : vector<64x64xf32> to vector<64x64xbf16>
    %c0_7 = arith.constant 0 : index
    %c0_8 = arith.constant 0 : index
    %10 = vector.load %arg5[%c0_7, %c0_8] : memref<64x128xbf16, #tpu.memory_space<vmem>>, vector<64x128xbf16>
    %cst_9 = arith.constant dense<0.000000e+00> : vector<64x128xf32>
    %11 = tpu.matmul %9, %10, %cst_9 {dimension_numbers = #tpu.dot_dimension_numbers<[1], [0], [0], [1], [0, 0, 1, 1], [], []>} : vector<64x64xbf16>, vector<64x128xbf16>, vector<64x128xf32> -> vector<64x128xf32>
    %c0_10 = arith.constant 0 : index
    %c0_11 = arith.constant 0 : index
    %12 = vector.load %arg6[%c0_10, %c0_11] : memref<1x128xf32, #tpu.memory_space<vmem>>, vector<1x128xf32>
    %13 = vector.broadcast %12 : vector<1x128xf32> to vector<64x128xf32>
    %14 = arith.addf %11, %13 : vector<64x128xf32>
    %cst_12 = arith.constant 0.000000e+00 : f32
    %15 = vector.broadcast %cst_12 : f32 to vector<64x128xf32>
    %16 = arith.maximumf %14, %15 : vector<64x128xf32>
    %17 = arith.truncf %16 : vector<64x128xf32> to vector<64x128xbf16>
    %c0_13 = arith.constant 0 : index
    %c0_14 = arith.constant 0 : index
    %18 = vector.load %arg7[%c0_13, %c0_14] : memref<128x256xbf16, #tpu.memory_space<vmem>>, vector<128x256xbf16>
    %cst_15 = arith.constant dense<0.000000e+00> : vector<64x256xf32>
    %19 = tpu.matmul %17, %18, %cst_15 {dimension_numbers = #tpu.dot_dimension_numbers<[1], [0], [0], [1], [0, 0, 1, 1], [], []>} : vector<64x128xbf16>, vector<128x256xbf16>, vector<64x256xf32> -> vector<64x256xf32>
    %c0_16 = arith.constant 0 : index
    %c0_17 = arith.constant 0 : index
    %20 = vector.load %arg8[%c0_16, %c0_17] : memref<1x256xf32, #tpu.memory_space<vmem>>, vector<1x256xf32>
    %21 = vector.broadcast %20 : vector<1x256xf32> to vector<64x256xf32>
    %22 = arith.addf %19, %21 : vector<64x256xf32>
    %cst_18 = arith.constant 0.000000e+00 : f32
    %23 = vector.broadcast %cst_18 : f32 to vector<64x256xf32>
    %24 = arith.maximumf %22, %23 : vector<64x256xf32>
    %25 = arith.truncf %24 : vector<64x256xf32> to vector<64x256xbf16>
    %c0_19 = arith.constant 0 : index
    %c0_20 = arith.constant 0 : index
    %26 = vector.load %arg9[%c0_19, %c0_20] : memref<256x64xbf16, #tpu.memory_space<vmem>>, vector<256x64xbf16>
    %cst_21 = arith.constant dense<0.000000e+00> : vector<64x64xf32>
    %27 = tpu.matmul %25, %26, %cst_21 {dimension_numbers = #tpu.dot_dimension_numbers<[1], [0], [0], [1], [0, 0, 1, 1], [], []>} : vector<64x256xbf16>, vector<256x64xbf16>, vector<64x64xf32> -> vector<64x64xf32>
    %c0_22 = arith.constant 0 : index
    %c0_23 = arith.constant 0 : index
    %28 = vector.load %arg10[%c0_22, %c0_23] : memref<1x64xf32, #tpu.memory_space<vmem>>, vector<1x64xf32>
    %29 = vector.broadcast %28 : vector<1x64xf32> to vector<64x64xf32>
    %30 = arith.addf %27, %29 : vector<64x64xf32>
    %cst_24 = arith.constant 0.000000e+00 : f32
    %31 = vector.broadcast %cst_24 : f32 to vector<64x64xf32>
    %32 = arith.maximumf %30, %31 : vector<64x64xf32>
    %33 = arith.truncf %32 : vector<64x64xf32> to vector<64x64xbf16>
    %34 = vector.shape_cast %33 : vector<64x64xbf16> to vector<4x16x64xbf16>
    %cst_25 = arith.constant dense<0xFF80> : vector<4x64xbf16>
    %35 = vector.multi_reduction <maximumf>, %34, %cst_25 [1] : vector<4x16x64xbf16> to vector<4x64xbf16>
    %c0_26 = arith.constant 0 : index
    %c0_27 = arith.constant 0 : index
    %36 = vector.load %arg11[%c0_26, %c0_27] : memref<64x512xbf16, #tpu.memory_space<vmem>>, vector<64x512xbf16>
    %cst_28 = arith.constant dense<0.000000e+00> : vector<64x512xf32>
    %37 = tpu.matmul %33, %36, %cst_28 {dimension_numbers = #tpu.dot_dimension_numbers<[1], [0], [0], [1], [0, 0, 1, 1], [], []>} : vector<64x64xbf16>, vector<64x512xbf16>, vector<64x512xf32> -> vector<64x512xf32>
    %c0_29 = arith.constant 0 : index
    %c0_30 = arith.constant 0 : index
    %38 = vector.load %arg12[%c0_29, %c0_30] : memref<64x512xbf16, #tpu.memory_space<vmem>>, vector<64x512xbf16>
    %cst_31 = arith.constant dense<0.000000e+00> : vector<4x512xf32>
    %39 = tpu.matmul %35, %38, %cst_31 {dimension_numbers = #tpu.dot_dimension_numbers<[1], [0], [0], [1], [0, 0, 1, 1], [], []>} : vector<4x64xbf16>, vector<64x512xbf16>, vector<4x512xf32> -> vector<4x512xf32>
    %40 = vector.shape_cast %39 : vector<4x512xf32> to vector<4x1x512xf32>
    %41 = vector.shape_cast %40 : vector<4x1x512xf32> to vector<4x1x512xf32>
    %42 = vector.broadcast %41 : vector<4x1x512xf32> to vector<4x16x512xf32>
    %43 = vector.shape_cast %42 : vector<4x16x512xf32> to vector<64x512xf32>
    %44 = arith.addf %37, %43 : vector<64x512xf32>
    %c0_32 = arith.constant 0 : index
    %c0_33 = arith.constant 0 : index
    %45 = vector.load %arg13[%c0_32, %c0_33] : memref<1x512xf32, #tpu.memory_space<vmem>>, vector<1x512xf32>
    %46 = vector.broadcast %45 : vector<1x512xf32> to vector<64x512xf32>
    %47 = arith.addf %44, %46 : vector<64x512xf32>
    %cst_34 = arith.constant 0.000000e+00 : f32
    %48 = vector.broadcast %cst_34 : f32 to vector<64x512xf32>
    %49 = arith.maximumf %47, %48 : vector<64x512xf32>
    %50 = arith.truncf %49 : vector<64x512xf32> to vector<64x512xbf16>
    %c0_35 = arith.constant 0 : index
    %c0_36 = arith.constant 0 : index
    %51 = vector.load %arg14[%c0_35, %c0_36] : memref<512x256xbf16, #tpu.memory_space<vmem>>, vector<512x256xbf16>
    %cst_37 = arith.constant dense<0.000000e+00> : vector<64x256xf32>
    %52 = tpu.matmul %50, %51, %cst_37 {dimension_numbers = #tpu.dot_dimension_numbers<[1], [0], [0], [1], [0, 0, 1, 1], [], []>} : vector<64x512xbf16>, vector<512x256xbf16>, vector<64x256xf32> -> vector<64x256xf32>
    %c0_38 = arith.constant 0 : index
    %c0_39 = arith.constant 0 : index
    %53 = vector.load %arg15[%c0_38, %c0_39] : memref<1x256xf32, #tpu.memory_space<vmem>>, vector<1x256xf32>
    %54 = vector.broadcast %53 : vector<1x256xf32> to vector<64x256xf32>
    %55 = arith.addf %52, %54 : vector<64x256xf32>
    %cst_40 = arith.constant 0.000000e+00 : f32
    %56 = vector.broadcast %cst_40 : f32 to vector<64x256xf32>
    %57 = arith.maximumf %55, %56 : vector<64x256xf32>
    %58 = arith.truncf %57 : vector<64x256xf32> to vector<64x256xbf16>
    %c0_41 = arith.constant 0 : index
    %c0_42 = arith.constant 0 : index
    %59 = vector.load %arg16[%c0_41, %c0_42] : memref<256x128xbf16, #tpu.memory_space<vmem>>, vector<256x128xbf16>
    %cst_43 = arith.constant dense<0.000000e+00> : vector<64x128xf32>
    %60 = tpu.matmul %58, %59, %cst_43 {dimension_numbers = #tpu.dot_dimension_numbers<[1], [0], [0], [1], [0, 0, 1, 1], [], []>} : vector<64x256xbf16>, vector<256x128xbf16>, vector<64x128xf32> -> vector<64x128xf32>
    %c0_44 = arith.constant 0 : index
    %c0_45 = arith.constant 0 : index
    %61 = vector.load %arg17[%c0_44, %c0_45] : memref<1x128xf32, #tpu.memory_space<vmem>>, vector<1x128xf32>
    %62 = vector.broadcast %61 : vector<1x128xf32> to vector<64x128xf32>
    %63 = arith.addf %60, %62 : vector<64x128xf32>
    %cst_46 = arith.constant 0.000000e+00 : f32
    %64 = vector.broadcast %cst_46 : f32 to vector<64x128xf32>
    %65 = arith.maximumf %63, %64 : vector<64x128xf32>
    %66 = arith.truncf %65 : vector<64x128xf32> to vector<64x128xbf16>
    %c0_47 = arith.constant 0 : index
    %c0_48 = arith.constant 0 : index
    %67 = vector.load %arg18[%c0_47, %c0_48] : memref<128x16xbf16, #tpu.memory_space<vmem>>, vector<128x16xbf16>
    %cst_49 = arith.constant dense<0.000000e+00> : vector<64x16xf32>
    %68 = tpu.matmul %66, %67, %cst_49 {dimension_numbers = #tpu.dot_dimension_numbers<[1], [0], [0], [1], [0, 0, 1, 1], [], []>} : vector<64x128xbf16>, vector<128x16xbf16>, vector<64x16xf32> -> vector<64x16xf32>
    %c0_50 = arith.constant 0 : index
    %c0_51 = arith.constant 0 : index
    %69 = vector.load %arg19[%c0_50, %c0_51] : memref<1x16xf32, #tpu.memory_space<vmem>>, vector<1x16xf32>
    %70 = vector.broadcast %69 : vector<1x16xf32> to vector<64x16xf32>
    %71 = arith.addf %68, %70 : vector<64x16xf32>
    %cst_52 = arith.constant dense<0xFF800000> : vector<64xf32>
    %72 = vector.multi_reduction <maximumf>, %71, %cst_52 [1] : vector<64x16xf32> to vector<64xf32>
    %73 = vector.shape_cast %72 : vector<64xf32> to vector<64x1xf32>
    %74 = vector.broadcast %73 : vector<64x1xf32> to vector<64x16xf32>
    %75 = arith.subf %71, %74 : vector<64x16xf32>
    %76 = math.exp %75 : vector<64x16xf32>
    %cst_53 = arith.constant dense<0.000000e+00> : vector<64xf32>
    %77 = vector.multi_reduction <add>, %76, %cst_53 [1] : vector<64x16xf32> to vector<64xf32>
    %78 = vector.shape_cast %77 : vector<64xf32> to vector<64x1xf32>
    %79 = tpu.reciprocal %78 {approx = true} : vector<64x1xf32> -> vector<64x1xf32>
    %80 = arith.mulf %78, %79 : vector<64x1xf32>
    %cst_54 = arith.constant 2.000000e+00 : f32
    %81 = vector.broadcast %cst_54 : f32 to vector<64x1xf32>
    %82 = arith.subf %81, %80 : vector<64x1xf32>
    %83 = arith.mulf %79, %82 : vector<64x1xf32>
    %84 = vector.broadcast %83 : vector<64x1xf32> to vector<64x16xf32>
    %85 = arith.mulf %76, %84 : vector<64x16xf32>
    %86 = vector.shape_cast %85 : vector<64x16xf32> to vector<4x16x16xf32>
    %c0_55 = arith.constant 0 : index
    %c0_56 = arith.constant 0 : index
    %c0_57 = arith.constant 0 : index
    %87 = vector.load %arg2[%c0_55, %c0_56, %c0_57] : memref<4x16x3xf32, #tpu.memory_space<vmem>>, vector<4x16x3xf32>
    %88 = arith.mulf %87, %87 : vector<4x16x3xf32>
    %cst_58 = arith.constant dense<0.000000e+00> : vector<4x16xf32>
    %89 = vector.multi_reduction <add>, %88, %cst_58 [2] : vector<4x16x3xf32> to vector<4x16xf32>
    %90 = vector.shape_cast %89 : vector<4x16xf32> to vector<4x16x1xf32>
    %cst_59 = arith.constant 1.000000e+00 : f32
    %91 = vector.broadcast %cst_59 : f32 to vector<4x16x1xf32>
    %cst_60 = arith.constant 0.000000e+00 : f32
    %92 = vector.broadcast %cst_60 : f32 to vector<4x16x3xf32>
    %93 = tpu.concatenate %87, %91, %90, %92 in 2 : vector<4x16x3xf32>, vector<4x16x1xf32>, vector<4x16x1xf32>, vector<4x16x3xf32> -> vector<4x16x8xf32>
    "tpu.trace_start"() <{level = 10 : i32, message = "bnj,bnc->bjc"}> : () -> ()
    %cst_61 = arith.constant dense<0.000000e+00> : vector<4x16x8xf32>
    %94 = tpu.matmul %86, %93, %cst_61 {dimension_numbers = #tpu.dot_dimension_numbers<[1], [1], [2], [2], [0, 0, 0, 2, 1, 2], [0], [0]>} : vector<4x16x16xf32>, vector<4x16x8xf32>, vector<4x16x8xf32> -> vector<4x16x8xf32>
    "tpu.trace_stop"() : () -> ()
    %95 = vector.extract_strided_slice %94 {offsets = [0, 0, 3], sizes = [4, 16, 1], strides = [1, 1, 1]} : vector<4x16x8xf32> to vector<4x16x1xf32>
    %cst_62 = arith.constant 9.99999993E-9 : f32
    %96 = vector.broadcast %cst_62 : f32 to vector<4x16x1xf32>
    %97 = arith.addf %95, %96 : vector<4x16x1xf32>
    %98 = tpu.reciprocal %97 {approx = true} : vector<4x16x1xf32> -> vector<4x16x1xf32>
    %99 = arith.mulf %97, %98 : vector<4x16x1xf32>
    %cst_63 = arith.constant 2.000000e+00 : f32
    %100 = vector.broadcast %cst_63 : f32 to vector<4x16x1xf32>
    %101 = arith.subf %100, %99 : vector<4x16x1xf32>
    %102 = arith.mulf %98, %101 : vector<4x16x1xf32>
    %103 = vector.extract_strided_slice %94 {offsets = [0, 0, 0], sizes = [4, 16, 3], strides = [1, 1, 1]} : vector<4x16x8xf32> to vector<4x16x3xf32>
    %104 = vector.broadcast %102 : vector<4x16x1xf32> to vector<4x16x3xf32>
    %105 = arith.mulf %103, %104 : vector<4x16x3xf32>
    %106 = vector.extract_strided_slice %94 {offsets = [0, 0, 3], sizes = [4, 16, 1], strides = [1, 1, 1]} : vector<4x16x8xf32> to vector<4x16x1xf32>
    %cst_64 = arith.constant 6.250000e-02 : f32
    %107 = vector.broadcast %cst_64 : f32 to vector<4x16x1xf32>
    %108 = arith.mulf %106, %107 : vector<4x16x1xf32>
    %109 = vector.extract_strided_slice %94 {offsets = [0, 0, 4], sizes = [4, 16, 1], strides = [1, 1, 1]} : vector<4x16x8xf32> to vector<4x16x1xf32>
    %110 = arith.mulf %109, %102 : vector<4x16x1xf32>
    %111 = arith.mulf %105, %105 : vector<4x16x3xf32>
    %cst_65 = arith.constant dense<0.000000e+00> : vector<4x16xf32>
    %112 = vector.multi_reduction <add>, %111, %cst_65 [2] : vector<4x16x3xf32> to vector<4x16xf32>
    %113 = vector.shape_cast %112 : vector<4x16xf32> to vector<4x16x1xf32>
    %114 = arith.subf %110, %113 : vector<4x16x1xf32>
    %cst_66 = arith.constant 0.000000e+00 : f32
    %115 = vector.broadcast %cst_66 : f32 to vector<4x16x1xf32>
    %116 = arith.maximumf %114, %115 : vector<4x16x1xf32>
    %cst_67 = arith.constant 0.000000e+00 : f32
    %117 = vector.broadcast %cst_67 : f32 to vector<4x16x3xf32>
    %118 = tpu.concatenate %108, %105, %116, %117 in 2 : vector<4x16x1xf32>, vector<4x16x3xf32>, vector<4x16x1xf32>, vector<4x16x3xf32> -> vector<4x16x8xf32>
    %119 = vector.shape_cast %118 : vector<4x16x8xf32> to vector<4x1x128xf32>
    %c0_68 = arith.constant 0 : index
    %c0_69 = arith.constant 0 : index
    %c0_70 = arith.constant 0 : index
    %120 = vector.load %arg20[%c0_68, %c0_69, %c0_70] : memref<4x1x128xf32, #tpu.memory_space<vmem>>, vector<4x1x128xf32>
    tpu.vector_store %arg20[%c0_68, %c0_69, %c0_70], %119 {strides = array<i32>} : memref<4x1x128xf32, #tpu.memory_space<vmem>>, vector<4x1x128xf32>,
    return
  }
  func.func @transform_0(%arg0: i32) -> (i32, i32, i32) {
    %c0_i32 = arith.constant 0 : i32
    %c0_i32_0 = arith.constant 0 : i32
    %c0_i32_1 = arith.constant 0 : i32
    return %arg0, %c0_i32, %c0_i32_0 : i32, i32, i32
  }
  func.func @transform_1(%arg0: i32) -> (i32, i32, i32) {
    %c0_i32 = arith.constant 0 : i32
    %c0_i32_0 = arith.constant 0 : i32
    %c0_i32_1 = arith.constant 0 : i32
    return %arg0, %c0_i32, %c0_i32_0 : i32, i32, i32
  }
  func.func @transform_2(%arg0: i32) -> (i32, i32) {
    %c0_i32 = arith.constant 0 : i32
    %c0_i32_0 = arith.constant 0 : i32
    %c0_i32_1 = arith.constant 0 : i32
    return %c0_i32, %c0_i32_0 : i32, i32
  }
  func.func @transform_3(%arg0: i32) -> (i32, i32) {
    %c0_i32 = arith.constant 0 : i32
    %c0_i32_0 = arith.constant 0 : i32
    %c0_i32_1 = arith.constant 0 : i32
    return %c0_i32, %c0_i32_0 : i32, i32
  }
  func.func @transform_4(%arg0: i32) -> (i32, i32) {
    %c0_i32 = arith.constant 0 : i32
    %c0_i32_0 = arith.constant 0 : i32
    %c0_i32_1 = arith.constant 0 : i32
    return %c0_i32, %c0_i32_0 : i32, i32
  }
  func.func @transform_5(%arg0: i32) -> (i32, i32) {
    %c0_i32 = arith.constant 0 : i32
    %c0_i32_0 = arith.constant 0 : i32
    %c0_i32_1 = arith.constant 0 : i32
    return %c0_i32, %c0_i32_0 : i32, i32
  }
  func.func @transform_6(%arg0: i32) -> (i32, i32) {
    %c0_i32 = arith.constant 0 : i32
    %c0_i32_0 = arith.constant 0 : i32
    %c0_i32_1 = arith.constant 0 : i32
    return %c0_i32, %c0_i32_0 : i32, i32
  }
  func.func @transform_7(%arg0: i32) -> (i32, i32) {
    %c0_i32 = arith.constant 0 : i32
    %c0_i32_0 = arith.constant 0 : i32
    %c0_i32_1 = arith.constant 0 : i32
    return %c0_i32, %c0_i32_0 : i32, i32
  }
  func.func @transform_8(%arg0: i32) -> (i32, i32) {
    %c0_i32 = arith.constant 0 : i32
    %c0_i32_0 = arith.constant 0 : i32
    %c0_i32_1 = arith.constant 0 : i32
    return %c0_i32, %c0_i32_0 : i32, i32
  }
  func.func @transform_9(%arg0: i32) -> (i32, i32) {
    %c0_i32 = arith.constant 0 : i32
    %c0_i32_0 = arith.constant 0 : i32
    %c0_i32_1 = arith.constant 0 : i32
    return %c0_i32, %c0_i32_0 : i32, i32
  }
  func.func @transform_10(%arg0: i32) -> (i32, i32) {
    %c0_i32 = arith.constant 0 : i32
    %c0_i32_0 = arith.constant 0 : i32
    %c0_i32_1 = arith.constant 0 : i32
    return %c0_i32, %c0_i32_0 : i32, i32
  }
  func.func @transform_11(%arg0: i32) -> (i32, i32) {
    %c0_i32 = arith.constant 0 : i32
    %c0_i32_0 = arith.constant 0 : i32
    %c0_i32_1 = arith.constant 0 : i32
    return %c0_i32, %c0_i32_0 : i32, i32
  }
  func.func @transform_12(%arg0: i32) -> (i32, i32) {
    %c0_i32 = arith.constant 0 : i32
    %c0_i32_0 = arith.constant 0 : i32
    %c0_i32_1 = arith.constant 0 : i32
    return %c0_i32, %c0_i32_0 : i32, i32
  }
  func.func @transform_13(%arg0: i32) -> (i32, i32) {
    %c0_i32 = arith.constant 0 : i32
    %c0_i32_0 = arith.constant 0 : i32
    %c0_i32_1 = arith.constant 0 : i32
    return %c0_i32, %c0_i32_0 : i32, i32
  }
  func.func @transform_14(%arg0: i32) -> (i32, i32) {
    %c0_i32 = arith.constant 0 : i32
    %c0_i32_0 = arith.constant 0 : i32
    %c0_i32_1 = arith.constant 0 : i32
    return %c0_i32, %c0_i32_0 : i32, i32
  }
  func.func @transform_15(%arg0: i32) -> (i32, i32) {
    %c0_i32 = arith.constant 0 : i32
    %c0_i32_0 = arith.constant 0 : i32
    %c0_i32_1 = arith.constant 0 : i32
    return %c0_i32, %c0_i32_0 : i32, i32
  }
  func.func @transform_16(%arg0: i32) -> (i32, i32) {
    %c0_i32 = arith.constant 0 : i32
    %c0_i32_0 = arith.constant 0 : i32
    %c0_i32_1 = arith.constant 0 : i32
    return %c0_i32, %c0_i32_0 : i32, i32
  }
  func.func @transform_17(%arg0: i32) -> (i32, i32) {
    %c0_i32 = arith.constant 0 : i32
    %c0_i32_0 = arith.constant 0 : i32
    %c0_i32_1 = arith.constant 0 : i32
    return %c0_i32, %c0_i32_0 : i32, i32
  }
  func.func @transform_18(%arg0: i32) -> (i32, i32) {
    %c0_i32 = arith.constant 0 : i32
    %c0_i32_0 = arith.constant 0 : i32
    %c0_i32_1 = arith.constant 0 : i32
    return %c0_i32, %c0_i32_0 : i32, i32
  }
  func.func @transform_19(%arg0: i32) -> (i32, i32, i32) {
    %c0_i32 = arith.constant 0 : i32
    %c0_i32_0 = arith.constant 0 : i32
    %c0_i32_1 = arith.constant 0 : i32
    return %arg0, %c0_i32, %c0_i32_0 : i32, i32, i32
  }
}

</mosaic_0001>

<bundles_post_ra>
// kernel: tpu_custom_call.1
= control target key start
LH: loop header
LB: loop body
LE: loop exit
PB: predicated region body
PF: predicated region fallthrough
CT: control target
= control target key end

     0   :  { %s6099_s0 = inlined_call_operand.hbm [shape: bf16[4,16,16], index: 0, kind: input, shape index: {}]   ;;  %s6100_s1 = inlined_call_operand.vmem [shape: f32[4,16,3], index: 1, kind: input, shape index: {}]   ;;  %s6101_s2 = inlined_call_operand.vmem [shape: bf16[16,64], index: 2, kind: input, shape index: {}]   ;;  %s6102_s3 = inlined_call_operand.hbm [shape: f32[1,64], index: 3, kind: input, shape index: {}]   ;;  %s6103_s4 = inlined_call_operand.hbm [shape: bf16[64,128], index: 4, kind: input, shape index: {}]   ;;  %s6104_s5 = inlined_call_operand.vmem [shape: f32[1,128], index: 5, kind: input, shape index: {}]   ;;  %s6105_s6 = inlined_call_operand.vmem [shape: bf16[128,256], index: 6, kind: input, shape index: {}]   ;;  %s6106_s7 = inlined_call_operand.vmem [shape: f32[1,256], index: 7, kind: input, shape index: {}]   ;;  %s6107_s8 = inlined_call_operand.vmem [shape: bf16[256,64], index: 8, kind: input, shape index: {}]   ;;  %s6108_s9 = inlined_call_operand.vmem [shape: f32[1,64], index: 9, kind: input, shape index: {}]   ;;  %s6109_s10 = inlined_call_operand.vmem [shape: bf16[64,512], index: 10, kind: input, shape index: {}]   ;;  %s6110_s11 = inlined_call_operand.hbm [shape: bf16[64,512], index: 11, kind: input, shape index: {}]   ;;  %s6111_s12 = inlined_call_operand.vmem [shape: f32[1,512], index: 12, kind: input, shape index: {}]   ;;  %s6112_s13 = inlined_call_operand.hbm [shape: bf16[512,256], index: 13, kind: input, shape index: {}]   ;;  %s6113_s14 = inlined_call_operand.vmem [shape: f32[1,256], index: 14, kind: input, shape index: {}]   ;;  %s6114_s15 = inlined_call_operand.hbm [shape: bf16[256,128], index: 15, kind: input, shape index: {}]   ;;  %s6115_s16 = inlined_call_operand.vmem [shape: f32[1,128], index: 16, kind: input, shape index: {}]   ;;  %s6116_s17 = inlined_call_operand.vmem [shape: bf16[128,16], index: 17, kind: input, shape index: {}]   ;;  %s6117_s18 = inlined_call_operand.vmem [shape: f32[1,16], index: 18, kind: input, shape index: {}]   ;;  %s6118_s19 = inlined_call_operand.hbm [shape: f32[4,1,128], index: 19, kind: output, shape index: {}]  }
   0x1   :  { %6120 = sst [smem:[#allocation19_spill]] %s6099_s0 }
   0x2   :  { %6121 = sst [smem:[#allocation20_spill]] %s6100_s1 }
   0x3   :  { %6122 = sst [smem:[#allocation21_spill]] %s6101_s2 }
   0x4   :  { %6123 = sst [smem:[#allocation22_spill]] %s6102_s3 }
   0x5   :  { %6124 = sst [smem:[#allocation23_spill]] %s6118_s19 }
   0x6   :  { %24 = vsyncpa [#allocation3], 0 }
   0x7   :  { %25 = vsyncpa [#allocation6], 0 }
   0x8   :  { %26 = vsyncpa [#allocation9], 0 }
   0x9   :  { %27 = vsyncpa [#allocation12], 0  ;;  %s6125_s20 = sld [smem:[#allocation22_spill]] }
   0xf   :  { %s51_s21 = sshll.u32 %s6125_s20, 4  ;;  %s52_s21 = int_to_ptr.hbm [resolvable:$true] %s51_s21 }
  0x10   :  { %28 = vsyncpa [#allocation4], 0  ;;  %s4732_s1 = smov [#allocation5]   ;;  %s86_s24 = sshll.u32 %s6110_s11, 4  ;;  %s87_s24 = int_to_ptr.hbm [resolvable:$true] %s86_s24 }
  0x11   :  { %s53_s22 = sshll.u32 %s4732_s1, 4  ;;  %s4733_s25 = smov [#allocation8]   ;;  %s54_s22 = int_to_ptr.vmem [resolvable:$true] %s53_s22 }
  0x12   :  { %56 = dma.hbm_to_vmem [thread:$0]  %s52_s21, 16, %s54_s22, [#allocation6]  }
  0x13   :  { %s88_s3 = sshll.u32 %s4733_s25, 4  ;;  %s4734_s26 = smov 256   ;;  %s89_s3 = int_to_ptr.vmem [resolvable:$true] %s88_s3 }
  0x14   :  { %s4735_s27 = smov 16   ;;  %s6126_s0 = sld [smem:[#allocation19_spill]] }
  0x15   :  { %94 = dma.hbm_to_vmem [thread:$0]  %s87_s24, 2048, %s89_s3, [#allocation9], %s4734_s26, %s4734_s26, %s4735_s27  }
  0x16   :  { %s4736_s20 = smov [#allocation2]   ;;  %s61_s11 = sshll.u32 %s6103_s4, 4  ;;  %s62_s11 = int_to_ptr.hbm [resolvable:$true] %s61_s11 }
  0x17   :  { %s35_s1 = sshll.u32 %s4736_s20, 4  ;;  %s4737_s21 = smov 64   ;;  %s36_s1 = int_to_ptr.vmem [resolvable:$true] %s35_s1 }
  0x18   :  { %s4738_s22 = smov 4   ;;  %s4739_s23 = smov [#allocation7]  }
  0x19   :  { %s63_s24 = sshll.u32 %s4739_s23, 4  ;;  %s101_s26 = sshll.u32 %s6112_s13, 4  ;;  %s64_s24 = int_to_ptr.vmem [resolvable:$true] %s63_s24  ;;  %s102_s26 = int_to_ptr.hbm [resolvable:$true] %s101_s26 }
  0x1a   :  { %s33_s30 = sshll.u32 %s6126_s0, 4  ;;  %s4740_s28 = smov [#allocation10]   ;;  %s34_s30 = int_to_ptr.hbm [resolvable:$true] %s33_s30 }
  0x1b   :  { %41 = dma.hbm_to_vmem [thread:$0]  %s34_s30, 512, %s36_s1, [#allocation3], %s4737_s21, %s4737_s21, %s4738_s22  }
  0x1c   :  { %69 = dma.hbm_to_vmem [thread:$0]  %s62_s11, 512, %s64_s24, [#allocation6], %s4737_s21, %s4737_s21, %s4738_s22  }
  0x1d   :  { %s103_s19 = sshll.u32 %s4740_s28, 4  ;;  %s116_s0 = sshll.u32 %s6114_s15, 4  ;;  %s104_s19 = int_to_ptr.vmem [resolvable:$true] %s103_s19  ;;  %s117_s0 = int_to_ptr.hbm [resolvable:$true] %s116_s0 }
  0x1e   :  { %s4741_s30 = smov 128   ;;  %s4742_s20 = smov 8  }
  0x1f   :  { %109 = dma.hbm_to_vmem [thread:$0]  %s102_s26, 8192, %s104_s19, [#allocation9], %s4741_s30, %s4741_s30, %s4742_s20  }
  0x20   :  { %s4743_s1 = smov [#allocation11]  }
  0x21   :  { %s118_s2 = sshll.u32 %s4743_s1, 4  ;;  %s119_s2 = int_to_ptr.vmem [resolvable:$true] %s118_s2 }
  0x22   :  { %124 = dma.hbm_to_vmem [thread:$0]  %s117_s0, 2048, %s119_s2, [#allocation12], %s4737_s21, %s4737_s21, %s4738_s22  }
  0x23   :  { %4722 = dma.done.wait [#allocation3], 512  }
  0x24   :  { %4723 = vsyncadd [#allocation3], 4294966784 }
  0x25   :  { %4724 = dma.done.wait [#allocation6], 528  }
  0x26   :  { %4725 = vsyncadd [#allocation6], 4294966768 }
  0x27   :  { %4726 = dma.done.wait [#allocation9], 10240  }
  0x28   :  { %4727 = vsyncadd [#allocation9], 4294957056 }
  0x29   :  { %4728 = dma.done.wait [#allocation12], 2048  }
  0x2a   :  { %4729 = vsyncadd [#allocation12], 4294965248  ;;  %s6127_s11 = sld [smem:[#allocation21_spill]]  ;;  %v4304_v1 = vld [vmem:[#allocation2] sm:$0xff]  ;;  %vm196_vm0 = vcmask 130048   ;;  %v4305_v2 = vld [vmem:[#allocation2 + $0x8] sm:$0xff] }
  0x2b   :  { %v4306_v3 = vld [vmem:[#allocation2 + $0x10] sm:$0xff]  ;;  %v4307_v4 = vld [vmem:[#allocation2 + $0x18] sm:$0xff]  ;;  %v4309_v8 = vld [vmem:[#allocation7] sm:$0xff]  ;;  %vm286_vm1 = vcmask 523264   ;;  %vm818_vm2 = vcmask 1041409   ;;  %vm820_vm3 = vcmask 1042434  }
  0x2c   :  { %v4312_v5 = vld [vmem:[#allocation7 + $0x18] sm:$0xff]  ;;  %v4311_v6 = vld [vmem:[#allocation7 + $0x10] sm:$0xff]  ;;  %v4310_v7 = vld [vmem:[#allocation7 + $0x8] sm:$0xff]  ;;  %vm822_vm4 = vcmask 1043459   ;;  %vm967_vm5 = vcmask 1040384   ;;  %vm970_vm6 = vcmask 1041408  }
  0x2d   :  { %303 = vmatpush.bf16.msra.mxu1 %v4312_v5  ;;  %v4501_v10 = vld [vmem:[#allocation5] ss:$0 sm:$0xff]  ;;  %v3718_v24 = vld [vmem:[%s6105_s6 + $0x70] sm:$0xf]  ;;  %v4328_v25 = vld [vmem:[%s6105_s6 + $0x74] sm:$0xf0] }
  0x2e   :  { %v4327_v26 = vld [vmem:[%s6105_s6 + $0x74] sm:$0xf]  ;;  %v3719_v28 = vor.u32 %v4328_v25, %v3718_v24  ;;  %v3720_v29 = vld [vmem:[%s6105_s6 + $0x78] sm:$0xf0]  ;;  %v3710_v30 = vld [vmem:[%s6105_s6 + $0x60] sm:$0xf] }
  0x2f   :  { %v4326_v31 = vld [vmem:[%s6105_s6 + $0x64] sm:$0xf0]  ;;  %v3723_v32 = vor.u32 %v4327_v26, %v3720_v29  ;;  %v4325_v33 = vld [vmem:[%s6105_s6 + $0x64] sm:$0xf]  ;;  %v3712_v34 = vld [vmem:[%s6105_s6 + $0x68] sm:$0xf0] }
  0x30   :  { %v4308_v0 = vld [vmem:[%s6127_s11] sm:$0xff]  ;;  %442 = vmatpush.bf16.msra.mxu2 %v3719_v28  ;;  %v3711_v35 = vor.u32 %v4326_v31, %v3710_v30  ;;  %v3715_v36 = vor.u32 %v4325_v33, %v3712_v34  ;;  %v3702_v37 = vld [vmem:[%s6105_s6 + $0x50] sm:$0xf]  ;;  %v4324_v38 = vld [vmem:[%s6105_s6 + $0x54] sm:$0xf0]  ;;  %vm974_vm7 = vcmask 1042433  }
  0x31   :  { %216 = vmatpush.bf16.msra.mxu0 %v4308_v0  ;;  %304 = vmatpush.bf16.msra.mxu1 %v4311_v6  ;;  %v4323_v39 = vld [vmem:[%s6105_s6 + $0x54] sm:$0xf]  ;;  %v3704_v40 = vld [vmem:[%s6105_s6 + $0x58] sm:$0xf0]  ;;  %v3703_v41 = vor.u32 %v4324_v38, %v3702_v37  ;;  %v3694_v44 = vld [vmem:[%s6105_s6 + $0x40] sm:$0xf] }
  0x32   :  { %471 = vmatpush.bf16.msra.mxu3 %v3723_v32  ;;  %v3707_v43 = vor.u32 %v4323_v39, %v3704_v40  ;;  %v4322_v45 = vld [vmem:[%s6105_s6 + $0x44] sm:$0xf0]  ;;  %v4321_v47 = vld [vmem:[%s6105_s6 + $0x44] sm:$0xf]  ;;  %v3696_v48 = vld [vmem:[%s6105_s6 + $0x48] sm:$0xf0] }
  0x33   :  { %v3695_v50 = vor.u32 %v4322_v45, %v3694_v44  ;;  %v3699_v53 = vor.u32 %v4321_v47, %v3696_v48  ;;  %v3686_v62 = vld [vmem:[%s6105_s6 + $0x30] sm:$0xf]  ;;  %v4320_v63 = vld [vmem:[%s6105_s6 + $0x34] sm:$0xf0]  ;;  %v4319_v0 = vld [vmem:[%s6105_s6 + $0x34] sm:$0xf] }
  0x34   :  { %3636 = vmatmul.msk.bf16.vlgmr.msra.gmra.mxu0 %vm196_vm0, %v4304_v1  ;;  %443 = vmatpush.bf16.msra.mxu2 %v3711_v35  ;;  %v3687_v1 = vor.u32 %v4320_v63, %v3686_v62  ;;  %v4318_v5 = vld [vmem:[%s6105_s6 + $0x24] sm:$0xf0]  ;;  %v4317_v6 = vld [vmem:[%s6105_s6 + $0x24] sm:$0xf]  ;;  %v4336_v37 = vld [vmem:[%s6107_s8 + $0x38] sm:$0xff]  ;;  %vm978_vm8 = vcmask 1044484  }
  0x35   :  { %305 = vmatpush.bf16.msra.mxu1 %v4310_v7  ;;  %v4344_v38 = vld [vmem:[%s6107_s8 + $0x78] sm:$0xff]  ;;  %656 = vmatpush.bf16.msrb.mxu0 %v4336_v37  ;;  %v4335_v40 = vld [vmem:[%s6107_s8 + $0x30] sm:$0xff]  ;;  %v4333_v47 = vld [vmem:[%s6107_s8 + $0x20] sm:$0xff]  ;;  %vm980_vm9 = vcmask 1043458   ;;  %vm984_vm10 = vcmask 1045509   ;;  %vm986_vm11 = vcmask 1044483  }
  0x36   :  { %472 = vmatpush.bf16.msra.mxu3 %v3715_v36  ;;  %v4341_v48 = vld [vmem:[%s6107_s8 + $0x60] sm:$0xff]  ;;  %s6128_s29 = sld [smem:[#allocation20_spill]]  ;;  %vm2412_vm12 = vcmask 23552   ;;  %vm2445_vm13 = vcmask 31744   ;;  %vm2454_vm14 = vcmask 39936   ;;  %s4746_s24 = smov 1  }
  0x37   :  { %vm2947_vm15 = vcmask 7168   ;;  %s4750_s25 = smov 32   ;;  %s4751_s3 = smov 56  }
  0x38   :  { %444 = vmatpush.bf16.msra.mxu2 %v3703_v41  ;;  %v4343_v41 = vld [vmem:[%s6107_s8 + $0x70] sm:$0xff]  ;;  %s4752_s26 = smov 80   ;;  %s4753_s28 = smov 104  }
  0x39   :  { %306 = vmatpush.bf16.msra.mxu1 %v4309_v8  ;;  %v3680_v8 = vld [vmem:[%s6105_s6 + $0x28] sm:$0xf0]  ;;  %657 = vmatpush.bf16.msrb.mxu0 %v4335_v40  ;;  %s4754_s19 = smov 24   ;;  %s4755_s4 = smov 88  }
  0x3a   :  { %473 = vmatpush.bf16.msra.mxu3 %v3707_v43  ;;  %v4342_v43 = vld [vmem:[%s6107_s8 + $0x68] sm:$0xff]  ;;  %s4759_s0 = smov 96  }
  0x3c   :  { %445 = vmatpush.bf16.msra.mxu2 %v3695_v50 }
  0x3d   :  { %685 = vmatpush.bf16.msrb.mxu1 %v4344_v38 }
  0x3e   :  { %474 = vmatpush.bf16.msra.mxu3 %v3699_v53  ;;  %v4340_v53 = vld [vmem:[%s6107_s8 + $0x58] sm:$0xff] }
  0x40   :  { %446 = vmatpush.bf16.msra.mxu2 %v3687_v1  ;;  %v4329_v1 = vld [vmem:[%s6107_s8] sm:$0xff] }
  0x41   :  { %686 = vmatpush.bf16.msrb.mxu1 %v4343_v41 }
  0x44   :  { %3637 = vmatmul.msk.bf16.gmra.mxu0 %vm196_vm0, %v4305_v2  ;;  %v3688_v2 = vld [vmem:[%s6105_s6 + $0x38] sm:$0xf0] }
  0x45   :  { %687 = vmatpush.bf16.msrb.mxu1 %v4342_v43 }
  0x49   :  { %688 = vmatpush.bf16.msrb.mxu1 %v4341_v48 }
  0x4d   :  { %689 = vmatpush.bf16.msrb.mxu1 %v4340_v53 }
  0x54   :  { %3638 = vmatmul.msk.bf16.gmra.mxu0 %vm196_vm0, %v4306_v3  ;;  %v3691_v3 = vor.u32 %v4319_v0, %v3688_v2  ;;  %v4338_v0 = vld [vmem:[%s6107_s8 + $0x48] sm:$0xff]  ;;  %v4337_v2 = vld [vmem:[%s6107_s8 + $0x40] sm:$0xff] }
  0x56   :  { %475 = vmatpush.bf16.msra.mxu3 %v3691_v3  ;;  %v356_v3 = vld [vmem:[%s6106_s7] sm:$0x3]  ;;  %s4760_s7 = smov 120  }
  0x64   :  { %3639 = vmatmul.msk.bf16.gmra.mxu0 %vm196_vm0, %v4307_v4  ;;  %v3678_v4 = vld [vmem:[%s6105_s6 + $0x20] sm:$0xf] }
  0x65   :  { %v3679_v7 = vor.u32 %v4318_v5, %v3678_v4 }
  0x67   :  { %447 = vmatpush.bf16.msra.mxu2 %v3679_v7  ;;  %v359_v7 = vperm.slane %v356_v3, 1 }
  0xb1   :  { %v218_v9 = vpop.f32.mrf.mxu0 }
  0xb2   :  { %v219_v11 = vadd.f32 %v4501_v10, %v218_v9  ;;  %v3683_v9 = vor.u32 %v4317_v6, %v3680_v8  ;;  %v358_v6 = vperm.slane %v356_v3, 0 }
  0xb4   :  { %v238_v14 = vmax.f32 %v219_v11, 0.0  ;;  %476 = vmatpush.bf16.msra.mxu3 %v3683_v9  ;;  %v4316_v11 = vld [vmem:[%s6105_s6 + $0x14] sm:$0xf0] }
  0xb9   :  { %v220_v12 = vpop.f32.mrf.mxu0 }
  0xba   :  { %v221_v13 = vadd.f32 %v4501_v10, %v220_v12  ;;  %v4315_v12 = vld [vmem:[%s6105_s6 + $0x14] sm:$0xf] }
  0xbc   :  { %v239_v15 = vmax.f32 %v221_v13, 0.0 }
  0xbe   :  { %v246_v16 = vpack.c.bf16 %v239_v15, %v238_v14  ;;  %v3672_v14 = vld [vmem:[%s6105_s6 + $0x18] sm:$0xf0] }
  0xbf   :  { %v3675_v15 = vor.u32 %v4315_v12, %v3672_v14 }
  0xc0   :  { %3656 = vmatmul.msk.bf16.vlgmr.msra.gmra.mxu1 %vm286_vm1, %v246_v16  ;;  %v3662_v16 = vld [vmem:[%s6105_s6] sm:$0xf] }
  0xc1   :  { %v223_v17 = vpop.f32.mrf.mxu0  ;;  %477 = vmatpush.bf16.msra.mxu3 %v3675_v15 }
  0xc2   :  { %v224_v18 = vadd.f32 %v4501_v10, %v223_v17  ;;  %v4314_v17 = vld [vmem:[%s6105_s6 + $0x4] sm:$0xf0] }
  0xc4   :  { %v240_v21 = vmax.f32 %v224_v18, 0.0  ;;  %v4313_v18 = vld [vmem:[%s6105_s6 + $0x4] sm:$0xf] }
  0xc9   :  { %v225_v19 = vpop.f32.mrf.mxu0 }
  0xca   :  { %v226_v20 = vadd.f32 %v4501_v10, %v225_v19  ;;  %v3663_v19 = vor.u32 %v4314_v17, %v3662_v16 }
  0xcc   :  { %v241_v22 = vmax.f32 %v226_v20, 0.0  ;;  %v3664_v20 = vld [vmem:[%s6105_s6 + $0x8] sm:$0xf0] }
  0xce   :  { %v247_v23 = vpack.c.bf16 %v241_v22, %v240_v21  ;;  %v3667_v21 = vor.u32 %v4313_v18, %v3664_v20 }
  0xd0   :  { %3657 = vmatmul.msk.bf16.gmra.mxu1 %vm286_vm1, %v247_v23  ;;  %478 = vmatpush.bf16.msra.mxu3 %v3667_v21  ;;  %v4502_v23 = vld [vmem:[%s6104_s5] ss:$0 sm:$0xff] }
  0xd1   :  { %v228_v27 = vpop.f32.mrf.mxu0 }
  0xd2   :  { %v229_v42 = vadd.f32 %v4501_v10, %v228_v27 }
  0xd4   :  { %v242_v51 = vmax.f32 %v229_v42, 0.0  ;;  %v4334_v42 = vld [vmem:[%s6107_s8 + $0x28] sm:$0xff] }
  0xd5   :  { %658 = vmatpush.bf16.msrb.mxu0 %v4334_v42 }
  0xd9   :  { %v230_v46 = vpop.f32.mrf.mxu0  ;;  %659 = vmatpush.bf16.msrb.mxu0 %v4333_v47 }
  0xda   :  { %v231_v49 = vadd.f32 %v4501_v10, %v230_v46 }
  0xdc   :  { %v243_v52 = vmax.f32 %v231_v49, 0.0 }
  0xde   :  { %v248_v54 = vpack.c.bf16 %v243_v52, %v242_v51  ;;  %v4332_v52 = vld [vmem:[%s6107_s8 + $0x18] sm:$0xff] }
  0xdf   :  { %660 = vmatpush.bf16.msrb.mxu0 %v4332_v52 }
  0xe0   :  { %3658 = vmatmul.msk.bf16.gmra.mxu1 %vm286_vm1, %v248_v54 }
  0xe1   :  { %v233_v55 = vpop.f32.mrf.mxu0 }
  0xe2   :  { %v234_v56 = vadd.f32 %v4501_v10, %v233_v55  ;;  %v4331_v55 = vld [vmem:[%s6107_s8 + $0x10] sm:$0xff] }
  0xe3   :  { %661 = vmatpush.bf16.msrb.mxu0 %v4331_v55 }
  0xe4   :  { %v244_v59 = vmax.f32 %v234_v56, 0.0  ;;  %v4339_v56 = vld [vmem:[%s6107_s8 + $0x50] sm:$0xff] }
  0xe5   :  { %690 = vmatpush.bf16.msrb.mxu1 %v4339_v56 }
  0xe9   :  { %v235_v57 = vpop.f32.mrf.mxu0  ;;  %691 = vmatpush.bf16.msrb.mxu1 %v4338_v0  ;;  %v4358_v0 = vld [vmem:[%s6109_s10 + $0x6c] sm:$0xf] }
  0xea   :  { %v236_v58 = vadd.f32 %v4501_v10, %v235_v57  ;;  %v3670_v10 = vld [vmem:[%s6105_s6 + $0x10] sm:$0xf]  ;;  %v4330_v57 = vld [vmem:[%s6107_s8 + $0x8] sm:$0xff] }
  0xeb   :  { %v3671_v13 = vor.u32 %v4316_v11, %v3670_v10  ;;  %662 = vmatpush.bf16.msrb.mxu0 %v4330_v57 }
  0xec   :  { %v245_v60 = vmax.f32 %v236_v58, 0.0 }
  0xed   :  { %448 = vmatpush.bf16.msra.mxu2 %v3671_v13  ;;  %692 = vmatpush.bf16.msrb.mxu1 %v4337_v2  ;;  %v3916_v2 = vld [vmem:[%s6109_s10 + $0x78] sm:$0xf0] }
  0xee   :  { %v249_v61 = vpack.c.bf16 %v245_v60, %v244_v59  ;;  %v3919_v3 = vor.u32 %v4358_v0, %v3916_v2 }
  0xef   :  { %663 = vmatpush.bf16.msrb.mxu0 %v4329_v1 }
  0xf0   :  { %3659 = vmatmul.msk.bf16.gmra.mxu1 %vm286_vm1, %v249_v61 }
  0xf1   :  { %449 = vmatpush.bf16.msra.mxu2 %v3663_v19  ;;  %1224 = vmatpush.bf16.msra.mxu1 %v3919_v3  ;;  %v3824_v3 = vld [vmem:[#allocation8 + $0x50] sm:$0xf0] }
 0x13d   :  { %v308_v22 = vpop.f32.mrf.mxu1 }
 0x13e   :  { %v309_v24 = vadd.f32 %v4502_v23, %v308_v22 }
 0x140   :  { %v328_v27 = vmax.f32 %v309_v24, 0.0 }
 0x145   :  { %v310_v25 = vpop.f32.mrf.mxu1 }
 0x146   :  { %v311_v26 = vadd.f32 %v4502_v23, %v310_v25 }
 0x148   :  { %v329_v28 = vmax.f32 %v311_v26, 0.0 }
 0x14a   :  { %v336_v29 = vpack.c.bf16 %v329_v28, %v328_v27 }
 0x14c   :  { %450 = vmatmul.bf16.vlgmr.msra.gmra.mxu2 %v336_v29  ;;  %479 = vmatmul.bf16.vlgmr.msra.gmra.mxu3 %v336_v29 }
 0x14d   :  { %v313_v30 = vpop.f32.mrf.mxu1 }
 0x14e   :  { %v314_v31 = vadd.f32 %v4502_v23, %v313_v30 }
 0x150   :  { %v330_v34 = vmax.f32 %v314_v31, 0.0 }
 0x155   :  { %v315_v32 = vpop.f32.mrf.mxu1 }
 0x156   :  { %v316_v33 = vadd.f32 %v4502_v23, %v315_v32 }
 0x158   :  { %v331_v35 = vmax.f32 %v316_v33, 0.0 }
 0x15a   :  { %v337_v36 = vpack.c.bf16 %v331_v35, %v330_v34 }
 0x15c   :  { %455 = vmatmul.bf16.gmra.mxu2 %v337_v36  ;;  %484 = vmatmul.bf16.gmra.mxu3 %v337_v36 }
 0x15d   :  { %v318_v39 = vpop.f32.mrf.mxu1 }
 0x15e   :  { %v319_v44 = vadd.f32 %v4502_v23, %v318_v39 }
 0x160   :  { %v332_v49 = vmax.f32 %v319_v44, 0.0 }
 0x165   :  { %v320_v45 = vpop.f32.mrf.mxu1 }
 0x166   :  { %v321_v46 = vadd.f32 %v4502_v23, %v320_v45 }
 0x168   :  { %v333_v50 = vmax.f32 %v321_v46, 0.0 }
 0x16a   :  { %v338_v51 = vpack.c.bf16 %v333_v50, %v332_v49 }
 0x16c   :  { %460 = vmatmul.bf16.gmra.mxu2 %v338_v51  ;;  %489 = vmatmul.bf16.gmra.mxu3 %v338_v51 }
 0x16d   :  { %v323_v54 = vpop.f32.mrf.mxu1 }
 0x16e   :  { %v324_v58 = vadd.f32 %v4502_v23, %v323_v54 }
 0x170   :  { %v334_v61 = vmax.f32 %v324_v58, 0.0 }
 0x175   :  { %v325_v59 = vpop.f32.mrf.mxu1 }
 0x176   :  { %v326_v60 = vadd.f32 %v4502_v23, %v325_v59 }
 0x178   :  { %v335_v62 = vmax.f32 %v326_v60, 0.0 }
 0x17a   :  { %v339_v63 = vpack.c.bf16 %v335_v62, %v334_v61  ;;  %v3914_v62 = vld [vmem:[%s6109_s10 + $0x68] sm:$0xf] }
 0x17c   :  { %465 = vmatmul.bf16.gmra.mxu2 %v339_v63  ;;  %494 = vmatmul.bf16.gmra.mxu3 %v339_v63  ;;  %v4360_v63 = vld [vmem:[%s6109_s10 + $0x74] sm:$0xf0] }
 0x17d   :  { %v3915_v1 = vor.u32 %v4360_v63, %v3914_v62  ;;  %v4371_v62 = vld [vmem:[#allocation8 + $0x4c] sm:$0xf0]  ;;  %v4369_v63 = vld [vmem:[#allocation8 + $0x44] sm:$0xf] }
 0x17f   :  { %1195 = vmatpush.bf16.msra.mxu0 %v3915_v1 }
 0x1cf   :  { %v451_v4 = vpop.f32.mrf.mxu2  ;;  %v480_v5 = vpop.f32.mrf.mxu3 }
 0x1d0   :  { %v452_v8 = vadd.f32 %v451_v4, %v358_v6  ;;  %v481_v9 = vadd.f32 %v480_v5, %v359_v7  ;;  %v3898_v4 = vld [vmem:[%s6109_s10 + $0x48] sm:$0xf]  ;;  %v4356_v5 = vld [vmem:[%s6109_s10 + $0x54] sm:$0xf0] }
 0x1d2   :  { %v500_v14 = vmax.f32 %v452_v8, 0.0  ;;  %v501_v15 = vmax.f32 %v481_v9, 0.0  ;;  %v3900_v8 = vld [vmem:[%s6109_s10 + $0x58] sm:$0xf0] }
 0x1d7   :  { %v453_v10 = vpop.f32.mrf.mxu2  ;;  %v482_v11 = vpop.f32.mrf.mxu3 }
 0x1d8   :  { %v454_v12 = vadd.f32 %v453_v10, %v358_v6  ;;  %v483_v13 = vadd.f32 %v482_v11, %v359_v7  ;;  %v3882_v10 = vld [vmem:[%s6109_s10 + $0x28] sm:$0xf]  ;;  %v4352_v11 = vld [vmem:[%s6109_s10 + $0x34] sm:$0xf0] }
 0x1da   :  { %v502_v16 = vmax.f32 %v454_v12, 0.0  ;;  %v503_v17 = vmax.f32 %v483_v13, 0.0  ;;  %v4350_v12 = vld [vmem:[%s6109_s10 + $0x2c] sm:$0xf]  ;;  %v3883_v13 = vor.u32 %v4352_v11, %v3882_v10 }
 0x1dc   :  { %v516_v18 = vpack.c.bf16 %v502_v16, %v500_v14  ;;  %v517_v19 = vpack.c.bf16 %v503_v17, %v501_v15  ;;  %v3884_v14 = vld [vmem:[%s6109_s10 + $0x38] sm:$0xf0]  ;;  %v3866_v16 = vld [vmem:[%s6109_s10 + $0x8] sm:$0xf]  ;;  %v4348_v17 = vld [vmem:[%s6109_s10 + $0x14] sm:$0xf0] }
 0x1dd   :  { %v3887_v15 = vor.u32 %v4350_v12, %v3884_v14 }
 0x1de   :  { %664 = vmatmul.bf16.vlgmr.msrb.gmra.mxu0 %v516_v18  ;;  %693 = vmatmul.bf16.vlgmr.msrb.gmra.mxu1 %v517_v19  ;;  %v4346_v18 = vld [vmem:[%s6109_s10 + $0xc] sm:$0xf]  ;;  %v3867_v19 = vor.u32 %v4348_v17, %v3866_v16 }
 0x1df   :  { %v456_v20 = vpop.f32.mrf.mxu2  ;;  %v485_v21 = vpop.f32.mrf.mxu3 }
 0x1e0   :  { %v457_v22 = vadd.f32 %v456_v20, %v358_v6  ;;  %v486_v23 = vadd.f32 %v485_v21, %v359_v7  ;;  %v3868_v20 = vld [vmem:[%s6109_s10 + $0x18] sm:$0xf0] }
 0x1e1   :  { %v3871_v21 = vor.u32 %v4346_v18, %v3868_v20  ;;  %v3806_v20 = vld [vmem:[#allocation8 + $0x20] sm:$0xf] }
 0x1e2   :  { %v504_v28 = vmax.f32 %v457_v22, 0.0  ;;  %v505_v29 = vmax.f32 %v486_v23, 0.0  ;;  %v5100_v22 = vld [vmem:[%s6108_s9] ss:$0 sm:$0xff]  ;;  %s4749_s9 = smov 40  }
 0x1e7   :  { %v458_v24 = vpop.f32.mrf.mxu2  ;;  %v487_v25 = vpop.f32.mrf.mxu3 }
 0x1e8   :  { %v459_v26 = vadd.f32 %v458_v24, %v358_v6  ;;  %v488_v27 = vadd.f32 %v487_v25, %v359_v7 }
 0x1ea   :  { %v506_v30 = vmax.f32 %v459_v26, 0.0  ;;  %v507_v31 = vmax.f32 %v488_v27, 0.0 }
 0x1ec   :  { %v518_v32 = vpack.c.bf16 %v506_v30, %v504_v28  ;;  %v519_v33 = vpack.c.bf16 %v507_v31, %v505_v29 }
 0x1ee   :  { %669 = vmatmul.bf16.gmra.mxu0 %v518_v32  ;;  %698 = vmatmul.bf16.gmra.mxu1 %v519_v33 }
 0x1ef   :  { %v461_v34 = vpop.f32.mrf.mxu2  ;;  %v490_v35 = vpop.f32.mrf.mxu3 }
 0x1f0   :  { %v462_v36 = vadd.f32 %v461_v34, %v358_v6  ;;  %v491_v37 = vadd.f32 %v490_v35, %v359_v7 }
 0x1f2   :  { %v508_v42 = vmax.f32 %v462_v36, 0.0  ;;  %v509_v43 = vmax.f32 %v491_v37, 0.0 }
 0x1f7   :  { %v463_v38 = vpop.f32.mrf.mxu2  ;;  %v492_v39 = vpop.f32.mrf.mxu3 }
 0x1f8   :  { %v464_v40 = vadd.f32 %v463_v38, %v358_v6  ;;  %v493_v41 = vadd.f32 %v492_v39, %v359_v7 }
 0x1fa   :  { %v510_v44 = vmax.f32 %v464_v40, 0.0  ;;  %v511_v45 = vmax.f32 %v493_v41, 0.0  ;;  %v3838_v41 = vld [vmem:[#allocation8 + $0x60] sm:$0xf] }
 0x1fc   :  { %v520_v46 = vpack.c.bf16 %v510_v44, %v508_v42  ;;  %v521_v47 = vpack.c.bf16 %v511_v45, %v509_v43  ;;  %v4375_v42 = vld [vmem:[#allocation8 + $0x6c] sm:$0xf0]  ;;  %v4373_v43 = vld [vmem:[#allocation8 + $0x64] sm:$0xf] }
 0x1fd   :  { %v3839_v45 = vor.u32 %v4375_v42, %v3838_v41 }
 0x1fe   :  { %674 = vmatmul.bf16.gmra.mxu0 %v520_v46  ;;  %703 = vmatmul.bf16.gmra.mxu1 %v521_v47  ;;  %v3840_v46 = vld [vmem:[#allocation8 + $0x70] sm:$0xf0] }
 0x1ff   :  { %v466_v48 = vpop.f32.mrf.mxu2  ;;  %v495_v49 = vpop.f32.mrf.mxu3  ;;  %v3843_v47 = vor.u32 %v4373_v43, %v3840_v46  ;;  %912 = vmatpush.bf16.msrb.mxu2 %v3839_v45 }
 0x200   :  { %v467_v50 = vadd.f32 %v466_v48, %v358_v6  ;;  %v496_v51 = vadd.f32 %v495_v49, %v359_v7 }
 0x201   :  { %925 = vmatpush.bf16.msrb.mxu3 %v3843_v47 }
 0x202   :  { %v512_v56 = vmax.f32 %v467_v50, 0.0  ;;  %v513_v57 = vmax.f32 %v496_v51, 0.0 }
 0x207   :  { %v468_v52 = vpop.f32.mrf.mxu2  ;;  %v497_v53 = vpop.f32.mrf.mxu3 }
 0x208   :  { %v469_v54 = vadd.f32 %v468_v52, %v358_v6  ;;  %v498_v55 = vadd.f32 %v497_v53, %v359_v7  ;;  %v4354_v6 = vld [vmem:[%s6109_s10 + $0x4c] sm:$0xf]  ;;  %v3899_v7 = vor.u32 %v4356_v5, %v3898_v4  ;;  %v3827_v4 = vor.u32 %v4369_v63, %v3824_v3 }
 0x209   :  { %v3903_v9 = vor.u32 %v4354_v6, %v3900_v8  ;;  %v3830_v63 = vld [vmem:[#allocation8 + $0x48] sm:$0xf] }
 0x20a   :  { %v514_v58 = vmax.f32 %v469_v54, 0.0  ;;  %v515_v59 = vmax.f32 %v498_v55, 0.0  ;;  %1196 = vmatpush.bf16.msra.mxu0 %v3899_v7  ;;  %926 = vmatpush.bf16.msrb.mxu3 %v3827_v4 }
 0x20b   :  { %1225 = vmatpush.bf16.msra.mxu1 %v3903_v9 }
 0x20c   :  { %v522_v60 = vpack.c.bf16 %v514_v58, %v512_v56  ;;  %v523_v61 = vpack.c.bf16 %v515_v59, %v513_v57 }
 0x20e   :  { %679 = vmatmul.bf16.gmra.mxu0 %v522_v60  ;;  %708 = vmatmul.bf16.gmra.mxu1 %v523_v61  ;;  %v3822_v61 = vld [vmem:[#allocation8 + $0x40] sm:$0xf] }
 0x20f   :  { %1197 = vmatpush.bf16.msra.mxu0 %v3883_v13  ;;  %1226 = vmatpush.bf16.msra.mxu1 %v3887_v15  ;;  %v3823_v2 = vor.u32 %v4371_v62, %v3822_v61 }
 0x211   :  { %913 = vmatpush.bf16.msrb.mxu2 %v3823_v2  ;;  %v4370_v2 = vld [vmem:[#allocation8 + $0x4c] sm:$0xf] }
 0x213   :  { %1198 = vmatpush.bf16.msra.mxu0 %v3867_v19  ;;  %1227 = vmatpush.bf16.msra.mxu1 %v3871_v21  ;;  %v4367_v21 = vld [vmem:[#allocation8 + $0x2c] sm:$0xf0] }
 0x25b   :  { %v665_v23 = vpop.f32.mrf.mxu0  ;;  %v694_v24 = vpop.f32.mrf.mxu1 }
 0x25c   :  { %v666_v25 = vadd.f32 %v5100_v22, %v665_v23 }
 0x25e   :  { %v695_v26 = vadd.f32 %v694_v24, %v666_v25  ;;  %v3807_v25 = vor.u32 %v4367_v21, %v3806_v20  ;;  %v3798_v21 = vld [vmem:[#allocation8 + $0x8] sm:$0xf] }
 0x260   :  { %v714_v29 = vmax.f32 %v695_v26, 0.0  ;;  %v4365_v26 = vld [vmem:[#allocation8 + $0x24] sm:$0xf]  ;;  %914 = vmatpush.bf16.msrb.mxu2 %v3807_v25  ;;  %v4362_v25 = vld [vmem:[#allocation8 + $0xc] sm:$0xf] }
 0x262   :  { %v722_v32 = vpack.c.bf16 %v714_v29, %v714_v29 }
 0x263   :  { %v667_v27 = vpop.f32.mrf.mxu0  ;;  %v696_v28 = vpop.f32.mrf.mxu1 }
 0x264   :  { %v668_v30 = vadd.f32 %v5100_v22, %v667_v27  ;;  %v1029_v37 = vunpack.c.l.b16 %v722_v32  ;;  %v730_v8 = vunpack.c.l.bf16 %v722_v32  ;;  %v3808_v27 = vld [vmem:[#allocation8 + $0x30] sm:$0xf0] }
 0x265   :  { %v3811_v32 = vor.u32 %v4365_v26, %v3808_v27  ;;  %v3800_v26 = vld [vmem:[#allocation8 + $0x18] sm:$0xf0] }
 0x266   :  { %v697_v31 = vadd.f32 %v696_v28, %v668_v30  ;;  %v738_v15 = vsel %vm286_vm1, %v730_v8, -inf  ;;  %v3790_v28 = vld [vmem:[#allocation8] sm:$0xf] }
 0x267   :  { %927 = vmatpush.bf16.msrb.mxu3 %v3811_v32 }
 0x268   :  { %v715_v33 = vmax.f32 %v697_v31, 0.0 }
 0x26a   :  { %v723_v34 = vpack.c.bf16 %v715_v33, %v715_v33  ;;  %v4363_v33 = vld [vmem:[#allocation8 + $0xc] sm:$0xf0] }
 0x26b   :  { %v670_v35 = vpop.f32.mrf.mxu0  ;;  %v699_v36 = vpop.f32.mrf.mxu1  ;;  %v3791_v42 = vor.u32 %v4363_v33, %v3790_v28 }
 0x26c   :  { %v1030_v38 = vunpack.c.l.b16 %v723_v34  ;;  %v671_v39 = vadd.f32 %v5100_v22, %v670_v35  ;;  %v731_v11 = vunpack.c.l.bf16 %v723_v34  ;;  %v4361_v34 = vld [vmem:[#allocation8 + $0x4] sm:$0xf]  ;;  %v3792_v35 = vld [vmem:[#allocation8 + $0x10] sm:$0xf0] }
 0x26d   :  { %v3795_v43 = vor.u32 %v4361_v34, %v3792_v35  ;;  %915 = vmatpush.bf16.msrb.mxu2 %v3791_v42 }
 0x26e   :  { %v5105_v40 = vpack.c.b16 %v1030_v38, %v1029_v37  ;;  %v700_v44 = vadd.f32 %v699_v36, %v671_v39  ;;  %v739_v18 = vsel %vm286_vm1, %v731_v11, -inf  ;;  %v4368_v11 = vld [vmem:[#allocation8 + $0x34] sm:$0xf0] }
 0x26f   :  { %v740_v41 = vmax.f32 %v738_v15, %v739_v18  ;;  %928 = vmatpush.bf16.msrb.mxu3 %v3795_v43 }
 0x270   :  { %3928 = vmatmul.msk.bf16.vlgmr.msra.gmra.mxu0 %vm286_vm1, %v5105_v40  ;;  %3932 = vmatmul.msk.bf16.vlgmr.msra.gmra.mxu1 %vm286_vm1, %v5105_v40  ;;  %v716_v50 = vmax.f32 %v700_v44, 0.0 }
 0x272   :  { %v724_v53 = vpack.c.bf16 %v716_v50, %v716_v50  ;;  %v741_v50 = vrot.slane %v740_v41, 4 }
 0x273   :  { %v672_v48 = vpop.f32.mrf.mxu0  ;;  %v701_v49 = vpop.f32.mrf.mxu1 }
 0x274   :  { %v673_v51 = vadd.f32 %v5100_v22, %v672_v48  ;;  %v1031_v58 = vunpack.c.l.b16 %v724_v53  ;;  %v732_v12 = vunpack.c.l.bf16 %v724_v53  ;;  %v3846_v53 = vld [vmem:[#allocation8 + $0x68] sm:$0xf]  ;;  %v742_v3 = vmax.f32 %v740_v41, %v741_v50 }
 0x276   :  { %v702_v52 = vadd.f32 %v701_v49, %v673_v51  ;;  %v747_v19 = vsel %vm286_vm1, %v732_v12, -inf }
 0x278   :  { %v717_v54 = vmax.f32 %v702_v52, 0.0 }
 0x27a   :  { %v725_v55 = vpack.c.bf16 %v717_v54, %v717_v54  ;;  %v4376_v54 = vld [vmem:[#allocation8 + $0x74] sm:$0xf0] }
 0x27b   :  { %v675_v56 = vpop.f32.mrf.mxu0  ;;  %v704_v57 = vpop.f32.mrf.mxu1 }
 0x27c   :  { %v1032_v59 = vunpack.c.l.b16 %v725_v55  ;;  %v676_v60 = vadd.f32 %v5100_v22, %v675_v56  ;;  %v733_v9 = vunpack.c.l.bf16 %v725_v55  ;;  %v4374_v55 = vld [vmem:[#allocation8 + $0x6c] sm:$0xf] }
 0x27e   :  { %v5113_v0 = vpack.c.b16 %v1032_v59, %v1031_v58  ;;  %v705_v1 = vadd.f32 %v704_v57, %v676_v60  ;;  %v748_v16 = vsel %vm286_vm1, %v733_v9, -inf  ;;  %v3847_v58 = vor.u32 %v4376_v54, %v3846_v53  ;;  %v3848_v59 = vld [vmem:[#allocation8 + $0x78] sm:$0xf0] }
 0x27f   :  { %v749_v29 = vmax.f32 %v747_v19, %v748_v16  ;;  %v3851_v62 = vor.u32 %v4374_v55, %v3848_v59  ;;  %v743_v16 = vrot.slane %v742_v3, 2  ;;  %v3906_v59 = vld [vmem:[%s6109_s10 + $0x60] sm:$0xf] }
 0x280   :  { %3929 = vmatmul.msk.bf16.gmra.mxu0 %vm286_vm1, %v5113_v0  ;;  %3933 = vmatmul.msk.bf16.gmra.mxu1 %vm286_vm1, %v5113_v0  ;;  %v718_v5 = vmax.f32 %v705_v1, 0.0  ;;  %v4372_v1 = vld [vmem:[#allocation8 + $0x54] sm:$0xf0] }
 0x281   :  { %v750_v48 = vrot.slane %v749_v29, 4  ;;  %938 = vmatpush.bf16.msra.mxu2 %v3847_v58  ;;  %951 = vmatpush.bf16.msra.mxu3 %v3851_v62  ;;  %v3908_v62 = vld [vmem:[%s6109_s10 + $0x70] sm:$0xf0] }
 0x282   :  { %v726_v13 = vpack.c.bf16 %v718_v5, %v718_v5  ;;  %v3831_v5 = vor.u32 %v4372_v1, %v3830_v63 }
 0x283   :  { %v677_v6 = vpop.f32.mrf.mxu0  ;;  %v706_v7 = vpop.f32.mrf.mxu1  ;;  %v751_v56 = vmax.f32 %v749_v29, %v750_v48 }
 0x284   :  { %v678_v10 = vadd.f32 %v5100_v22, %v677_v6  ;;  %v734_v23 = vunpack.c.l.bf16 %v726_v13  ;;  %v1033_v36 = vunpack.c.l.b16 %v726_v13  ;;  %v3832_v6 = vld [vmem:[#allocation8 + $0x58] sm:$0xf0]  ;;  %v4366_v13 = vld [vmem:[#allocation8 + $0x2c] sm:$0xf] }
 0x285   :  { %v3835_v9 = vor.u32 %v4370_v2, %v3832_v6  ;;  %v752_v12 = vrot.slane %v751_v56, 2  ;;  %939 = vmatpush.bf16.msra.mxu2 %v3831_v5  ;;  %v3890_v6 = vld [vmem:[%s6109_s10 + $0x40] sm:$0xf] }
 0x286   :  { %v707_v14 = vadd.f32 %v706_v7, %v678_v10  ;;  %v756_v44 = vsel %vm286_vm1, %v734_v23, -inf  ;;  %v3814_v10 = vld [vmem:[#allocation8 + $0x28] sm:$0xf]  ;;  %v4364_v23 = vld [vmem:[#allocation8 + $0x14] sm:$0xf0] }
 0x287   :  { %952 = vmatpush.bf16.msra.mxu3 %v3835_v9  ;;  %v3799_v32 = vor.u32 %v4364_v23, %v3798_v21  ;;  %v4353_v9 = vld [vmem:[%s6109_s10 + $0x44] sm:$0xf]  ;;  %v3860_v21 = vld [vmem:[%s6109_s10 + $0x10] sm:$0xf0] }
 0x288   :  { %v719_v17 = vmax.f32 %v707_v14, 0.0  ;;  %v3816_v14 = vld [vmem:[#allocation8 + $0x38] sm:$0xf0] }
 0x289   :  { %v3819_v20 = vor.u32 %v4366_v13, %v3816_v14  ;;  %v3874_v13 = vld [vmem:[%s6109_s10 + $0x20] sm:$0xf]  ;;  %v4351_v14 = vld [vmem:[%s6109_s10 + $0x2c] sm:$0xf0] }
 0x28a   :  { %v727_v24 = vpack.c.bf16 %v719_v17, %v719_v17  ;;  %v3815_v17 = vor.u32 %v4368_v11, %v3814_v10  ;;  %v3892_v10 = vld [vmem:[%s6109_s10 + $0x50] sm:$0xf0] }
 0x28b   :  { %v680_v30 = vpop.f32.mrf.mxu0  ;;  %v709_v31 = vpop.f32.mrf.mxu1  ;;  %953 = vmatpush.bf16.msra.mxu3 %v3819_v20  ;;  %v4345_v20 = vld [vmem:[%s6109_s10 + $0x4] sm:$0xf] }
 0x28c   :  { %v735_v37 = vunpack.c.l.bf16 %v727_v24  ;;  %v1034_v38 = vunpack.c.l.b16 %v727_v24  ;;  %v681_v39 = vadd.f32 %v5100_v22, %v680_v30  ;;  %v753_v24 = vmax.f32 %v751_v56, %v752_v12  ;;  %940 = vmatpush.bf16.msra.mxu2 %v3815_v17 }
 0x28d   :  { %v3895_v12 = vor.u32 %v4353_v9, %v3892_v10  ;;  %v4090_v9 = vld [vmem:[#allocation10 + $0x130] sm:$0xf]  ;;  %v4416_v10 = vld [vmem:[#allocation10 + $0x134] sm:$0xf0] }
 0x28e   :  { %v757_v45 = vsel %vm286_vm1, %v735_v37, -inf  ;;  %v5127_v46 = vpack.c.b16 %v1034_v38, %v1033_v36  ;;  %v710_v47 = vadd.f32 %v709_v31, %v681_v39  ;;  %v744_v31 = vmax.f32 %v742_v3, %v743_v16 }
 0x28f   :  { %v758_v49 = vmax.f32 %v756_v44, %v757_v45  ;;  %v3803_v36 = vor.u32 %v4362_v25, %v3800_v26  ;;  %v754_v37 = vrot.slane %v753_v24, 1  ;;  %v3875_v16 = vor.u32 %v4351_v14, %v3874_v13  ;;  %v3994_v25 = vld [vmem:[#allocation10 + $0x70] sm:$0xf]  ;;  %v4432_v13 = vld [vmem:[#allocation10 + $0x1b4] sm:$0xf0] }
 0x290   :  { %3930 = vmatmul.msk.bf16.gmra.mxu0 %vm286_vm1, %v5127_v46  ;;  %3934 = vmatmul.msk.bf16.gmra.mxu1 %vm286_vm1, %v5127_v46  ;;  %v720_v52 = vmax.f32 %v710_v47, 0.0  ;;  %v745_v41 = vrot.slane %v744_v31, 1  ;;  %v4058_v26 = vld [vmem:[#allocation10 + $0xf0] sm:$0xf] }
 0x291   :  { %v759_v51 = vrot.slane %v758_v49, 4  ;;  %941 = vmatpush.bf16.msra.mxu2 %v3799_v32  ;;  %954 = vmatpush.bf16.msra.mxu3 %v3803_v36  ;;  %v755_v43 = vmax.f32 %v753_v24, %v754_v37  ;;  %v3863_v24 = vor.u32 %v4345_v20, %v3860_v21  ;;  %v4406_v32 = vld [vmem:[#allocation10 + $0xe4] sm:$0xf0]  ;;  %v4186_v36 = vld [vmem:[#allocation10 + $0x1f0] sm:$0xf] }
 0x292   :  { %v728_v7 = vpack.c.bf16 %v720_v52, %v720_v52  ;;  %v746_v47 = vmax.f32 %v744_v31, %v745_v41  ;;  %v4050_v31 = vld [vmem:[#allocation10 + $0xe0] sm:$0xf]  ;;  %v4440_v37 = vld [vmem:[#allocation10 + $0x1f4] sm:$0xf0]  ;;  %v3962_v20 = vld [vmem:[#allocation10 + $0x30] sm:$0xf] }
 0x293   :  { %v682_v57 = vpop.f32.mrf.mxu0  ;;  %v760_v60 = vmax.f32 %v758_v49, %v759_v51  ;;  %v711_v4 = vpop.f32.mrf.mxu1  ;;  %v775_v49 = vpack.c.bf16 %v755_v43, %v755_v43  ;;  %v4114_v41 = vld [vmem:[#allocation10 + $0x160] sm:$0xf]  ;;  %v4384_v21 = vld [vmem:[#allocation10 + $0x34] sm:$0xf0] }
 0x294   :  { %v683_v61 = vadd.f32 %v5100_v22, %v682_v57  ;;  %v736_v18 = vunpack.c.l.bf16 %v728_v7  ;;  %v1035_v28 = vunpack.c.l.b16 %v728_v7  ;;  %v774_v52 = vpack.c.bf16 %v746_v47, %v746_v47  ;;  %v3978_v47 = vld [vmem:[#allocation10 + $0x50] sm:$0xf] }
 0x295   :  { %v761_v15 = vrot.slane %v760_v60, 2  ;;  %v815_v54 = vunpack.c.l.b16 %v775_v49  ;;  %v4042_v49 = vld [vmem:[#allocation10 + $0xd0] sm:$0xf] }
 0x296   :  { %v712_v8 = vadd.f32 %v711_v4, %v683_v61  ;;  %v765_v33 = vsel %vm286_vm1, %v736_v18, -inf  ;;  %v814_v57 = vunpack.c.l.b16 %v774_v52  ;;  %v4357_v61 = vld [vmem:[%s6109_s10 + $0x64] sm:$0xf]  ;;  %v3858_v18 = vld [vmem:[%s6109_s10] sm:$0xf] }
 0x297   :  { %v762_v27 = vmax.f32 %v760_v60, %v761_v15  ;;  %v4359_v60 = vld [vmem:[%s6109_s10 + $0x6c] sm:$0xf0]  ;;  %v3911_v5 = vor.u32 %v4357_v61, %v3908_v62  ;;  %v4349_v15 = vld [vmem:[%s6109_s10 + $0x24] sm:$0xf]  ;;  %v4404_v52 = vld [vmem:[#allocation10 + $0xd4] sm:$0xf0] }
 0x298   :  { %v721_v22 = vmax.f32 %v712_v8, 0.0  ;;  %v819_v1 = vsel %vm818_vm2, %v815_v54, %v814_v57  ;;  %v3907_v4 = vor.u32 %v4359_v60, %v3906_v59  ;;  %v4355_v8 = vld [vmem:[%s6109_s10 + $0x4c] sm:$0xf0]  ;;  %v3970_v60 = vld [vmem:[#allocation10 + $0x40] sm:$0xf] }
 0x299   :  { %v763_v39 = vrot.slane %v762_v27, 1  ;;  %v3891_v11 = vor.u32 %v4355_v8, %v3890_v6  ;;  %v4106_v54 = vld [vmem:[#allocation10 + $0x150] sm:$0xf]  ;;  %v4386_v61 = vld [vmem:[#allocation10 + $0x44] sm:$0xf0] }
 0x29a   :  { %v729_v19 = vpack.c.bf16 %v721_v22, %v721_v22  ;;  %v3876_v22 = vld [vmem:[%s6109_s10 + $0x30] sm:$0xf0]  ;;  %v4034_v62 = vld [vmem:[#allocation10 + $0xc0] sm:$0xf] }
 0x29b   :  { %v764_v45 = vmax.f32 %v762_v27, %v763_v39  ;;  %v3879_v17 = vor.u32 %v4349_v15, %v3876_v22  ;;  %v4162_v6 = vld [vmem:[#allocation10 + $0x1c0] sm:$0xf]  ;;  %v4414_v22 = vld [vmem:[#allocation10 + $0x124] sm:$0xf0] }
 0x29c   :  { %v737_v29 = vunpack.c.l.bf16 %v729_v19  ;;  %v1036_v30 = vunpack.c.l.b16 %v729_v19  ;;  %v4347_v19 = vld [vmem:[%s6109_s10 + $0xc] sm:$0xf0]  ;;  %v4082_v15 = vld [vmem:[#allocation10 + $0x120] sm:$0xf] }
 0x29d   :  { %v776_v51 = vpack.c.bf16 %v764_v45, %v764_v45  ;;  %v3859_v23 = vor.u32 %v4347_v19, %v3858_v18  ;;  %v4438_v45 = vld [vmem:[#allocation10 + $0x1e4] sm:$0xf0] }
 0x29e   :  { %v766_v34 = vsel %vm286_vm1, %v737_v29, -inf  ;;  %v5136_v35 = vpack.c.b16 %v1036_v30, %v1035_v28  ;;  %v4408_v28 = vld [vmem:[#allocation10 + $0xf4] sm:$0xf0]  ;;  %v3986_v29 = vld [vmem:[#allocation10 + $0x60] sm:$0xf] }
 0x29f   :  { %v767_v38 = vmax.f32 %v765_v33, %v766_v34  ;;  %v816_v56 = vunpack.c.l.b16 %v776_v51  ;;  %v4390_v30 = vld [vmem:[#allocation10 + $0x64] sm:$0xf0]  ;;  %v4122_v33 = vld [vmem:[#allocation10 + $0x170] sm:$0xf] }
 0x2a0   :  { %3931 = vmatmul.msk.bf16.gmra.mxu0 %vm286_vm1, %v5136_v35  ;;  %3935 = vmatmul.msk.bf16.gmra.mxu1 %vm286_vm1, %v5136_v35  ;;  %v3987_v34 = vor.u32 %v4390_v30, %v3986_v29  ;;  %v4430_v18 = vld [vmem:[#allocation10 + $0x1a4] sm:$0xf0]  ;;  %v4138_v29 = vld [vmem:[#allocation10 + $0x190] sm:$0xf]  ;;  %v4428_v30 = vld [vmem:[#allocation10 + $0x194] sm:$0xf0] }
 0x2a1   :  { %v768_v42 = vrot.slane %v767_v38, 4  ;;  %v821_v2 = vsel %vm820_vm3, %v816_v56, %v819_v1  ;;  %v4170_v56 = vld [vmem:[#allocation10 + $0x1d0] sm:$0xf]  ;;  %v4402_v1 = vld [vmem:[#allocation10 + $0xc4] sm:$0xf0] }
 0x2a3   :  { %v769_v44 = vmax.f32 %v767_v38, %v768_v42  ;;  %v4051_v38 = vor.u32 %v4406_v32, %v4050_v31  ;;  %v4422_v42 = vld [vmem:[#allocation10 + $0x164] sm:$0xf0]  ;;  %v4139_v32 = vor.u32 %v4428_v30, %v4138_v29  ;;  %v4391_v29 = vld [vmem:[#allocation10 + $0x74] sm:$0xf] }
 0x2a4   :  { %v4115_v43 = vor.u32 %v4422_v42, %v4114_v41 }
 0x2a5   :  { %v770_v48 = vrot.slane %v769_v44, 2 }
 0x2a7   :  { %v771_v50 = vmax.f32 %v769_v44, %v770_v48  ;;  %v4178_v44 = vld [vmem:[#allocation10 + $0x1e0] sm:$0xf]  ;;  %v4388_v48 = vld [vmem:[#allocation10 + $0x54] sm:$0xf0] }
 0x2a8   :  { %v3979_v51 = vor.u32 %v4388_v48, %v3978_v47 }
 0x2a9   :  { %v772_v53 = vrot.slane %v771_v50, 1 }
 0x2ab   :  { %v773_v55 = vmax.f32 %v771_v50, %v772_v53  ;;  %v4179_v50 = vor.u32 %v4438_v45, %v4178_v44  ;;  %v4043_v53 = vor.u32 %v4404_v52, %v4042_v49  ;;  %v4010_v52 = vld [vmem:[#allocation10 + $0x90] sm:$0xf] }
 0x2ad   :  { %v777_v58 = vpack.c.bf16 %v773_v55, %v773_v55  ;;  %v4420_v55 = vld [vmem:[#allocation10 + $0x154] sm:$0xf0] }
 0x2ae   :  { %v4107_v57 = vor.u32 %v4420_v55, %v4106_v54  ;;  %v4396_v54 = vld [vmem:[#allocation10 + $0x94] sm:$0xf0] }
 0x2af   :  { %v817_v63 = vunpack.c.l.b16 %v777_v58  ;;  %v4436_v58 = vld [vmem:[#allocation10 + $0x1d4] sm:$0xf0]  ;;  %v4011_v55 = vor.u32 %v4396_v54, %v4010_v52 }
 0x2b0   :  { %v4171_v59 = vor.u32 %v4436_v58, %v4170_v56  ;;  %v3938_v58 = vld [vmem:[#allocation10] sm:$0xf] }
 0x2b1   :  { %v823_v3 = vsel %vm822_vm4, %v817_v63, %v821_v2  ;;  %v3971_v63 = vor.u32 %v4386_v61, %v3970_v60  ;;  %v4098_v2 = vld [vmem:[#allocation10 + $0x140] sm:$0xf] }
 0x2b2   :  { %v824_v7 = vpack.c.b16 %v823_v3, %v823_v3  ;;  %v4418_v3 = vld [vmem:[#allocation10 + $0x144] sm:$0xf0]  ;;  %v4002_v60 = vld [vmem:[#allocation10 + $0x80] sm:$0xf] }
 0x2b4   :  { %3852 = vmatmul.msk.bf16.vlgmr.msrb.gmra.mxu2 %vm286_vm1, %v824_v7  ;;  %3853 = vmatmul.msk.bf16.vlgmr.msrb.gmra.mxu3 %vm286_vm1, %v824_v7 }
 0x2b5   :  { %1137 = vmatpush.bf16.msrb.mxu2 %v3907_v4  ;;  %1166 = vmatpush.bf16.msrb.mxu3 %v3911_v5  ;;  %v4035_v4 = vor.u32 %v4402_v1, %v4034_v62  ;;  %v4099_v5 = vor.u32 %v4418_v3, %v4098_v2 }
 0x2b9   :  { %1138 = vmatpush.bf16.msrb.mxu2 %v3891_v11  ;;  %1167 = vmatpush.bf16.msrb.mxu3 %v3895_v12  ;;  %v4154_v11 = vld [vmem:[#allocation10 + $0x1b0] sm:$0xf]  ;;  %v4091_v12 = vor.u32 %v4416_v10, %v4090_v9 }
 0x2ba   :  { %v4155_v14 = vor.u32 %v4432_v13, %v4154_v11 }
 0x2bd   :  { %1139 = vmatpush.bf16.msrb.mxu2 %v3875_v16  ;;  %1168 = vmatpush.bf16.msrb.mxu3 %v3879_v17  ;;  %v4146_v16 = vld [vmem:[#allocation10 + $0x1a0] sm:$0xf]  ;;  %v4083_v17 = vor.u32 %v4414_v22, %v4082_v15 }
 0x2be   :  { %v4147_v19 = vor.u32 %v4430_v18, %v4146_v16 }
 0x2c1   :  { %1140 = vmatpush.bf16.msrb.mxu2 %v3859_v23  ;;  %1169 = vmatpush.bf16.msrb.mxu3 %v3863_v24  ;;  %v4026_v23 = vld [vmem:[#allocation10 + $0xb0] sm:$0xf]  ;;  %v3963_v24 = vor.u32 %v4384_v21, %v3962_v20 }
 0x2c4   :  { %3854 = vmatmul.msk.bf16.vlgmr.msra.gmra.mxu2 %vm286_vm1, %v824_v7  ;;  %3855 = vmatmul.msk.bf16.vlgmr.msra.gmra.mxu3 %vm286_vm1, %v824_v7  ;;  %v4434_v7 = vld [vmem:[#allocation10 + $0x1c4] sm:$0xf0] }
 0x2c5   :  { %v4163_v8 = vor.u32 %v4434_v7, %v4162_v6 }
 0x2d4   :  { %3920 = vmatmul.msk.bf16.vlgmr.msrb.gmra.mxu2 %vm286_vm1, %v5105_v40  ;;  %3924 = vmatmul.msk.bf16.vlgmr.msrb.gmra.mxu3 %vm286_vm1, %v5105_v40  ;;  %v4392_v40 = vld [vmem:[#allocation10 + $0x74] sm:$0xf0] }
 0x2d5   :  { %v3995_v27 = vor.u32 %v4392_v40, %v3994_v25  ;;  %v4400_v25 = vld [vmem:[#allocation10 + $0xb4] sm:$0xf0]  ;;  %v4074_v40 = vld [vmem:[#allocation10 + $0x110] sm:$0xf] }
 0x2d7   :  { %1729 = vmatpush.bf16.msra.mxu2 %v3995_v27  ;;  %v4027_v27 = vor.u32 %v4400_v25, %v4026_v23 }
 0x2db   :  { %1730 = vmatpush.bf16.msra.mxu2 %v3987_v34  ;;  %v4018_v34 = vld [vmem:[#allocation10 + $0xa0] sm:$0xf] }
 0x2df   :  { %1731 = vmatpush.bf16.msra.mxu2 %v3979_v51  ;;  %v4380_v51 = vld [vmem:[#allocation10 + $0x14] sm:$0xf0] }
 0x2e3   :  { %1732 = vmatpush.bf16.msra.mxu2 %v3971_v63  ;;  %v4394_v63 = vld [vmem:[#allocation10 + $0x84] sm:$0xf0] }
 0x2e4   :  { %3921 = vmatmul.msk.bf16.gmra.mxu2 %vm286_vm1, %v5113_v0  ;;  %3925 = vmatmul.msk.bf16.gmra.mxu3 %vm286_vm1, %v5113_v0  ;;  %v4059_v0 = vor.u32 %v4408_v28, %v4058_v26  ;;  %v4412_v26 = vld [vmem:[#allocation10 + $0x114] sm:$0xf0]  ;;  %v4003_v1 = vor.u32 %v4394_v63, %v4002_v60 }
 0x2e5   :  { %v4075_v28 = vor.u32 %v4412_v26, %v4074_v40 }
 0x2e6   :  { %1758 = vmatpush.bf16.msra.mxu3 %v4059_v0  ;;  %v3954_v0 = vld [vmem:[#allocation10 + $0x20] sm:$0xf] }
 0x2e7   :  { %1733 = vmatpush.bf16.msra.mxu2 %v3963_v24 }
 0x2ea   :  { %1759 = vmatpush.bf16.msra.mxu3 %v4051_v38  ;;  %v4066_v38 = vld [vmem:[#allocation10 + $0x100] sm:$0xf] }
 0x2ed   :  { %v5213_v31 = vpop.f32.mrf.mxu0  ;;  %v1229_v41 = vpop.f32.mrf.mxu1 }
 0x2ee   :  { %1760 = vmatpush.bf16.msra.mxu3 %v4043_v53 }
 0x2f2   :  { %1761 = vmatpush.bf16.msra.mxu3 %v4035_v4 }
 0x2f4   :  { %3922 = vmatmul.msk.bf16.gmra.mxu2 %vm286_vm1, %v5127_v46  ;;  %3926 = vmatmul.msk.bf16.gmra.mxu3 %vm286_vm1, %v5127_v46  ;;  %v4424_v46 = vld [vmem:[#allocation10 + $0x174] sm:$0xf0] }
 0x2f5   :  { %v4123_v39 = vor.u32 %v4424_v46, %v4122_v33  ;;  %v4382_v33 = vld [vmem:[#allocation10 + $0x24] sm:$0xf0]  ;;  %v1202_v48 = vpop.f32.mrf.mxu0  ;;  %v1231_v49 = vpop.f32.mrf.mxu1 }
 0x2f6   :  { %v4398_v46 = vld [vmem:[#allocation10 + $0xa4] sm:$0xf0]  ;;  %1762 = vmatpush.bf16.msra.mxu3 %v4027_v27 }
 0x2f7   :  { %1787 = vmatpush.bf16.msrb.mxu0 %v4123_v39  ;;  %v4410_v39 = vld [vmem:[#allocation10 + $0x104] sm:$0xf0] }
 0x2f8   :  { %v4067_v42 = vor.u32 %v4410_v39, %v4066_v38  ;;  %v4389_v38 = vld [vmem:[#allocation10 + $0x64] sm:$0xf] }
 0x2fb   :  { %1788 = vmatpush.bf16.msrb.mxu0 %v4115_v43  ;;  %v4426_v43 = vld [vmem:[#allocation10 + $0x184] sm:$0xf0] }
 0x2fd   :  { %v1205_v61 = vpop.f32.mrf.mxu0  ;;  %v5217_v2 = vpop.f32.mrf.mxu1 }
 0x2ff   :  { %1789 = vmatpush.bf16.msrb.mxu0 %v4107_v57 }
 0x303   :  { %1790 = vmatpush.bf16.msrb.mxu0 %v4099_v5 }
 0x304   :  { %3923 = vmatmul.msk.bf16.gmra.mxu2 %vm286_vm1, %v5136_v35  ;;  %3927 = vmatmul.msk.bf16.gmra.mxu3 %vm286_vm1, %v5136_v35  ;;  %v4187_v35 = vor.u32 %v4440_v37, %v4186_v36  ;;  %v3955_v36 = vor.u32 %v4382_v33, %v3954_v0  ;;  %v4019_v37 = vor.u32 %v4398_v46, %v4018_v34  ;;  %v3996_v33 = vld [vmem:[#allocation10 + $0x78] sm:$0xf0]  ;;  %v4407_v34 = vld [vmem:[#allocation10 + $0xf4] sm:$0xf] }
 0x305   :  { %v1236_v26 = vpop.f32.mrf.mxu1 }
 0x306   :  { %1816 = vmatpush.bf16.msrb.mxu1 %v4187_v35  ;;  %v4130_v35 = vld [vmem:[#allocation10 + $0x180] sm:$0xf]  ;;  %1734 = vmatpush.bf16.msra.mxu2 %v3955_v36 }
 0x307   :  { %1791 = vmatpush.bf16.msrb.mxu0 %v4091_v12  ;;  %v4131_v44 = vor.u32 %v4426_v43, %v4130_v35  ;;  %1763 = vmatpush.bf16.msra.mxu3 %v4019_v37  ;;  %v4060_v37 = vld [vmem:[#allocation10 + $0xf8] sm:$0xf0] }
 0x308   :  { %v4063_v54 = vor.u32 %v4407_v34, %v4060_v37  ;;  %v4180_v37 = vld [vmem:[#allocation10 + $0x1e8] sm:$0xf0] }
 0x30a   :  { %1817 = vmatpush.bf16.msrb.mxu1 %v4179_v50  ;;  %v3946_v50 = vld [vmem:[#allocation10 + $0x10] sm:$0xf] }
 0x30b   :  { %1792 = vmatpush.bf16.msrb.mxu0 %v4083_v17  ;;  %v3947_v53 = vor.u32 %v4380_v51, %v3946_v50  ;;  %1764 = vmatpush.bf16.msra.mxu3 %v4011_v55  ;;  %v4124_v50 = vld [vmem:[#allocation10 + $0x178] sm:$0xf0]  ;;  %v4439_v55 = vld [vmem:[#allocation10 + $0x1f4] sm:$0xf] }
 0x30d   :  { %1735 = vmatpush.bf16.msra.mxu2 %v3947_v53 }
 0x30e   :  { %1818 = vmatpush.bf16.msrb.mxu1 %v4171_v59  ;;  %v4378_v59 = vld [vmem:[#allocation10 + $0x4] sm:$0xf0] }
 0x30f   :  { %1793 = vmatpush.bf16.msrb.mxu0 %v4075_v28  ;;  %v3939_v62 = vor.u32 %v4378_v59, %v3938_v58  ;;  %1765 = vmatpush.bf16.msra.mxu3 %v4003_v1 }
 0x311   :  { %1736 = vmatpush.bf16.msra.mxu2 %v3939_v62 }
 0x312   :  { %1819 = vmatpush.bf16.msrb.mxu1 %v4163_v8  ;;  %v5228_v8 = vld [vmem:[%s6111_s12] sm:$0xf]  ;;  %s6129_s12 = sld [smem:[#allocation23_spill]] }
 0x313   :  { %1794 = vmatpush.bf16.msrb.mxu0 %v4067_v42  ;;  %v5245_v22 = vperm.slane %v5228_v8, 2  ;;  %v5251_v18 = vperm.slane %v5228_v8, 3  ;;  %v4405_v42 = vld [vmem:[#allocation10 + $0xe4] sm:$0xf]  ;;  %1874 = vmatpush.bf16.msrb.mxu3 %v4063_v54 }
 0x316   :  { %1820 = vmatpush.bf16.msrb.mxu1 %v4155_v14 }
 0x318   :  { %s3600_s30 = sshll.u32 %s6129_s12, 4  ;;  %s3601_s30 = int_to_ptr.hbm [resolvable:$true] %s3600_s30 }
 0x31a   :  { %1821 = vmatpush.bf16.msrb.mxu1 %v4147_v19  ;;  %v1207_v19 = vpop.f32.mrf.mxu0 }
 0x31e   :  { %1822 = vmatpush.bf16.msrb.mxu1 %v4139_v32 }
 0x322   :  { %1823 = vmatpush.bf16.msrb.mxu1 %v4131_v44  ;;  %v1210_v1 = vpop.f32.mrf.mxu0 }
 0x337   :  { %v5215_v45 = vpop.f32.mrf.mxu2  ;;  %v930_v47 = vpop.f32.mrf.mxu3 }
 0x338   :  { %v5219_v3 = vrot.slane %v930_v47, 7  ;;  %v3999_v47 = vor.u32 %v4391_v29, %v3996_v33  ;;  %v4044_v29 = vld [vmem:[#allocation10 + $0xd8] sm:$0xf0] }
 0x33a   :  { %v968_v9 = vsel %vm967_vm5, %v5215_v45, %v5219_v3  ;;  %v972_v10 = vsel %vm818_vm2, %v5215_v45, %v5219_v3  ;;  %1845 = vmatpush.bf16.msrb.mxu2 %v3999_v47  ;;  %v1212_v47 = vpop.f32.mrf.mxu0  ;;  %vm2973_vm2 = vcmask 1047556   ;;  %vm3531_vm5 = vcmask 261120  }
 0x33f   :  { %v919_v56 = vpop.f32.mrf.mxu2  ;;  %v932_v57 = vpop.f32.mrf.mxu3 }
 0x340   :  { %v4188_v56 = vld [vmem:[#allocation10 + $0x1f8] sm:$0xf0]  ;;  %v977_v57 = vsel %vm820_vm3, %v5215_v45, %v5219_v3 }
 0x347   :  { %v943_v4 = vpop.f32.mrf.mxu2  ;;  %v956_v5 = vpop.f32.mrf.mxu3 }
 0x348   :  { %v5221_v6 = vrot.slane %v943_v4, 6  ;;  %v5223_v7 = vrot.slane %v956_v5, 5 }
 0x34a   :  { %v969_v11 = vsel %vm820_vm3, %v5221_v6, %v5223_v7  ;;  %v973_v12 = vsel %vm822_vm4, %v5221_v6, %v5223_v7  ;;  %v979_v43 = vsel %vm978_vm8, %v5221_v6, %v5223_v7  ;;  %vm3517_vm3 = vcmask 64512  }
 0x34b   :  { %v5241_v13 = vsel %vm970_vm6, %v968_v9, %v969_v11  ;;  %v975_v14 = vsel %vm974_vm7, %v972_v10, %v973_v12  ;;  %v981_v4 = vsel %vm980_vm9, %v977_v57, %v979_v43  ;;  %vm3536_vm6 = vcmask 326656  }
 0x34c   :  { %v991_v15 = vperm.slane %v5241_v13, 2  ;;  %v5247_v16 = vrot.slane %v975_v14, 1  ;;  %v992_v17 = vperm.slane %v5241_v13, 3  ;;  %v989_v5 = vperm.slane %v5241_v13, 0 }
 0x34d   :  { %v990_v10 = vperm.slane %v5241_v13, 1  ;;  %v4387_v13 = vld [vmem:[#allocation10 + $0x54] sm:$0xf]  ;;  %vm3541_vm7 = vcmask 392192   ;;  %vm3546_vm8 = vcmask 457728   ;;  %vm3555_vm9 = vcmask 588800  }
 0x34e   :  { %v1201_v20 = vadd.f32 %v5213_v31, %v991_v15  ;;  %v1203_v21 = vadd.f32 %v1202_v48, %v991_v15  ;;  %v1230_v25 = vadd.f32 %v1229_v41, %v992_v17  ;;  %v1232_v40 = vadd.f32 %v1231_v49, %v992_v17  ;;  %v3988_v41 = vld [vmem:[#allocation10 + $0x68] sm:$0xf0]  ;;  %v4423_v49 = vld [vmem:[#allocation10 + $0x174] sm:$0xf]  ;;  %v5278_v15 = vpop.f32.mrf.mxu1 }
 0x34f   :  { %v945_v23 = vpop.f32.mrf.mxu2  ;;  %v958_v24 = vpop.f32.mrf.mxu3  ;;  %v995_v32 = vperm.slane %v5247_v16, 2  ;;  %v996_v31 = vperm.slane %v5247_v16, 3  ;;  %v4052_v48 = vld [vmem:[#allocation10 + $0xe8] sm:$0xf0]  ;;  %v3991_v58 = vor.u32 %v4389_v38, %v3988_v41  ;;  %v4127_v63 = vor.u32 %v4423_v49, %v4124_v50 }
 0x350   :  { %v1261_v27 = vadd.f32 %v5245_v22, %v1201_v20  ;;  %v1265_v28 = vadd.f32 %v5245_v22, %v1203_v21  ;;  %v1262_v30 = vadd.f32 %v5251_v18, %v1230_v25  ;;  %v1266_v0 = vadd.f32 %v5251_v18, %v1232_v40 }
 0x351   :  { %v1206_v52 = vadd.f32 %v1205_v61, %v995_v32  ;;  %v1208_v53 = vadd.f32 %v1207_v19, %v995_v32  ;;  %v4055_v62 = vor.u32 %v4405_v42, %v4052_v48  ;;  %v4191_v61 = vor.u32 %v4439_v55, %v4188_v56  ;;  %1903 = vmatpush.bf16.msra.mxu0 %v4127_v63 }
 0x352   :  { %v1293_v46 = vmax.f32 %v1261_v27, 0.0  ;;  %v1297_v36 = vmax.f32 %v1265_v28, 0.0  ;;  %v1294_v39 = vmax.f32 %v1262_v30, 0.0  ;;  %v1298_v35 = vmax.f32 %v1266_v0, 0.0  ;;  %1846 = vmatpush.bf16.msrb.mxu2 %v3991_v58  ;;  %v4403_v27 = vld [vmem:[#allocation10 + $0xd4] sm:$0xf] }
 0x353   :  { %v1235_v9 = vadd.f32 %v5217_v2, %v996_v31  ;;  %v1269_v11 = vadd.f32 %v5245_v22, %v1206_v52  ;;  %v1273_v12 = vadd.f32 %v5245_v22, %v1208_v53  ;;  %v1237_v14 = vadd.f32 %v1236_v26, %v996_v31  ;;  %1932 = vmatpush.bf16.msra.mxu1 %v4191_v61  ;;  %v3980_v26 = vld [vmem:[#allocation10 + $0x58] sm:$0xf0]  ;;  %v4421_v30 = vld [vmem:[#allocation10 + $0x164] sm:$0xf]  ;;  %v4116_v0 = vld [vmem:[#allocation10 + $0x168] sm:$0xf0] }
 0x354   :  { %v5263_v44 = vpack.c.bf16 %v1297_v36, %v1293_v46  ;;  %v5265_v51 = vpack.c.bf16 %v1298_v35, %v1294_v39  ;;  %v5281_v19 = vperm.slane %v5228_v8, 0  ;;  %v5284_v21 = vperm.slane %v5228_v8, 1  ;;  %1875 = vmatpush.bf16.msrb.mxu3 %v4055_v62  ;;  %v4437_v36 = vld [vmem:[#allocation10 + $0x1e4] sm:$0xf]  ;;  %v4108_v62 = vld [vmem:[#allocation10 + $0x158] sm:$0xf0] }
 0x355   :  { %v5286_v2 = vrot.slane %v981_v4, 2  ;;  %v1301_v23 = vmax.f32 %v1269_v11, 0.0  ;;  %v1305_v24 = vmax.f32 %v1273_v12, 0.0  ;;  %v1270_v25 = vadd.f32 %v5251_v18, %v1235_v9  ;;  %v4435_v4 = vld [vmem:[#allocation10 + $0x1d4] sm:$0xf] }
 0x356   :  { %1795 = vmatmul.bf16.vlgmr.msrb.gmra.mxu0 %v5263_v44  ;;  %1824 = vmatmul.bf16.vlgmr.msrb.gmra.mxu1 %v5265_v51  ;;  %v1274_v40 = vadd.f32 %v5251_v18, %v1237_v14  ;;  %v3983_v28 = vor.u32 %v4387_v13, %v3980_v26  ;;  %v4047_v34 = vor.u32 %v4403_v27, %v4044_v29  ;;  %v1241_v55 = vpop.f32.mrf.mxu1  ;;  %v4385_v9 = vld [vmem:[#allocation10 + $0x44] sm:$0xf]  ;;  %v4036_v14 = vld [vmem:[#allocation10 + $0xc8] sm:$0xf0] }
 0x357   :  { %v1142_v59 = vpop.f32.mrf.mxu2  ;;  %v1171_v60 = vpop.f32.mrf.mxu3  ;;  %v4119_v46 = vor.u32 %v4421_v30, %v4116_v0  ;;  %v999_v35 = vperm.slane %v5286_v2, 2  ;;  %v4183_v41 = vor.u32 %v4437_v36, %v4180_v37  ;;  %v1302_v42 = vmax.f32 %v1270_v25, 0.0  ;;  %v4401_v12 = vld [vmem:[#allocation10 + $0xc4] sm:$0xf]  ;;  %v4164_v29 = vld [vmem:[#allocation10 + $0x1c8] sm:$0xf0] }
 0x358   :  { %v1143_v17 = vadd.f32 %v1142_v59, %v989_v5  ;;  %v1172_v20 = vadd.f32 %v1171_v60, %v990_v10  ;;  %1847 = vmatpush.bf16.msrb.mxu2 %v3983_v28  ;;  %v1306_v43 = vmax.f32 %v1274_v40, 0.0  ;;  %1876 = vmatpush.bf16.msrb.mxu3 %v4047_v34  ;;  %v985_v50 = vsel %vm984_vm10, %v5221_v6, %v5223_v7  ;;  %v4419_v60 = vld [vmem:[#allocation10 + $0x154] sm:$0xf]  ;;  %v4433_v25 = vld [vmem:[#allocation10 + $0x1c4] sm:$0xf]  ;;  %v1215_v34 = vpop.f32.mrf.mxu0 }
 0x359   :  { %1904 = vmatpush.bf16.msra.mxu0 %v4119_v46  ;;  %1933 = vmatpush.bf16.msra.mxu1 %v4183_v41  ;;  %v1000_v54 = vperm.slane %v5286_v2, 3  ;;  %v5299_v58 = vpack.c.bf16 %v1305_v24, %v1301_v23  ;;  %v1211_v59 = vadd.f32 %v1210_v1, %v999_v35  ;;  %v4111_v61 = vor.u32 %v4419_v60, %v4108_v62  ;;  %v3972_v1 = vld [vmem:[#allocation10 + $0x48] sm:$0xf0]  ;;  %v4431_v41 = vld [vmem:[#allocation10 + $0x1b4] sm:$0xf] }
 0x35a   :  { %v1259_v8 = vadd.f32 %v5281_v19, %v1143_v17  ;;  %v1260_v32 = vadd.f32 %v5284_v21, %v1172_v20  ;;  %v5301_v63 = vpack.c.bf16 %v1306_v43, %v1302_v42  ;;  %v983_v6 = vsel %vm822_vm4, %v5215_v45, %v5219_v3  ;;  %v4417_v45 = vld [vmem:[#allocation10 + $0x144] sm:$0xf]  ;;  %v4100_v3 = vld [vmem:[#allocation10 + $0x148] sm:$0xf0]  ;;  %v4156_v42 = vld [vmem:[#allocation10 + $0x1b8] sm:$0xf0] }
 0x35b   :  { %v987_v17 = vsel %vm986_vm11, %v983_v6, %v985_v50  ;;  %v3975_v23 = vor.u32 %v4385_v9, %v3972_v1  ;;  %v4039_v24 = vor.u32 %v4401_v12, %v4036_v14  ;;  %v993_v40 = vperm.slane %v5247_v16, 0  ;;  %v4383_v43 = vld [vmem:[#allocation10 + $0x34] sm:$0xf]  ;;  %v4413_v60 = vld [vmem:[#allocation10 + $0x124] sm:$0xf] }
 0x35c   :  { %v1291_v52 = vmax.f32 %v1259_v8, 0.0  ;;  %v1292_v53 = vmax.f32 %v1260_v32, 0.0  ;;  %v1213_v26 = vadd.f32 %v1212_v47, %v999_v35  ;;  %v1277_v27 = vadd.f32 %v5245_v22, %v1211_v59  ;;  %v4399_v50 = vld [vmem:[#allocation10 + $0xb4] sm:$0xf]  ;;  %v4084_v62 = vld [vmem:[#allocation10 + $0x128] sm:$0xf0] }
 0x35d   :  { %1905 = vmatpush.bf16.msra.mxu0 %v4111_v61  ;;  %v4103_v28 = vor.u32 %v4417_v45, %v4100_v3  ;;  %v994_v30 = vperm.slane %v5247_v16, 1  ;;  %v1240_v0 = vadd.f32 %v5278_v15, %v1000_v54  ;;  %v1242_v8 = vadd.f32 %v1241_v55, %v1000_v54  ;;  %1848 = vmatpush.bf16.msrb.mxu2 %v3975_v23  ;;  %v4429_v61 = vld [vmem:[#allocation10 + $0x1a4] sm:$0xf] }
 0x35e   :  { %v4167_v32 = vor.u32 %v4433_v25, %v4164_v29  ;;  %1877 = vmatpush.bf16.msrb.mxu3 %v4039_v24  ;;  %v5319_v46 = vrot.slane %v987_v17, 3  ;;  %v1281_v36 = vadd.f32 %v5245_v22, %v1213_v26  ;;  %v1309_v37 = vmax.f32 %v1277_v27, 0.0  ;;  %v5324_v47 = vpop.f32.mrf.mxu1  ;;  %v4411_v26 = vld [vmem:[#allocation10 + $0x114] sm:$0xf]  ;;  %v4076_v27 = vld [vmem:[#allocation10 + $0x118] sm:$0xf0] }
 0x35f   :  { %v1144_v31 = vpop.f32.mrf.mxu2  ;;  %v1173_v33 = vpop.f32.mrf.mxu3  ;;  %v1278_v16 = vadd.f32 %v5251_v18, %v1240_v0  ;;  %v1282_v15 = vadd.f32 %v5251_v18, %v1242_v8  ;;  %v4087_v6 = vor.u32 %v4413_v60, %v4084_v62  ;;  %v4079_v29 = vor.u32 %v4411_v26, %v4076_v27  ;;  %v4140_v0 = vld [vmem:[#allocation10 + $0x198] sm:$0xf0]  ;;  %v4381_v8 = vld [vmem:[#allocation10 + $0x24] sm:$0xf]  ;;  %v4395_v62 = vld [vmem:[#allocation10 + $0x94] sm:$0xf] }
 0x360   :  { %v1145_v38 = vadd.f32 %v1144_v31, %v989_v5  ;;  %v1174_v39 = vadd.f32 %v1173_v33, %v990_v10  ;;  %v4172_v5 = vld [vmem:[#allocation10 + $0x1d8] sm:$0xf0]  ;;  %v1313_v9 = vmax.f32 %v1281_v36, 0.0  ;;  %v1004_v45 = vperm.slane %v5319_v46, 3 }
 0x361   :  { %v4175_v11 = vor.u32 %v4435_v4, %v4172_v5  ;;  %1906 = vmatpush.bf16.msra.mxu0 %v4103_v28  ;;  %v1310_v1 = vmax.f32 %v1278_v16, 0.0  ;;  %v1314_v12 = vmax.f32 %v1282_v15, 0.0  ;;  %v4020_v16 = vld [vmem:[#allocation10 + $0xa8] sm:$0xf0]  ;;  %vm3526_vm4 = vcmask 195584  }
 0x362   :  { %v1263_v48 = vadd.f32 %v5281_v19, %v1145_v38  ;;  %v1264_v49 = vadd.f32 %v5284_v21, %v1174_v39  ;;  %v4415_v38 = vld [vmem:[#allocation10 + $0x134] sm:$0xf]  ;;  %v4092_v39 = vld [vmem:[#allocation10 + $0x138] sm:$0xf0]  ;;  %v5332_v3 = vpack.c.bf16 %v1313_v9, %v1309_v37  ;;  %vm3560_vm10 = vcmask 654336  }
 0x363   :  { %1934 = vmatpush.bf16.msra.mxu1 %v4175_v11  ;;  %v4095_v35 = vor.u32 %v4415_v38, %v4092_v39  ;;  %v4148_v11 = vld [vmem:[#allocation10 + $0x1a8] sm:$0xf0]  ;;  %v5334_v28 = vpack.c.bf16 %v1314_v12, %v1310_v1  ;;  %v4397_v39 = vld [vmem:[#allocation10 + $0xa4] sm:$0xf]  ;;  %vm3565_vm11 = vcmask 719872  }
 0x364   :  { %v1295_v56 = vmax.f32 %v1263_v48, 0.0  ;;  %v1296_v57 = vmax.f32 %v1264_v49, 0.0  ;;  %v4159_v48 = vor.u32 %v4431_v41, %v4156_v42  ;;  %v3964_v49 = vld [vmem:[#allocation10 + $0x38] sm:$0xf0]  ;;  %v4151_v14 = vor.u32 %v4429_v61, %v4148_v11  ;;  %v3956_v38 = vld [vmem:[#allocation10 + $0x28] sm:$0xf0] }
 0x365   :  { %1907 = vmatpush.bf16.msra.mxu0 %v4095_v35  ;;  %v3959_v42 = vor.u32 %v4381_v8, %v3956_v38  ;;  %v4012_v61 = vld [vmem:[#allocation10 + $0x98] sm:$0xf0]  ;;  %v3940_v11 = vld [vmem:[#allocation10 + $0x8] sm:$0xf0]  ;;  %v4393_v12 = vld [vmem:[#allocation10 + $0x84] sm:$0xf] }
 0x366   :  { %v5306_v7 = vpack.c.bf16 %v1295_v56, %v1291_v52  ;;  %v5308_v10 = vpack.c.bf16 %v1296_v57, %v1292_v53  ;;  %1800 = vmatmul.bf16.gmra.mxu0 %v5299_v58  ;;  %1829 = vmatmul.bf16.gmra.mxu1 %v5301_v63  ;;  %v4028_v52 = vld [vmem:[#allocation10 + $0xb8] sm:$0xf0]  ;;  %v3967_v57 = vor.u32 %v4383_v43, %v3964_v49  ;;  %v4068_v49 = vld [vmem:[#allocation10 + $0x108] sm:$0xf0] }
 0x367   :  { %v1147_v20 = vpop.f32.mrf.mxu2  ;;  %v1176_v13 = vpop.f32.mrf.mxu3  ;;  %1935 = vmatpush.bf16.msra.mxu1 %v4167_v32  ;;  %v4031_v59 = vor.u32 %v4399_v50, %v4028_v52  ;;  %v4023_v43 = vor.u32 %v4397_v39, %v4020_v16  ;;  %v4425_v50 = vld [vmem:[#allocation10 + $0x184] sm:$0xf]  ;;  %v4015_v9 = vor.u32 %v4395_v62, %v4012_v61 }
 0x368   :  { %1737 = vmatmul.bf16.vlgmr.msra.gmra.mxu2 %v5306_v7  ;;  %1766 = vmatmul.bf16.vlgmr.msra.gmra.mxu3 %v5308_v10  ;;  %v1148_v31 = vadd.f32 %v1147_v20, %v993_v40  ;;  %v1177_v33 = vadd.f32 %v1176_v13, %v994_v30  ;;  %v1003_v13 = vperm.slane %v5319_v46, 2  ;;  %v1217_v32 = vpop.f32.mrf.mxu0  ;;  %v1246_v52 = vpop.f32.mrf.mxu1 }
 0x369   :  { %1849 = vmatpush.bf16.msrb.mxu2 %v3967_v57  ;;  %1878 = vmatpush.bf16.msrb.mxu3 %v4031_v59  ;;  %v1247_v57 = vadd.f32 %v1246_v52, %v1004_v45 }
 0x36a   :  { %v1267_v53 = vadd.f32 %v5281_v19, %v1148_v31  ;;  %v1268_v54 = vadd.f32 %v5284_v21, %v1177_v33  ;;  %1908 = vmatpush.bf16.msra.mxu0 %v4087_v6  ;;  %v1216_v36 = vadd.f32 %v1215_v34, %v1003_v13  ;;  %v1218_v41 = vadd.f32 %v1217_v32, %v1003_v13  ;;  %v4377_v6 = vld [vmem:[#allocation10 + $0x4] sm:$0xf] }
 0x36b   :  { %1936 = vmatpush.bf16.msra.mxu1 %v4159_v48  ;;  %v4409_v48 = vld [vmem:[#allocation10 + $0x104] sm:$0xf]  ;;  %v1245_v34 = vadd.f32 %v5324_v47, %v1004_v45 }
 0x36c   :  { %v1299_v23 = vmax.f32 %v1267_v53, 0.0  ;;  %v1300_v24 = vmax.f32 %v1268_v54, 0.0  ;;  %v4071_v53 = vor.u32 %v4409_v48, %v4068_v49  ;;  %v4132_v54 = vld [vmem:[#allocation10 + $0x188] sm:$0xf0]  ;;  %v1285_v47 = vadd.f32 %v5245_v22, %v1216_v36 }
 0x36d   :  { %1850 = vmatpush.bf16.msrb.mxu2 %v3959_v42  ;;  %v4135_v59 = vor.u32 %v4425_v50, %v4132_v54  ;;  %1879 = vmatpush.bf16.msrb.mxu3 %v4023_v43  ;;  %v1289_v1 = vadd.f32 %v5245_v22, %v1218_v41  ;;  %v1286_v13 = vadd.f32 %v5251_v18, %v1245_v34  ;;  %v1001_v48 = vperm.slane %v5319_v46, 0 }
 0x36e   :  { %1909 = vmatpush.bf16.msra.mxu0 %v4079_v29  ;;  %v1002_v49 = vperm.slane %v5319_v46, 1 }
 0x36f   :  { %v1149_v55 = vpop.f32.mrf.mxu2  ;;  %v1178_v56 = vpop.f32.mrf.mxu3  ;;  %1937 = vmatpush.bf16.msra.mxu1 %v4151_v14  ;;  %v4004_v14 = vld [vmem:[#allocation10 + $0x88] sm:$0xf0]  ;;  %v1321_v26 = vmax.f32 %v1289_v1, 0.0 }
 0x370   :  { %v1150_v4 = vadd.f32 %v1149_v55, %v993_v40  ;;  %v1179_v5 = vadd.f32 %v1178_v56, %v994_v30  ;;  %v4427_v30 = vld [vmem:[#allocation10 + $0x194] sm:$0xf]  ;;  %v3948_v56 = vld [vmem:[#allocation10 + $0x18] sm:$0xf0] }
 0x371   :  { %v4143_v37 = vor.u32 %v4427_v30, %v4140_v0  ;;  %v4379_v55 = vld [vmem:[#allocation10 + $0x14] sm:$0xf]  ;;  %1880 = vmatpush.bf16.msrb.mxu3 %v4015_v9  ;;  %v1318_v0 = vmax.f32 %v1286_v13, 0.0 }
 0x372   :  { %v1271_v17 = vadd.f32 %v5281_v19, %v1150_v4  ;;  %v1272_v20 = vadd.f32 %v5284_v21, %v1179_v5  ;;  %v3951_v60 = vor.u32 %v4379_v55, %v3948_v56  ;;  %v997_v4 = vperm.slane %v5286_v2, 0  ;;  %1910 = vmatpush.bf16.msra.mxu0 %v4071_v53  ;;  %v4455_v13 = vld [vmem:[#allocation11 + $0x70] sm:$0xff] }
 0x373   :  { %1938 = vmatpush.bf16.msra.mxu1 %v4143_v37  ;;  %v998_v5 = vperm.slane %v5286_v2, 1  ;;  %v3943_v2 = vor.u32 %v4377_v6, %v3940_v11  ;;  %v4441_v6 = vld [vmem:[#allocation11] sm:$0xff]  ;;  %v4456_v11 = vld [vmem:[#allocation11 + $0x78] sm:$0xff] }
 0x374   :  { %v1303_v25 = vmax.f32 %v1271_v17, 0.0  ;;  %v1304_v40 = vmax.f32 %v1272_v20, 0.0  ;;  %1851 = vmatpush.bf16.msrb.mxu2 %v3951_v60 }
 0x376   :  { %1805 = vmatmul.bf16.gmra.mxu0 %v5332_v3  ;;  %v5337_v31 = vpack.c.bf16 %v1303_v25, %v1299_v23  ;;  %v5339_v33 = vpack.c.bf16 %v1304_v40, %v1300_v24  ;;  %1834 = vmatmul.bf16.gmra.mxu1 %v5334_v28  ;;  %v1290_v23 = vadd.f32 %v5251_v18, %v1247_v57  ;;  %v1317_v40 = vmax.f32 %v1285_v47, 0.0  ;;  %v5374_v47 = vld [vmem:[%s6113_s14] sm:$0x3] }
 0x377   :  { %v1152_v15 = vpop.f32.mrf.mxu2  ;;  %v1181_v35 = vpop.f32.mrf.mxu3  ;;  %1939 = vmatpush.bf16.msra.mxu1 %v4135_v59  ;;  %v4007_v24 = vor.u32 %v4393_v12, %v4004_v14  ;;  %v5377_v12 = vperm.slane %v5374_v47, 0 }
 0x378   :  { %1742 = vmatmul.bf16.gmra.mxu2 %v5337_v31  ;;  %1771 = vmatmul.bf16.gmra.mxu3 %v5339_v33  ;;  %v1153_v17 = vadd.f32 %v1152_v15, %v997_v4  ;;  %v1182_v20 = vadd.f32 %v1181_v35, %v998_v5  ;;  %v1322_v8 = vmax.f32 %v1290_v23, 0.0  ;;  %v1337_v36 = vpack.c.bf16 %v1321_v26, %v1317_v40 }
 0x379   :  { %1852 = vmatpush.bf16.msrb.mxu2 %v3943_v2  ;;  %1881 = vmatpush.bf16.msrb.mxu3 %v4007_v24 }
 0x37a   :  { %v1275_v22 = vadd.f32 %v5281_v19, %v1153_v17  ;;  %v1276_v27 = vadd.f32 %v5284_v21, %v1182_v20  ;;  %v1338_v15 = vpack.c.bf16 %v1322_v8, %v1318_v0 }
 0x37c   :  { %v1307_v37 = vmax.f32 %v1275_v22, 0.0  ;;  %v1308_v38 = vmax.f32 %v1276_v27, 0.0  ;;  %v4454_v22 = vld [vmem:[#allocation11 + $0x68] sm:$0xff] }
 0x37d   :  { %2146 = vmatpush.bf16.msra.mxu3 %v4456_v11 }
 0x37f   :  { %v1154_v45 = vpop.f32.mrf.mxu2  ;;  %v1183_v25 = vpop.f32.mrf.mxu3 }
 0x380   :  { %v1155_v29 = vadd.f32 %v1154_v45, %v997_v4  ;;  %v1184_v30 = vadd.f32 %v1183_v25, %v998_v5 }
 0x381   :  { %2147 = vmatpush.bf16.msra.mxu3 %v4455_v13 }
 0x382   :  { %v1279_v18 = vadd.f32 %v5281_v19, %v1155_v29  ;;  %v1280_v32 = vadd.f32 %v5284_v21, %v1184_v30 }
 0x384   :  { %v1311_v39 = vmax.f32 %v1279_v18, 0.0  ;;  %v1312_v16 = vmax.f32 %v1280_v32, 0.0 }
 0x385   :  { %2148 = vmatpush.bf16.msra.mxu3 %v4454_v22 }
 0x386   :  { %1810 = vmatmul.bf16.gmra.mxu0 %v1337_v36  ;;  %v1331_v35 = vpack.c.bf16 %v1311_v39, %v1307_v37  ;;  %v1332_v41 = vpack.c.bf16 %v1312_v16, %v1308_v38  ;;  %1839 = vmatmul.bf16.gmra.mxu1 %v1338_v15  ;;  %v4453_v16 = vld [vmem:[#allocation11 + $0x60] sm:$0xff] }
 0x387   :  { %v1157_v42 = vpop.f32.mrf.mxu2  ;;  %v1186_v43 = vpop.f32.mrf.mxu3 }
 0x388   :  { %1747 = vmatmul.bf16.gmra.mxu2 %v1331_v35  ;;  %1776 = vmatmul.bf16.gmra.mxu3 %v1332_v41  ;;  %v1158_v50 = vadd.f32 %v1157_v42, %v1001_v48  ;;  %v1187_v52 = vadd.f32 %v1186_v43, %v1002_v49 }
 0x389   :  { %2149 = vmatpush.bf16.msra.mxu3 %v4453_v16 }
 0x38a   :  { %v1283_v54 = vadd.f32 %v5281_v19, %v1158_v50  ;;  %v1284_v55 = vadd.f32 %v5284_v21, %v1187_v52  ;;  %v4452_v52 = vld [vmem:[#allocation11 + $0x58] sm:$0xff] }
 0x38c   :  { %v1315_v62 = vmax.f32 %v1283_v54, 0.0  ;;  %v1316_v61 = vmax.f32 %v1284_v55, 0.0 }
 0x38d   :  { %2150 = vmatpush.bf16.msra.mxu3 %v4452_v52 }
 0x38f   :  { %v1159_v34 = vpop.f32.mrf.mxu2  ;;  %v1188_v53 = vpop.f32.mrf.mxu3 }
 0x390   :  { %v1160_v56 = vadd.f32 %v1159_v34, %v1001_v48  ;;  %v1189_v57 = vadd.f32 %v1188_v53, %v1002_v49 }
 0x392   :  { %v1287_v59 = vadd.f32 %v5281_v19, %v1160_v56  ;;  %v1288_v60 = vadd.f32 %v5284_v21, %v1189_v57  ;;  %v4446_v19 = vld [vmem:[#allocation11 + $0x28] sm:$0xff] }
 0x394   :  { %v1319_v4 = vmax.f32 %v1287_v59, 0.0  ;;  %v1320_v5 = vmax.f32 %v1288_v60, 0.0 }
 0x396   :  { %1911 = vmatmul.bf16.vlgmr.msra.gmra.mxu0 %v5263_v44  ;;  %v1335_v46 = vpack.c.bf16 %v1319_v4, %v1315_v62  ;;  %v1336_v9 = vpack.c.bf16 %v1320_v5, %v1316_v61  ;;  %1940 = vmatmul.bf16.vlgmr.msra.gmra.mxu1 %v5265_v51  ;;  %v4448_v44 = vld [vmem:[#allocation11 + $0x38] sm:$0xff]  ;;  %v4447_v51 = vld [vmem:[#allocation11 + $0x30] sm:$0xff] }
 0x397   :  { %2117 = vmatpush.bf16.msra.mxu2 %v4448_v44  ;;  %v4451_v4 = vld [vmem:[#allocation11 + $0x50] sm:$0xff] }
 0x398   :  { %1752 = vmatmul.bf16.gmra.mxu2 %v1335_v46  ;;  %1781 = vmatmul.bf16.gmra.mxu3 %v1336_v9 }
 0x399   :  { %2151 = vmatpush.bf16.msra.mxu3 %v4451_v4 }
 0x39b   :  { %2118 = vmatpush.bf16.msra.mxu2 %v4447_v51 }
 0x39f   :  { %2119 = vmatpush.bf16.msra.mxu2 %v4446_v19 }
 0x3a6   :  { %1916 = vmatmul.bf16.gmra.mxu0 %v5299_v58  ;;  %1945 = vmatmul.bf16.gmra.mxu1 %v5301_v63  ;;  %v4445_v63 = vld [vmem:[#allocation11 + $0x20] sm:$0xff] }
 0x3a7   :  { %2120 = vmatpush.bf16.msra.mxu2 %v4445_v63 }
 0x3a8   :  { %1853 = vmatmul.bf16.vlgmr.msrb.gmra.mxu2 %v5306_v7  ;;  %1882 = vmatmul.bf16.vlgmr.msrb.gmra.mxu3 %v5308_v10  ;;  %v4444_v7 = vld [vmem:[#allocation11 + $0x18] sm:$0xff] }
 0x3ab   :  { %2121 = vmatpush.bf16.msra.mxu2 %v4444_v7 }
 0x3b6   :  { %1921 = vmatmul.bf16.gmra.mxu0 %v5332_v3  ;;  %1950 = vmatmul.bf16.gmra.mxu1 %v5334_v28  ;;  %v4443_v28 = vld [vmem:[#allocation11 + $0x10] sm:$0xff] }
 0x3b7   :  { %2122 = vmatpush.bf16.msra.mxu2 %v4443_v28 }
 0x3b8   :  { %1858 = vmatmul.bf16.gmra.mxu2 %v5337_v31  ;;  %1887 = vmatmul.bf16.gmra.mxu3 %v5339_v33  ;;  %v4442_v31 = vld [vmem:[#allocation11 + $0x8] sm:$0xff] }
 0x3bb   :  { %2123 = vmatpush.bf16.msra.mxu2 %v4442_v31 }
 0x3bf   :  { %2124 = vmatpush.bf16.msra.mxu2 %v4441_v6 }
 0x3c6   :  { %1926 = vmatmul.bf16.gmra.mxu0 %v1337_v36  ;;  %1955 = vmatmul.bf16.gmra.mxu1 %v1338_v15 }
 0x3c8   :  { %1863 = vmatmul.bf16.gmra.mxu2 %v1331_v35  ;;  %1892 = vmatmul.bf16.gmra.mxu3 %v1332_v41 }
 0x3d3   :  { %v1796_v21 = vpop.f32.mrf.mxu0  ;;  %v1825_v58 = vpop.f32.mrf.mxu1 }
 0x3d8   :  { %1868 = vmatmul.bf16.gmra.mxu2 %v1335_v46  ;;  %1897 = vmatmul.bf16.gmra.mxu3 %v1336_v9 }
 0x3db   :  { %v1798_v10 = vpop.f32.mrf.mxu0  ;;  %v1827_v3 = vpop.f32.mrf.mxu1 }
 0x3e3   :  { %v1801_v33 = vpop.f32.mrf.mxu0  ;;  %v1830_v1 = vpop.f32.mrf.mxu1 }
 0x3eb   :  { %v1738_v14 = vpop.f32.mrf.mxu2  ;;  %v1767_v17 = vpop.f32.mrf.mxu3 }
 0x3ec   :  { %v1739_v20 = vadd.f32 %v1738_v14, %v5377_v12  ;;  %v1803_v23 = vpop.f32.mrf.mxu0  ;;  %v1832_v24 = vpop.f32.mrf.mxu1 }
 0x3ee   :  { %v1768_v2 = vadd.f32 %v1767_v17, %v1739_v20  ;;  %v4449_v20 = vld [vmem:[#allocation11 + $0x40] sm:$0xff] }
 0x3f0   :  { %v1797_v40 = vadd.f32 %v1796_v21, %v1768_v2 }
 0x3f2   :  { %v1826_v29 = vadd.f32 %v1825_v58, %v1797_v40  ;;  %v4450_v58 = vld [vmem:[#allocation11 + $0x48] sm:$0xff] }
 0x3f3   :  { %v1740_v45 = vpop.f32.mrf.mxu2  ;;  %v1769_v25 = vpop.f32.mrf.mxu3  ;;  %2152 = vmatpush.bf16.msra.mxu3 %v4450_v58 }
 0x3f4   :  { %v1741_v26 = vadd.f32 %v1740_v45, %v5377_v12  ;;  %v1806_v0 = vpop.f32.mrf.mxu0  ;;  %v1835_v18 = vpop.f32.mrf.mxu1  ;;  %v1961_v37 = vmax.f32 %v1826_v29, 0.0  ;;  %v5388_v29 = vperm.slane %v5374_v47, 1 }
 0x3f6   :  { %v1770_v27 = vadd.f32 %v1769_v25, %v1741_v26 }
 0x3f7   :  { %2153 = vmatpush.bf16.msra.mxu3 %v4449_v20 }
 0x3f8   :  { %v1799_v30 = vadd.f32 %v1798_v10, %v1770_v27 }
 0x3fa   :  { %v1828_v8 = vadd.f32 %v1827_v3, %v1799_v30 }
 0x3fb   :  { %v1743_v32 = vpop.f32.mrf.mxu2  ;;  %v1772_v36 = vpop.f32.mrf.mxu3 }
 0x3fc   :  { %v1963_v38 = vmax.f32 %v1828_v8, 0.0  ;;  %v1744_v39 = vadd.f32 %v1743_v32, %v5377_v12  ;;  %v1808_v41 = vpop.f32.mrf.mxu0  ;;  %v1837_v49 = vpop.f32.mrf.mxu1 }
 0x3fe   :  { %v1977_v15 = vpack.c.bf16 %v1963_v38, %v1961_v37  ;;  %v1773_v35 = vadd.f32 %v1772_v36, %v1744_v39 }
 0x400   :  { %2125 = vmatmul.bf16.vlgmr.msra.gmra.mxu2 %v1977_v15  ;;  %v1802_v48 = vadd.f32 %v1801_v33, %v1773_v35 }
 0x402   :  { %v1831_v53 = vadd.f32 %v1830_v1, %v1802_v48 }
 0x403   :  { %v1745_v42 = vpop.f32.mrf.mxu2  ;;  %v1774_v43 = vpop.f32.mrf.mxu3 }
 0x404   :  { %v1746_v50 = vadd.f32 %v1745_v42, %v5377_v12  ;;  %v1965_v59 = vmax.f32 %v1831_v53, 0.0  ;;  %v1811_v62 = vpop.f32.mrf.mxu0  ;;  %v1840_v5 = vpop.f32.mrf.mxu1 }
 0x406   :  { %v1775_v34 = vadd.f32 %v1774_v43, %v1746_v50 }
 0x408   :  { %v1804_v54 = vadd.f32 %v1803_v23, %v1775_v34 }
 0x40a   :  { %v1833_v55 = vadd.f32 %v1832_v24, %v1804_v54 }
 0x40b   :  { %v1748_v56 = vpop.f32.mrf.mxu2  ;;  %v1777_v57 = vpop.f32.mrf.mxu3 }
 0x40c   :  { %v1967_v60 = vmax.f32 %v1833_v55, 0.0  ;;  %v1749_v61 = vadd.f32 %v1748_v56, %v5377_v12  ;;  %v1813_v63 = vpop.f32.mrf.mxu0  ;;  %v1842_v3 = vpop.f32.mrf.mxu1 }
 0x40e   :  { %v1979_v46 = vpack.c.bf16 %v1967_v60, %v1965_v59  ;;  %v1778_v9 = vadd.f32 %v1777_v57, %v1749_v61 }
 0x410   :  { %2130 = vmatmul.bf16.gmra.mxu2 %v1979_v46  ;;  %v1807_v19 = vadd.f32 %v1806_v0, %v1778_v9 }
 0x412   :  { %v1836_v10 = vadd.f32 %v1835_v18, %v1807_v19 }
 0x413   :  { %v1750_v44 = vpop.f32.mrf.mxu2  ;;  %v1779_v51 = vpop.f32.mrf.mxu3 }
 0x414   :  { %v1751_v21 = vadd.f32 %v1750_v44, %v5377_v12  ;;  %v1969_v11 = vmax.f32 %v1836_v10, 0.0  ;;  %v1912_v13 = vpop.f32.mrf.mxu0  ;;  %v1941_v2 = vpop.f32.mrf.mxu1 }
 0x416   :  { %v1780_v7 = vadd.f32 %v1779_v51, %v1751_v21 }
 0x418   :  { %v1809_v28 = vadd.f32 %v1808_v41, %v1780_v7 }
 0x41a   :  { %v1838_v31 = vadd.f32 %v1837_v49, %v1809_v28 }
 0x41b   :  { %v1753_v33 = vpop.f32.mrf.mxu2  ;;  %v1782_v6 = vpop.f32.mrf.mxu3 }
 0x41c   :  { %v1971_v1 = vmax.f32 %v1838_v31, 0.0  ;;  %v1754_v14 = vadd.f32 %v1753_v33, %v5377_v12  ;;  %v1914_v30 = vpop.f32.mrf.mxu0  ;;  %v1943_v36 = vpop.f32.mrf.mxu1 }
 0x41e   :  { %v1981_v17 = vpack.c.bf16 %v1971_v1, %v1969_v11  ;;  %v1783_v23 = vadd.f32 %v1782_v6, %v1754_v14 }
 0x420   :  { %2135 = vmatmul.bf16.gmra.mxu2 %v1981_v17  ;;  %v1812_v25 = vadd.f32 %v1811_v62, %v1783_v23 }
 0x422   :  { %v1841_v22 = vadd.f32 %v1840_v5, %v1812_v25 }
 0x423   :  { %v1755_v24 = vpop.f32.mrf.mxu2  ;;  %v1784_v45 = vpop.f32.mrf.mxu3 }
 0x424   :  { %v1756_v40 = vadd.f32 %v1755_v24, %v5377_v12  ;;  %v1973_v32 = vmax.f32 %v1841_v22, 0.0  ;;  %v1917_v35 = vpop.f32.mrf.mxu0  ;;  %v1946_v47 = vpop.f32.mrf.mxu1 }
 0x426   :  { %v1785_v26 = vadd.f32 %v1784_v45, %v1756_v40 }
 0x428   :  { %v1814_v27 = vadd.f32 %v1813_v63, %v1785_v26 }
 0x42a   :  { %v1843_v0 = vadd.f32 %v1842_v3, %v1814_v27 }
 0x42b   :  { %v1854_v8 = vpop.f32.mrf.mxu2  ;;  %v1883_v18 = vpop.f32.mrf.mxu3 }
 0x42c   :  { %v1975_v37 = vmax.f32 %v1843_v0, 0.0  ;;  %v1855_v38 = vadd.f32 %v1854_v8, %v5388_v29  ;;  %v1919_v56 = vpop.f32.mrf.mxu0  ;;  %v1948_v59 = vpop.f32.mrf.mxu1 }
 0x42e   :  { %v1983_v39 = vpack.c.bf16 %v1975_v37, %v1973_v32  ;;  %v1884_v16 = vadd.f32 %v1883_v18, %v1855_v38 }
 0x430   :  { %2140 = vmatmul.bf16.gmra.mxu2 %v1983_v39  ;;  %v1913_v41 = vadd.f32 %v1912_v13, %v1884_v16 }
 0x432   :  { %v1942_v48 = vadd.f32 %v1941_v2, %v1913_v41 }
 0x433   :  { %v1856_v15 = vpop.f32.mrf.mxu2  ;;  %v1885_v12 = vpop.f32.mrf.mxu3 }
 0x434   :  { %v1857_v42 = vadd.f32 %v1856_v15, %v5388_v29  ;;  %v1962_v53 = vmax.f32 %v1942_v48, 0.0  ;;  %v1922_v9 = vpop.f32.mrf.mxu0  ;;  %v1951_v19 = vpop.f32.mrf.mxu1  ;;  %v4461_v48 = vld [vmem:[%s6116_s17 + $0x20] sm:$0xff] }
 0x436   :  { %v1886_v43 = vadd.f32 %v1885_v12, %v1857_v42  ;;  %v4464_v42 = vld [vmem:[%s6116_s17 + $0x38] sm:$0xff] }
 0x437   :  { %2255 = vmatpush.bf16.msrb.mxu0 %v4464_v42 }
 0x438   :  { %v1915_v49 = vadd.f32 %v1914_v30, %v1886_v43  ;;  %v4462_v43 = vld [vmem:[%s6116_s17 + $0x28] sm:$0xff] }
 0x43a   :  { %v1944_v50 = vadd.f32 %v1943_v36, %v1915_v49  ;;  %v4460_v49 = vld [vmem:[%s6116_s17 + $0x18] sm:$0xff] }
 0x43b   :  { %v1859_v52 = vpop.f32.mrf.mxu2  ;;  %v1888_v34 = vpop.f32.mrf.mxu3 }
 0x43c   :  { %v1964_v54 = vmax.f32 %v1944_v50, 0.0  ;;  %v1860_v55 = vadd.f32 %v1859_v52, %v5388_v29  ;;  %v1924_v33 = vpop.f32.mrf.mxu0  ;;  %v1953_v17 = vpop.f32.mrf.mxu1  ;;  %v4459_v50 = vld [vmem:[%s6116_s17 + $0x10] sm:$0xff]  ;;  %v4458_v52 = vld [vmem:[%s6116_s17 + $0x8] sm:$0xff] }
 0x43e   :  { %v1978_v57 = vpack.c.bf16 %v1964_v54, %v1962_v53  ;;  %v1889_v60 = vadd.f32 %v1888_v34, %v1860_v55  ;;  %v4457_v34 = vld [vmem:[%s6116_s17] sm:$0xff] }
 0x440   :  { %2154 = vmatmul.bf16.vlgmr.msra.gmra.mxu3 %v1978_v57  ;;  %v1918_v4 = vadd.f32 %v1917_v35, %v1889_v60 }
 0x442   :  { %v1947_v44 = vadd.f32 %v1946_v47, %v1918_v4 }
 0x443   :  { %v1861_v62 = vpop.f32.mrf.mxu2  ;;  %v1890_v61 = vpop.f32.mrf.mxu3 }
 0x444   :  { %v1862_v5 = vadd.f32 %v1861_v62, %v5388_v29  ;;  %v1966_v7 = vmax.f32 %v1947_v44, 0.0  ;;  %v1927_v22 = vpop.f32.mrf.mxu0  ;;  %v1956_v30 = vpop.f32.mrf.mxu1 }
 0x446   :  { %v1891_v46 = vadd.f32 %v1890_v61, %v1862_v5 }
 0x448   :  { %v1920_v51 = vadd.f32 %v1919_v56, %v1891_v46  ;;  %v4504_v56 = vld [vmem:[%s6115_s16] ss:$0 sm:$0xff]  ;;  %s4756_s16 = smov 48  }
 0x44a   :  { %v1949_v21 = vadd.f32 %v1948_v59, %v1920_v51 }
 0x44b   :  { %v1864_v58 = vpop.f32.mrf.mxu2  ;;  %v1893_v63 = vpop.f32.mrf.mxu3 }
 0x44c   :  { %v1968_v10 = vmax.f32 %v1949_v21, 0.0  ;;  %v1865_v3 = vadd.f32 %v1864_v58, %v5388_v29  ;;  %v1929_v38 = vpop.f32.mrf.mxu0  ;;  %v1958_v15 = vpop.f32.mrf.mxu1 }
 0x44e   :  { %v1980_v28 = vpack.c.bf16 %v1968_v10, %v1966_v7  ;;  %v1894_v31 = vadd.f32 %v1893_v63, %v1865_v3 }
 0x450   :  { %2159 = vmatmul.bf16.gmra.mxu3 %v1980_v28  ;;  %v1923_v1 = vadd.f32 %v1922_v9, %v1894_v31 }
 0x452   :  { %v1952_v13 = vadd.f32 %v1951_v19, %v1923_v1 }
 0x453   :  { %v1866_v6 = vpop.f32.mrf.mxu2  ;;  %v1895_v11 = vpop.f32.mrf.mxu3 }
 0x454   :  { %v1867_v14 = vadd.f32 %v1866_v6, %v5388_v29  ;;  %v1970_v25 = vmax.f32 %v1952_v13, 0.0  ;;  %v5433_v6 = vld [vmem:[%s6128_s29 + $0x10] sm:$0xff] }
 0x456   :  { %v1896_v20 = vadd.f32 %v1895_v11, %v1867_v14  ;;  %v5438_v11 = vld [vmem:[%s6128_s29 + $0x8] sm:$0xff] }
 0x457   :  { %v2405_v13 = vmul.f32 %v5438_v11, %v5438_v11 }
 0x458   :  { %v1925_v23 = vadd.f32 %v1924_v33, %v1896_v20  ;;  %v5428_v33 = vld [vmem:[%s6128_s29] sm:$0xff]  ;;  %v2406_v20 = vmul.f32 %v5433_v6, %v5433_v6 }
 0x45a   :  { %v1954_v2 = vadd.f32 %v1953_v17, %v1925_v23  ;;  %v2404_v17 = vmul.f32 %v5428_v33, %v5428_v33  ;;  %v5449_v23 = vld [vmem:[%s6128_s29 + $0x18] sm:$0xff] }
 0x45b   :  { %v1869_v24 = vpop.f32.mrf.mxu2  ;;  %v1898_v45 = vpop.f32.mrf.mxu3 }
 0x45c   :  { %v1972_v40 = vmax.f32 %v1954_v2, 0.0  ;;  %v1870_v26 = vadd.f32 %v1869_v24, %v5388_v29  ;;  %v5454_v2 = vld [vmem:[%s6128_s29 + $0x28] sm:$0xff]  ;;  %v2413_v24 = vsel %vm2412_vm12, %v2404_v17, 0.0 }
 0x45d   :  { %2414 = vadd.xlane.f32.xlu1 %v2413_v24 }
 0x45e   :  { %v1982_v27 = vpack.c.bf16 %v1972_v40, %v1970_v25  ;;  %v1899_v0 = vadd.f32 %v1898_v45, %v1870_v26  ;;  %v2419_v45 = vsel %vm2412_vm12, %v2406_v20, 0.0  ;;  %v2416_v25 = vsel %vm2412_vm12, %v2405_v13, 0.0 }
 0x45f   :  { %2420 = vadd.xlane.f32.xlu0 %v2419_v45  ;;  %2417 = vadd.xlane.f32.xlu2 %v2416_v25  ;;  %v2407_v40 = vmul.f32 %v5449_v23, %v5449_v23  ;;  %v2409_v26 = vmul.f32 %v5454_v2, %v5454_v2 }
 0x460   :  { %2164 = vmatmul.bf16.gmra.mxu3 %v1982_v27  ;;  %v1928_v18 = vadd.f32 %v1927_v22, %v1899_v0 }
 0x462   :  { %v1957_v39 = vadd.f32 %v1956_v30, %v1928_v18  ;;  %v2428_v18 = vsel %vm2412_vm12, %v2409_v26, 0.0 }
 0x463   :  { %v1871_v8 = vpop.f32.mrf.mxu2  ;;  %v1900_v36 = vpop.f32.mrf.mxu3 }
 0x464   :  { %v1872_v32 = vadd.f32 %v1871_v8, %v5388_v29  ;;  %v1974_v35 = vmax.f32 %v1957_v39, 0.0  ;;  %v4463_v29 = vld [vmem:[%s6116_s17 + $0x30] sm:$0xff]  ;;  %v2422_v8 = vsel %vm2412_vm12, %v2407_v40, 0.0  ;;  %s4757_s17 = smov 112  }
 0x465   :  { %2256 = vmatpush.bf16.msrb.mxu0 %v4463_v29  ;;  %2423 = vadd.xlane.f32.xlu1 %v2422_v8 }
 0x466   :  { %v1901_v37 = vadd.f32 %v1900_v36, %v1872_v32 }
 0x467   :  { %2429 = vadd.xlane.f32.xlu0 %v2428_v18 }
 0x468   :  { %v1930_v16 = vadd.f32 %v1929_v38, %v1901_v37 }
 0x469   :  { %2257 = vmatpush.bf16.msrb.mxu0 %v4462_v43 }
 0x46a   :  { %v1959_v12 = vadd.f32 %v1958_v15, %v1930_v16 }
 0x46c   :  { %v1976_v41 = vmax.f32 %v1959_v12, 0.0 }
 0x46d   :  { %2258 = vmatpush.bf16.msrb.mxu0 %v4461_v48 }
 0x46e   :  { %v1984_v47 = vpack.c.bf16 %v1976_v41, %v1974_v35 }
 0x470   :  { %2169 = vmatmul.bf16.gmra.mxu3 %v1984_v47 }
 0x471   :  { %2259 = vmatpush.bf16.msrb.mxu0 %v4460_v49  ;;  %v5468_v49 = vld [vmem:[%s6128_s29 + $0x30] sm:$0xff] }
 0x475   :  { %2260 = vmatpush.bf16.msrb.mxu0 %v4459_v50  ;;  %v2410_v50 = vmul.f32 %v5468_v49, %v5468_v49 }
 0x479   :  { %2261 = vmatpush.bf16.msrb.mxu0 %v4458_v52  ;;  %v2431_v52 = vsel %vm2412_vm12, %v2410_v50, 0.0 }
 0x47a   :  { %2432 = vadd.xlane.f32.xlu1 %v2431_v52 }
 0x47d   :  { %2262 = vmatpush.bf16.msrb.mxu0 %v4457_v34  ;;  %v5476_v34 = vld [vmem:[%s6128_s29 + $0x20] sm:$0xff] }
 0x483   :  { %v2126_v53 = vpop.f32.mrf.mxu2 }
 0x484   :  { %v2127_v59 = vadd.f32 %v4504_v56, %v2126_v53  ;;  %v2408_v53 = vmul.f32 %v5476_v34, %v5476_v34 }
 0x48b   :  { %v2128_v54 = vpop.f32.mrf.mxu2 }
 0x48c   :  { %v2129_v60 = vadd.f32 %v4504_v56, %v2128_v54  ;;  %v2425_v54 = vsel %vm2412_vm12, %v2408_v53, 0.0 }
 0x48d   :  { %2426 = vadd.xlane.f32.xlu2 %v2425_v54 }
 0x493   :  { %v2131_v57 = vpop.f32.mrf.mxu2 }
 0x494   :  { %v2132_v19 = vadd.f32 %v4504_v56, %v2131_v57 }
 0x49b   :  { %v2133_v9 = vpop.f32.mrf.mxu2 }
 0x49c   :  { %v2134_v58 = vadd.f32 %v4504_v56, %v2133_v9 }
 0x4a3   :  { %v2136_v21 = vpop.f32.mrf.mxu2 }
 0x4a4   :  { %v2137_v22 = vadd.f32 %v4504_v56, %v2136_v21 }
 0x4ab   :  { %v2138_v1 = vpop.f32.mrf.mxu2 }
 0x4ac   :  { %v2139_v27 = vadd.f32 %v4504_v56, %v2138_v1 }
 0x4b3   :  { %v2141_v36 = vpop.f32.mrf.mxu2 }
 0x4b4   :  { %v2142_v12 = vadd.f32 %v4504_v56, %v2141_v36 }
 0x4bb   :  { %v2143_v15 = vpop.f32.mrf.mxu2 }
 0x4bc   :  { %v2144_v35 = vadd.f32 %v4504_v56, %v2143_v15 }
 0x4c3   :  { %v2155_v55 = vpop.f32.mrf.mxu3 }
 0x4c4   :  { %v2156_v62 = vadd.f32 %v2155_v55, %v2127_v59  ;;  %v5484_v55 = vld [vmem:[%s6128_s29 + $0x38] sm:$0xff]  ;;  %v4505_v59 = vld [vmem:[%s6117_s18] ss:$0 sm:$0xff]  ;;  %s4745_s18 = smov 125   ;;  %s4758_s29 = smov 72  }
 0x4c5   :  { %v2411_v56 = vmul.f32 %v5484_v55, %v5484_v55 }
 0x4c6   :  { %v2175_v5 = vmax.f32 %v2156_v62, 0.0 }
 0x4c7   :  { %v2434_v57 = vsel %vm2412_vm12, %v2411_v56, 0.0 }
 0x4c8   :  { %2435 = vadd.xlane.f32.xlu2 %v2434_v57 }
 0x4cb   :  { %v2157_v61 = vpop.f32.mrf.mxu3 }
 0x4cc   :  { %v2158_v4 = vadd.f32 %v2157_v61, %v2129_v60 }
 0x4ce   :  { %v2176_v46 = vmax.f32 %v2158_v4, 0.0 }
 0x4d0   :  { %v2183_v44 = vpack.c.bf16 %v2176_v46, %v2175_v5 }
 0x4d2   :  { %2263 = vmatmul.bf16.vlgmr.msrb.gmra.mxu0 %v2183_v44  ;;  %v2421_v20 = vpop.xlane.xlu0 %2420 }
 0x4d3   :  { %v2160_v51 = vpop.f32.mrf.mxu3 }
 0x4d4   :  { %v2161_v63 = vadd.f32 %v2160_v51, %v2132_v19 }
 0x4d6   :  { %v2177_v3 = vmax.f32 %v2161_v63, 0.0  ;;  %v2438_v63 = vsel %vm2412_vm12, %v5438_v11, 1.0  ;;  %v2439_v11 = vsel %vm2412_vm12, %v5433_v6, 1.0 }
 0x4d7   :  { %v2448_v24 = vsel %vm2445_vm13, %v2439_v11, %v2421_v20 }
 0x4da   :  { %v5521_v8 = vpop.xlane.xlu0 %2429 }
 0x4db   :  { %v2162_v7 = vpop.f32.mrf.mxu3 }
 0x4dc   :  { %v2163_v10 = vadd.f32 %v2162_v7, %v2134_v58  ;;  %v2437_v58 = vsel %vm2412_vm12, %v5428_v33, 1.0 }
 0x4de   :  { %v2178_v28 = vmax.f32 %v2163_v10, 0.0  ;;  %v2415_v10 = vpop.xlane.xlu1 %2414 }
 0x4e0   :  { %v2184_v31 = vpack.c.bf16 %v2178_v28, %v2177_v3  ;;  %v2418_v3 = vpop.xlane.xlu2 %2417  ;;  %v2446_v28 = vsel %vm2445_vm13, %v2437_v58, %v2415_v10 }
 0x4e2   :  { %2268 = vmatmul.bf16.gmra.mxu0 %v2184_v31  ;;  %v2447_v31 = vsel %vm2445_vm13, %v2438_v63, %v2418_v3 }
 0x4e3   :  { %v2165_v14 = vpop.f32.mrf.mxu3  ;;  %4288 = vmatpush.msk.msrb.mxu1 %vm2454_vm14, %v2447_v31  ;;  %4465 = vmatpush.msk.msrb.mxu2 %vm2454_vm14, %v2447_v31 }
 0x4e4   :  { %v2166_v30 = vadd.f32 %v2165_v14, %v2137_v22  ;;  %v2440_v14 = vsel %vm2412_vm12, %v5449_v23, 1.0 }
 0x4e5   :  { %4289 = vmatpush.msk.msrb.mxu1 %vm2454_vm14, %v2446_v28  ;;  %4466 = vmatpush.msk.msrb.mxu2 %vm2454_vm14, %v2446_v28 }
 0x4e6   :  { %v2179_v37 = vmax.f32 %v2166_v30, 0.0  ;;  %v2424_v13 = vpop.xlane.xlu1 %2423 }
 0x4e7   :  { %v2449_v45 = vsel %vm2445_vm13, %v2440_v14, %v2424_v13 }
 0x4e8   :  { %4292 = vmatpush.msk.msra.mxu1 %vm2454_vm14, %v2449_v45 }
 0x4ea   :  { %4293 = vmatpush.msk.msra.mxu1 %vm2454_vm14, %v2448_v24 }
 0x4eb   :  { %v2167_v0 = vpop.f32.mrf.mxu3 }
 0x4ec   :  { %v2168_v32 = vadd.f32 %v2167_v0, %v2139_v27 }
 0x4ee   :  { %v2180_v38 = vmax.f32 %v2168_v32, 0.0 }
 0x4f0   :  { %v2185_v39 = vpack.c.bf16 %v2180_v38, %v2179_v37  ;;  %v5523_v37 = vpop.xlane.xlu1 %2432 }
 0x4f2   :  { %2273 = vmatmul.bf16.gmra.mxu0 %v2185_v39 }
 0x4f3   :  { %v2170_v16 = vpop.f32.mrf.mxu3 }
 0x4f4   :  { %v2171_v41 = vadd.f32 %v2170_v16, %v2142_v12 }
 0x4f6   :  { %v2181_v29 = vmax.f32 %v2171_v41, 0.0 }
 0x4fb   :  { %v2172_v42 = vpop.f32.mrf.mxu3 }
 0x4fc   :  { %v2173_v47 = vadd.f32 %v2172_v42, %v2144_v35 }
 0x4fe   :  { %v2182_v43 = vmax.f32 %v2173_v47, 0.0 }
 0x500   :  { %v2186_v48 = vpack.c.bf16 %v2182_v43, %v2181_v29  ;;  %v5526_v35 = vpop.xlane.xlu2 %2426 }
 0x502   :  { %2278 = vmatmul.bf16.gmra.mxu0 %v2186_v48 }
 0x53b   :  { %v5529_v48 = vpop.xlane.xlu2 %2435 }
 0x54f   :  { %v2264_v60 = vpop.f32.mrf.mxu0 }
 0x550   :  { %v2265_v62 = vadd.f32 %v4505_v59, %v2264_v60 }
 0x552   :  { %v2284_v61 = vsel %vm196_vm0, %v2265_v62, -inf }
 0x553   :  { %2285 = vmax.xlane.f32.xlu0 %v2284_v61 }
 0x557   :  { %v2266_v4 = vpop.f32.mrf.mxu0 }
 0x558   :  { %v2267_v5 = vadd.f32 %v4505_v59, %v2266_v4 }
 0x55a   :  { %v2287_v46 = vsel %vm196_vm0, %v2267_v5, -inf }
 0x55b   :  { %2288 = vmax.xlane.f32.xlu0 %v2287_v46 }
 0x55f   :  { %v2269_v9 = vpop.f32.mrf.mxu0 }
 0x560   :  { %v2270_v44 = vadd.f32 %v4505_v59, %v2269_v9 }
 0x562   :  { %v2290_v51 = vsel %vm196_vm0, %v2270_v44, -inf }
 0x563   :  { %2291 = vmax.xlane.f32.xlu1 %v2290_v51 }
 0x567   :  { %v2271_v19 = vpop.f32.mrf.mxu0 }
 0x568   :  { %v5495_v21 = vadd.f32 %v4505_v59, %v2271_v19 }
 0x56a   :  { %v2293_v7 = vsel %vm196_vm0, %v5495_v21, -inf }
 0x56b   :  { %2294 = vmax.xlane.f32.xlu1 %v2293_v7 }
 0x56f   :  { %v2274_v33 = vpop.f32.mrf.mxu0 }
 0x570   :  { %v2275_v1 = vadd.f32 %v4505_v59, %v2274_v33 }
 0x572   :  { %v2296_v17 = vsel %vm196_vm0, %v2275_v1, -inf }
 0x573   :  { %2297 = vmax.xlane.f32.xlu2 %v2296_v17 }
 0x577   :  { %v2276_v25 = vpop.f32.mrf.mxu0 }
 0x578   :  { %v2277_v40 = vadd.f32 %v4505_v59, %v2276_v25 }
 0x57a   :  { %v2299_v6 = vsel %vm196_vm0, %v2277_v40, -inf }
 0x57b   :  { %2300 = vmax.xlane.f32.xlu2 %v2299_v6 }
 0x57f   :  { %v2279_v26 = vpop.f32.mrf.mxu0 }
 0x580   :  { %v2280_v23 = vadd.f32 %v4505_v59, %v2279_v26 }
 0x582   :  { %v2302_v22 = vsel %vm196_vm0, %v2280_v23, -inf }
 0x583   :  { %2303 = vmax.xlane.f32.xlu0 %v2302_v22 }
 0x587   :  { %v2281_v27 = vpop.f32.mrf.mxu0 }
 0x588   :  { %v2282_v30 = vadd.f32 %v4505_v59, %v2281_v27 }
 0x58a   :  { %v2305_v0 = vsel %vm196_vm0, %v2282_v30, -inf }
 0x58b   :  { %2306 = vmax.xlane.f32.xlu1 %v2305_v0 }
 0x5c6   :  { %v2286_v18 = vpop.xlane.xlu0 %2285 }
 0x5c7   :  { %v2308_v32 = vsub.f32 %v2265_v62, %v2286_v18 }
 0x5c9   :  { %v2316_v36 = vmul.f32 1.442695, %v2308_v32 }
 0x5cb   :  { %4506 = vpow2.f32 %v2316_v36 }
 0x5ce   :  { %v2289_v38 = vpop.xlane.xlu0 %2288 }
 0x5cf   :  { %v2309_v39 = vsub.f32 %v2267_v5, %v2289_v38 }
 0x5d1   :  { %v4507_v16 = vpop.eup %4506  ;;  %v2318_v15 = vmul.f32 1.442695, %v2309_v39 }
 0x5d2   :  { %v2332_v12 = vsel %vm196_vm0, %v4507_v16, 0.0 }
 0x5d3   :  { %4508 = vpow2.f32 %v2318_v15  ;;  %2333 = vadd.xlane.f32.xlu2 %v2332_v12 }
 0x5d6   :  { %v2292_v41 = vpop.xlane.xlu1 %2291 }
 0x5d7   :  { %v2310_v42 = vsub.f32 %v2270_v44, %v2292_v41 }
 0x5d9   :  { %v4509_v47 = vpop.eup %4508  ;;  %v2320_v29 = vmul.f32 1.442695, %v2310_v42 }
 0x5da   :  { %v2335_v43 = vsel %vm196_vm0, %v4509_v47, 0.0 }
 0x5db   :  { %4510 = vpow2.f32 %v2320_v29  ;;  %2336 = vadd.xlane.f32.xlu0 %v2335_v43 }
 0x5de   :  { %v2295_v50 = vpop.xlane.xlu1 %2294 }
 0x5df   :  { %v2311_v52 = vsub.f32 %v5495_v21, %v2295_v50 }
 0x5e1   :  { %v4511_v53 = vpop.eup %4510  ;;  %v2322_v54 = vmul.f32 1.442695, %v2311_v52 }
 0x5e2   :  { %v2338_v56 = vsel %vm196_vm0, %v4511_v53, 0.0 }
 0x5e3   :  { %4512 = vpow2.f32 %v2322_v54  ;;  %2339 = vadd.xlane.f32.xlu1 %v2338_v56 }
 0x5e6   :  { %v2298_v57 = vpop.xlane.xlu2 %2297 }
 0x5e7   :  { %v2312_v59 = vsub.f32 %v2275_v1, %v2298_v57 }
 0x5e9   :  { %v4513_v60 = vpop.eup %4512  ;;  %v2324_v62 = vmul.f32 1.442695, %v2312_v59 }
 0x5ea   :  { %v2341_v61 = vsel %vm196_vm0, %v4513_v60, 0.0 }
 0x5eb   :  { %4514 = vpow2.f32 %v2324_v62  ;;  %2342 = vadd.xlane.f32.xlu2 %v2341_v61 }
 0x5ee   :  { %v2301_v4 = vpop.xlane.xlu2 %2300 }
 0x5ef   :  { %v2313_v5 = vsub.f32 %v2277_v40, %v2301_v4 }
 0x5f1   :  { %v4515_v46 = vpop.eup %4514  ;;  %v2326_v9 = vmul.f32 1.442695, %v2313_v5 }
 0x5f2   :  { %v2344_v44 = vsel %vm196_vm0, %v4515_v46, 0.0 }
 0x5f3   :  { %4516 = vpow2.f32 %v2326_v9  ;;  %2345 = vadd.xlane.f32.xlu0 %v2344_v44 }
 0x5f6   :  { %v2304_v51 = vpop.xlane.xlu0 %2303 }
 0x5f7   :  { %v2314_v19 = vsub.f32 %v2280_v23, %v2304_v51 }
 0x5f9   :  { %v5535_v21 = vpop.eup %4516  ;;  %v2328_v58 = vmul.f32 1.442695, %v2314_v19 }
 0x5fa   :  { %v2347_v63 = vsel %vm196_vm0, %v5535_v21, 0.0 }
 0x5fb   :  { %4518 = vpow2.f32 %v2328_v58  ;;  %2348 = vadd.xlane.f32.xlu1 %v2347_v63 }
 0x5fe   :  { %v2307_v7 = vpop.xlane.xlu1 %2306 }
 0x5ff   :  { %v2315_v10 = vsub.f32 %v2282_v30, %v2307_v7  ;;  %v2441_v7 = vsel %vm2412_vm12, %v5476_v34, 1.0  ;;  %v2443_v34 = vsel %vm2412_vm12, %v5468_v49, 1.0 }
 0x601   :  { %v5539_v3 = vpop.eup %4518  ;;  %v2330_v28 = vmul.f32 1.442695, %v2315_v10 }
 0x602   :  { %v2350_v31 = vsel %vm196_vm0, %v5539_v3, 0.0 }
 0x603   :  { %4520 = vpow2.f32 %v2330_v28  ;;  %2351 = vadd.xlane.f32.xlu2 %v2350_v31 }
 0x609   :  { %v5543_v33 = vpop.eup %4520 }
 0x60a   :  { %v2353_v1 = vsel %vm196_vm0, %v5543_v33, 0.0 }
 0x60b   :  { %2354 = vadd.xlane.f32.xlu0 %v2353_v1 }
 0x646   :  { %v2334_v11 = vpop.xlane.xlu2 %2333 }
 0x647   :  { %4522 = vrcp.f32 %v2334_v11 }
 0x64d   :  { %v4523_v14 = vpop.eup %4522 }
 0x64e   :  { %v2364_v17 = vmul.f32 %v4523_v14, %v2334_v11  ;;  %v2337_v20 = vpop.xlane.xlu0 %2336 }
 0x64f   :  { %4524 = vrcp.f32 %v2337_v20 }
 0x650   :  { %v2372_v13 = vsub.f32 2.0, %v2364_v17 }
 0x652   :  { %v2380_v24 = vmul.f32 %v4523_v14, %v2372_v13  ;;  %v4744_v14 = vmov 3  }
 0x654   :  { %v2388_v45 = vmul.f32 %v4507_v16, %v2380_v24 }
 0x655   :  { %v4525_v25 = vpop.eup %4524 }
 0x656   :  { %v2365_v40 = vmul.f32 %v4525_v25, %v2337_v20  ;;  %v2340_v6 = vpop.xlane.xlu1 %2339  ;;  %2463 = vxpose.xlu0.b32.start [1/2] (short) (narrow) %v2388_v45, 16 }
 0x657   :  { %4526 = vrcp.f32 %v2340_v6 }
 0x658   :  { %v2373_v26 = vsub.f32 2.0, %v2365_v40 }
 0x65a   :  { %v2381_v23 = vmul.f32 %v4525_v25, %v2373_v26 }
 0x65c   :  { %v2389_v22 = vmul.f32 %v4509_v47, %v2381_v23 }
 0x65d   :  { %v4527_v27 = vpop.eup %4526 }
 0x65e   :  { %v2366_v30 = vmul.f32 %v4527_v27, %v2340_v6  ;;  %v2343_v0 = vpop.xlane.xlu2 %2342  ;;  %2464 = vxpose.xlu0.b32.end [2/2] (short) (narrow) %v2389_v22, 16 }
 0x65f   :  { %4528 = vrcp.f32 %v2343_v0 }
 0x660   :  { %v2374_v18 = vsub.f32 2.0, %v2366_v30 }
 0x662   :  { %v2382_v32 = vmul.f32 %v4527_v27, %v2374_v18 }
 0x664   :  { %v2390_v36 = vmul.f32 %v4511_v53, %v2382_v32 }
 0x665   :  { %v4529_v38 = vpop.eup %4528 }
 0x666   :  { %v2367_v39 = vmul.f32 %v4529_v38, %v2343_v0  ;;  %2524 = vxpose.xlu1.b32.start [1/2] (short) (narrow) %v2390_v36, 16  ;;  %v2346_v16 = vpop.xlane.xlu0 %2345 }
 0x667   :  { %4530 = vrcp.f32 %v2346_v16 }
 0x668   :  { %v2375_v15 = vsub.f32 2.0, %v2367_v39 }
 0x66a   :  { %v2383_v12 = vmul.f32 %v4529_v38, %v2375_v15 }
 0x66c   :  { %v2391_v41 = vmul.f32 %v4513_v60, %v2383_v12 }
 0x66d   :  { %v4531_v42 = vpop.eup %4530 }
 0x66e   :  { %v2368_v29 = vmul.f32 %v4531_v42, %v2346_v16  ;;  %v2349_v43 = vpop.xlane.xlu1 %2348  ;;  %2525 = vxpose.xlu1.b32.end [2/2] (short) (narrow) %v2391_v41, 16 }
 0x66f   :  { %4532 = vrcp.f32 %v2349_v43 }
 0x670   :  { %v2376_v47 = vsub.f32 2.0, %v2368_v29 }
 0x672   :  { %v2384_v50 = vmul.f32 %v4531_v42, %v2376_v47 }
 0x674   :  { %v2392_v52 = vmul.f32 %v4515_v46, %v2384_v50 }
 0x675   :  { %v4533_v54 = vpop.eup %4532 }
 0x676   :  { %v2369_v56 = vmul.f32 %v4533_v54, %v2349_v43  ;;  %v2352_v57 = vpop.xlane.xlu2 %2351  ;;  %2585 = vxpose.xlu2.b32.start [1/2] (short) (narrow) %v2392_v52, 16 }
 0x677   :  { %4534 = vrcp.f32 %v2352_v57 }
 0x678   :  { %v2377_v53 = vsub.f32 2.0, %v2369_v56 }
 0x67a   :  { %v2385_v59 = vmul.f32 %v4533_v54, %v2377_v53 }
 0x67c   :  { %v2393_v62 = vmul.f32 %v5535_v21, %v2385_v59  ;;  %v2442_v21 = vsel %vm2412_vm12, %v5454_v2, 1.0  ;;  %v2444_v2 = vsel %vm2412_vm12, %v5484_v55, 1.0 }
 0x67d   :  { %v4535_v61 = vpop.eup %4534  ;;  %v2451_v28 = vsel %vm2445_vm13, %v2442_v21, %v5521_v8  ;;  %v2453_v8 = vsel %vm2445_vm13, %v2444_v2, %v5529_v48 }
 0x67e   :  { %v2370_v4 = vmul.f32 %v4535_v61, %v2352_v57  ;;  %2586 = vxpose.xlu2.b32.end [2/2] (short) (narrow) %v2393_v62, 16  ;;  %v2355_v60 = vpop.xlane.xlu0 %2354 }
 0x67f   :  { %4536 = vrcp.f32 %v2355_v60 }
 0x680   :  { %v2378_v5 = vsub.f32 2.0, %v2370_v4 }
 0x682   :  { %v2386_v9 = vmul.f32 %v4535_v61, %v2378_v5 }
 0x684   :  { %v2394_v44 = vmul.f32 %v5539_v3, %v2386_v9  ;;  %v2450_v3 = vsel %vm2445_vm13, %v2441_v7, %v5526_v35  ;;  %v2452_v35 = vsel %vm2445_vm13, %v2443_v34, %v5523_v37 }
 0x685   :  { %v4537_v51 = vpop.eup %4536 }
 0x686   :  { %v2371_v46 = vmul.f32 %v4537_v51, %v2355_v60  ;;  %2646 = vxpose.xlu0.b32.start [1/2] (short) (narrow) %v2394_v44, 16 }
 0x688   :  { %v2379_v19 = vsub.f32 2.0, %v2371_v46 }
 0x68a   :  { %v2387_v58 = vmul.f32 %v4537_v51, %v2379_v19 }
 0x68c   :  { %v2395_v63 = vmul.f32 %v5543_v33, %v2387_v58 }
 0x68e   :  { %2647 = vxpose.xlu0.b32.end [2/2] (short) (narrow) %v2395_v63, 16 }
 0x6c1   :  { %4500 = vset.pattern.permute.xlu1 %v4744_v14 }
 0x6e0   :  { %4498 = vset.pattern.permute.xlu2 %v4744_v14 }
 0x6f5   :  { %4499 = vset.pattern.permute.xlu0 %v4744_v14 }
 0x6fa   :  { %v2479_v10 = vpop.trf.xlu0 }
 0x6fb   :  { %4290 = vmatmul.msk.f32.vlgmr.msrb.gmra.mxu1 %vm196_vm0, %v2479_v10 }
 0x6fc   :  { %4296 = vmatpush.msk.msrb.mxu1 %vm2454_vm14, %v2451_v28 }
 0x6fe   :  { %4297 = vmatpush.msk.msrb.mxu1 %vm2454_vm14, %v2450_v3 }
 0x702   :  { %v2480_v31 = vpop.trf.xlu0 }
 0x703   :  { %4291 = vmatmul.msk.f32.vlgmr.msrb.gmra.mxu2 %vm196_vm0, %v2480_v31 }
 0x70a   :  { %v2540_v33 = vpop.trf.xlu1 }
 0x70b   :  { %4294 = vmatmul.msk.f32.vlgmr.msra.gmra.mxu1 %vm196_vm0, %v2540_v33 }
 0x70c   :  { %4300 = vmatpush.msk.msra.mxu1 %vm2454_vm14, %v2453_v8 }
 0x70e   :  { %4301 = vmatpush.msk.msra.mxu1 %vm2454_vm14, %v2452_v35 }
 0x70f   :  { %v2601_v55 = vpop.trf.xlu2 }
 0x712   :  { %v2541_v1 = vpop.trf.xlu1 }
 0x713   :  { %4295 = vmatmul.msk.f32.gmra.mxu1 %vm196_vm0, %v2541_v1 }
 0x717   :  { %v2602_v49 = vpop.trf.xlu2 }
 0x71b   :  { %4298 = vmatmul.msk.f32.vlgmr.msrb.gmra.mxu1 %vm196_vm0, %v2601_v55 }
 0x723   :  { %4299 = vmatmul.msk.f32.gmra.mxu1 %vm196_vm0, %v2602_v49 }
 0x72a   :  { %v2662_v11 = vpop.trf.xlu0 }
 0x72b   :  { %4302 = vmatmul.msk.f32.vlgmr.msra.gmra.mxu1 %vm196_vm0, %v2662_v11 }
 0x732   :  { %v2663_v48 = vpop.trf.xlu0 }
 0x733   :  { %4303 = vmatmul.msk.f32.gmra.mxu1 %vm196_vm0, %v2663_v48 }
 0x778   :  { %v5578_v37 = vpop.f32.mrf.mxu1 }
 0x779   :  { %v2707_v17 = vadd.f32 1e-08, %v5578_v37  ;;  %v2795_v20 = vmul.f32 0.0625, %v5578_v37 }
 0x77b   :  { %4538 = vrcp.f32 %v2707_v17  ;;  %2891 = vrot.lane.b32.xlu0 %v2795_v20, %s4745_s18 }
 0x781   :  { %v4539_v13 = vpop.eup %4538 }
 0x782   :  { %v2723_v24 = vmul.f32 %v4539_v13, %v2707_v17 }
 0x784   :  { %v2731_v45 = vsub.f32 2.0, %v2723_v24 }
 0x786   :  { %v5583_v25 = vpop.f32.mrf.mxu2  ;;  %v2739_v40 = vmul.f32 %v4539_v13, %v2731_v45 }
 0x787   :  { %v2708_v6 = vadd.f32 1e-08, %v5583_v25  ;;  %v2796_v22 = vmul.f32 0.0625, %v5583_v25 }
 0x788   :  { %2803 = vrot.lane.b32.xlu1 %v2739_v40, %s4746_s24  ;;  %2749 = vperm.xlu2 %4498, %v2739_v40   ;;  %v5587_v26 = vpop.f32.mrf.mxu1 }
 0x789   :  { %4540 = vrcp.f32 %v2708_v6  ;;  %v2709_v23 = vadd.f32 1e-08, %v5587_v26  ;;  %v2797_v27 = vmul.f32 0.0625, %v5587_v26 }
 0x78b   :  { %4542 = vrcp.f32 %v2709_v23 }
 0x78f   :  { %v4541_v30 = vpop.eup %4540 }
 0x790   :  { %2895 = vrot.lane.b32.xlu1 %v2797_v27, %s4745_s18  ;;  %v5593_v0 = vpop.f32.mrf.mxu1  ;;  %2893 = vrot.lane.b32.xlu2 %v2796_v22, %s4745_s18  ;;  %v2724_v32 = vmul.f32 %v4541_v30, %v2708_v6 }
 0x791   :  { %v4543_v18 = vpop.eup %4542  ;;  %v2710_v36 = vadd.f32 1e-08, %v5593_v0  ;;  %v2798_v38 = vmul.f32 0.0625, %v5593_v0 }
 0x792   :  { %v2725_v39 = vmul.f32 %v4543_v18, %v2709_v23  ;;  %v2732_v15 = vsub.f32 2.0, %v2724_v32 }
 0x793   :  { %4544 = vrcp.f32 %v2710_v36  ;;  %2897 = vrot.lane.b32.xlu0 %v2798_v38, %s4745_s18 }
 0x794   :  { %v2733_v16 = vsub.f32 2.0, %v2725_v39  ;;  %v2740_v43 = vmul.f32 %v4541_v30, %v2732_v15 }
 0x796   :  { %v2741_v12 = vmul.f32 %v4543_v18, %v2733_v16 }
 0x798   :  { %2759 = vperm.xlu1 %4500, %v2741_v12   ;;  %v5599_v41 = vpop.f32.mrf.mxu1  ;;  %2807 = vrot.lane.b32.xlu2 %v2741_v12, %s4746_s24 }
 0x799   :  { %v4545_v42 = vpop.eup %4544  ;;  %v2711_v29 = vadd.f32 1e-08, %v5599_v41  ;;  %v2799_v52 = vmul.f32 0.0625, %v5599_v41 }
 0x79a   :  { %v2726_v47 = vmul.f32 %v4545_v42, %v2710_v36 }
 0x79b   :  { %4546 = vrcp.f32 %v2711_v29  ;;  %2754 = vperm.xlu0 %4499, %v2740_v43  }
 0x79c   :  { %v2734_v50 = vsub.f32 2.0, %v2726_v47 }
 0x79e   :  { %v2742_v54 = vmul.f32 %v4545_v42, %v2734_v50 }
 0x7a0   :  { %2809 = vrot.lane.b32.xlu1 %v2742_v54, %s4746_s24  ;;  %v5605_v56 = vpop.f32.mrf.mxu1  ;;  %2899 = vrot.lane.b32.xlu2 %v2799_v52, %s4745_s18 }
 0x7a1   :  { %v4547_v57 = vpop.eup %4546  ;;  %v2712_v53 = vadd.f32 1e-08, %v5605_v56  ;;  %v2800_v4 = vmul.f32 0.0625, %v5605_v56 }
 0x7a2   :  { %v2727_v59 = vmul.f32 %v4547_v57, %v2711_v29 }
 0x7a3   :  { %4548 = vrcp.f32 %v2712_v53  ;;  %2805 = vrot.lane.b32.xlu0 %v2740_v43, %s4746_s24 }
 0x7a4   :  { %v2735_v62 = vsub.f32 2.0, %v2727_v59 }
 0x7a6   :  { %v2743_v61 = vmul.f32 %v4547_v57, %v2735_v62 }
 0x7a8   :  { %2769 = vperm.xlu1 %4500, %v2743_v61   ;;  %2764 = vperm.xlu2 %4498, %v2742_v54   ;;  %v5611_v60 = vpop.f32.mrf.mxu1 }
 0x7a9   :  { %v4549_v5 = vpop.eup %4548  ;;  %v2713_v9 = vadd.f32 1e-08, %v5611_v60  ;;  %v2801_v46 = vmul.f32 0.0625, %v5611_v60 }
 0x7aa   :  { %v2728_v44 = vmul.f32 %v4549_v5, %v2712_v53 }
 0x7ab   :  { %4550 = vrcp.f32 %v2713_v9  ;;  %2901 = vrot.lane.b32.xlu0 %v2800_v4, %s4745_s18 }
 0x7ac   :  { %v2736_v51 = vsub.f32 2.0, %v2728_v44 }
 0x7ae   :  { %v2744_v19 = vmul.f32 %v4549_v5, %v2736_v51 }
 0x7b0   :  { %2774 = vperm.xlu2 %4498, %v2744_v19   ;;  %2903 = vrot.lane.b32.xlu1 %v2801_v46, %s4745_s18  ;;  %v5617_v58 = vpop.f32.mrf.mxu1 }
 0x7b1   :  { %v4551_v63 = vpop.eup %4550  ;;  %v2714_v21 = vadd.f32 1e-08, %v5617_v58  ;;  %v2802_v2 = vmul.f32 0.0625, %v5617_v58 }
 0x7b2   :  { %v2729_v7 = vmul.f32 %v4551_v63, %v2713_v9  ;;  %v4747_v9 = vmov 1983009808  }
 0x7b3   :  { %4552 = vrcp.f32 %v2714_v21  ;;  %2811 = vrot.lane.b32.xlu0 %v2743_v61, %s4746_s24  ;;  %v2976_v44 = vunpack.c.l.s4 %v4747_v9 }
 0x7b4   :  { %v2737_v10 = vsub.f32 2.0, %v2729_v7 }
 0x7b6   :  { %v2745_v28 = vmul.f32 %v4551_v63, %v2737_v10 }
 0x7b8   :  { %2813 = vrot.lane.b32.xlu2 %v2744_v19, %s4746_s24  ;;  %2779 = vperm.xlu1 %4500, %v2745_v28  }
 0x7b9   :  { %v4553_v3 = vpop.eup %4552 }
 0x7ba   :  { %v2730_v31 = vmul.f32 %v4553_v3, %v2714_v21  ;;  %v5672_v21 = vunpack.c.0.s8 %v2976_v44 }
 0x7bc   :  { %v2738_v34 = vsub.f32 2.0, %v2730_v31 }
 0x7be   :  { %v2746_v33 = vmul.f32 %v4553_v3, %v2738_v34  ;;  %v4748_v3 = vmov 1934713408  }
 0x7bf   :  { %v2986_v31 = vunpack.c.l.s4 %v4748_v3 }
 0x7c0   :  { %2815 = vrot.lane.b32.xlu1 %v2745_v28, %s4746_s24  ;;  %2905 = vrot.lane.b32.xlu2 %v2802_v2, %s4745_s18 }
 0x7c1   :  { %2817 = vrot.lane.b32.xlu0 %v2746_v33, %s4746_s24 }
 0x7c8   :  { %2784 = vperm.xlu2 %4498, %v2746_v33  }
 0x7e2   :  { %v2750_v8 = vpop.permute.xlu2 %2749 }
 0x7e3   :  { %v2787_v35 = vmul.f32 %v2750_v8, %v5578_v37  ;;  %v5679_v8 = vunpack.c.0.s8 %v2986_v31 }
 0x7e5   :  { %2923 = vrot.lane.b32.xlu0 %v2787_v35, %s4746_s24  ;;  %v2835_v1 = vmul.f32 %v2787_v35, %v2787_v35 }
 0x7e7   :  { %v2843_v55 = vsel %vm2412_vm12, %v2835_v1, 0.0 }
 0x7ea   :  { %v5629_v48 = vpop.permute.xlu2 %2893 }
 0x7ed   :  { %v2892_v11 = vpop.permute.xlu0 %2891 }
 0x7f1   :  { %2844 = vadd.xlane.f32.xlu2 %v2843_v55 }
 0x7f2   :  { %v5635_v13 = vpop.permute.xlu2 %2807 }
 0x7fa   :  { %v2804_v49 = vpop.permute.xlu1 %2803  ;;  %v5642_v22 = vpop.permute.xlu2 %2899 }
 0x7fb   :  { %v2827_v5 = vmul.f32 %v2804_v49, %v5578_v37 }
 0x802   :  { %v5631_v14 = vpop.permute.xlu1 %2895  ;;  %v2765_v27 = vpop.permute.xlu2 %2764 }
 0x803   :  { %v2790_v30 = vmul.f32 %v2765_v27, %v5593_v0 }
 0x805   :  { %v5633_v17 = vpop.permute.xlu0 %2897  ;;  %v2838_v18 = vmul.f32 %v2790_v30, %v2790_v30 }
 0x807   :  { %v2852_v32 = vsel %vm2412_vm12, %v2838_v18, 0.0 }
 0x80a   :  { %v2760_v20 = vpop.permute.xlu1 %2759  ;;  %v2775_v39 = vpop.permute.xlu2 %2774 }
 0x80b   :  { %v2789_v24 = vmul.f32 %v2760_v20, %v5587_v26  ;;  %v2792_v12 = vmul.f32 %v2775_v39, %v5605_v56 }
 0x80d   :  { %2927 = vrot.lane.b32.xlu2 %v2789_v24, %s4746_s24  ;;  %v2755_v45 = vpop.permute.xlu0 %2754  ;;  %v2837_v40 = vmul.f32 %v2789_v24, %v2789_v24  ;;  %v2840_v43 = vmul.f32 %v2792_v12, %v2792_v12 }
 0x80e   :  { %v2788_v6 = vmul.f32 %v2755_v45, %v5583_v25 }
 0x80f   :  { %v2849_v23 = vsel %vm2412_vm12, %v2837_v40, 0.0  ;;  %v2858_v50 = vsel %vm2412_vm12, %v2840_v43, 0.0 }
 0x810   :  { %2850 = vadd.xlane.f32.xlu0 %v2849_v23  ;;  %2925 = vrot.lane.b32.xlu1 %v2788_v6, %s4746_s24  ;;  %v2836_v36 = vmul.f32 %v2788_v6, %v2788_v6 }
 0x812   :  { %v2846_v38 = vsel %vm2412_vm12, %v2836_v36, 0.0  ;;  %v5648_v16 = vpop.permute.xlu1 %2809  ;;  %v5653_v42 = vpop.permute.xlu2 %2813 }
 0x815   :  { %v5650_v15 = vpop.permute.xlu0 %2805 }
 0x81a   :  { %v2770_v29 = vpop.permute.xlu1 %2769  ;;  %v5660_v54 = vpop.permute.xlu2 %2905 }
 0x81b   :  { %v2791_v52 = vmul.f32 %v2770_v29, %v5599_v41 }
 0x81d   :  { %v5655_v47 = vpop.permute.xlu0 %2901  ;;  %v2839_v45 = vmul.f32 %v2791_v52, %v2791_v52 }
 0x81f   :  { %v2855_v6 = vsel %vm2412_vm12, %v2839_v45, 0.0 }
 0x822   :  { %v5662_v57 = vpop.permute.xlu1 %2903  ;;  %v2785_v59 = vpop.permute.xlu2 %2784 }
 0x823   :  { %v2794_v36 = vmul.f32 %v2785_v59, %v5617_v58 }
 0x824   :  { %2929 = vrot.lane.b32.xlu0 %v2790_v30, %s4746_s24 }
 0x825   :  { %v5665_v53 = vpop.permute.xlu0 %2811 }
 0x82a   :  { %v2780_v62 = vpop.permute.xlu1 %2779 }
 0x82b   :  { %v2793_v4 = vmul.f32 %v2780_v62, %v5611_v60 }
 0x833   :  { %v5667_v61 = vpop.permute.xlu0 %2817 }
 0x836   :  { %2853 = vadd.xlane.f32.xlu2 %v2852_v32 }
 0x83a   :  { %2847 = vadd.xlane.f32.xlu1 %v2846_v38 }
 0x84e   :  { %2859 = vadd.xlane.f32.xlu0 %v2858_v50  ;;  %2933 = vrot.lane.b32.xlu2 %v2792_v12, %s4746_s24  ;;  %v5707_v12 = vpop.permute.xlu1 %2815  ;;  %v2829_v50 = vmul.f32 %v5635_v13, %v5587_v26 }
 0x853   :  { %2931 = vrot.lane.b32.xlu1 %v2791_v52, %s4746_s24 }
 0x857   :  { %v2924_v46 = vpop.permute.xlu0 %2923 }
 0x858   :  { %v2948_v7 = vsel %vm2947_vm15, %v2892_v11, %v2924_v46  ;;  %v2841_v11 = vmul.f32 %v2793_v4, %v2793_v4 }
 0x85a   :  { %v2861_v24 = vsel %vm2412_vm12, %v2841_v11, 0.0 }
 0x862   :  { %2935 = vrot.lane.b32.xlu0 %v2793_v4, %s4746_s24 }
 0x864   :  { %v2845_v51 = vpop.xlane.xlu2 %2844 }
 0x865   :  { %v2867_v19 = vsub.f32 %v2827_v5, %v2845_v51  ;;  %v2828_v5 = vmul.f32 %v5650_v15, %v5583_v25 }
 0x867   :  { %v2875_v63 = vmax.f32 %v2867_v19, 0.0 }
 0x869   :  { %v2956_v10 = vsel %vm2445_vm13, %v2948_v7, %v2875_v63 }
 0x86a   :  { %v2964_v28 = vsel %vm2454_vm14, %v2956_v10, 0.0 }
 0x86b   :  { %v2972_v2 = vrot.slane %v2964_v28, 4  ;;  %v2978_v37 = vperm.slane %v2964_v28, %v5672_v21 }
 0x86c   :  { %v2928_v62 = vpop.permute.xlu2 %2927 }
 0x86d   :  { %v2983_v34 = vrot.slane %v2978_v37, 4  ;;  %v2974_v33 = vsel %vm2973_vm2, 0.0, %v2972_v2  ;;  %v5694_v23 = vperm.slane %v2978_v37, %v5679_v8  ;;  %v2950_v9 = vsel %vm2947_vm15, %v5631_v14, %v2928_v62 }
 0x86e   :  { %v2982_v35 = vperm.slane %v2974_v33, %v5672_v21 }
 0x86f   :  { %v2984_v1 = vsel %vm2973_vm2, 0.0, %v2983_v34  ;;  %v3003_v27 = vrot.slane %v5694_v23, 4 }
 0x870   :  { %v5684_v55 = vperm.slane %v2984_v1, %v5679_v8  ;;  %v2998_v49 = vperm.slane %v2982_v35, %v5679_v8  ;;  %v2993_v18 = vrot.slane %v2982_v35, 4  ;;  %v2842_v35 = vmul.f32 %v2794_v36, %v2794_v36 }
 0x871   :  { %v3004_v30 = vsel %vm2973_vm2, 0.0, %v3003_v27 }
 0x872   :  { %3297 = vrot.lane.b32.xlu0 %v5684_v55, %s4735_s27  ;;  %v3007_v20 = vrot.slane %v2998_v49, 4  ;;  %v2994_v32 = vsel %vm2973_vm2, 0.0, %v2993_v18  ;;  %v2864_v45 = vsel %vm2412_vm12, %v2842_v35, 0.0  ;;  %vm3570_vm12 = vcmask 785408  }
 0x873   :  { %v5703_v38 = vperm.slane %v2994_v32, %v5679_v8 }
 0x874   :  { %v3008_v40 = vsel %vm2973_vm2, 0.0, %v3007_v20  ;;  %v2830_v20 = vmul.f32 %v5648_v16, %v5593_v0 }
 0x875   :  { %v3009_v39 = vrot.slane %v5703_v38, 4 }
 0x877   :  { %2862 = vadd.xlane.f32.xlu2 %v2861_v24  ;;  %v3010_v29 = vsel %vm2973_vm2, 0.0, %v3009_v39 }
 0x87a   :  { %3345 = vrot.lane.b32.xlu0 %v3008_v40, %s4749_s9 }
 0x87d   :  { %2856 = vadd.xlane.f32.xlu1 %v2855_v6 }
 0x882   :  { %v2926_v52 = vpop.permute.xlu1 %2925 }
 0x883   :  { %v2851_v43 = vpop.xlane.xlu0 %2850  ;;  %v2949_v26 = vsel %vm2947_vm15, %v5629_v48, %v2926_v52 }
 0x884   :  { %v2869_v59 = vsub.f32 %v2829_v50, %v2851_v43 }
 0x886   :  { %v2877_v4 = vmax.f32 %v2869_v59, 0.0 }
 0x888   :  { %v2958_v44 = vsel %vm2445_vm13, %v2950_v9, %v2877_v4 }
 0x889   :  { %v2966_v19 = vsel %vm2454_vm14, %v2958_v44, 0.0 }
 0x88a   :  { %v3054_v10 = vperm.slane %v2966_v19, %v5672_v21  ;;  %v3049_v33 = vrot.slane %v2966_v19, 4 }
 0x88c   :  { %v5730_v31 = vperm.slane %v3054_v10, %v5679_v8  ;;  %v3050_v6 = vsel %vm2973_vm2, 0.0, %v3049_v33 }
 0x88d   :  { %v3058_v32 = vperm.slane %v3050_v6, %v5672_v21  ;;  %v2832_v6 = vmul.f32 %v5653_v42, %v5605_v56 }
 0x88e   :  { %v3079_v1 = vrot.slane %v5730_v31, 4 }
 0x88f   :  { %3281 = vrot.lane.b32.xlu2 %v3004_v30, %s4742_s20  ;;  %v5757_v39 = vperm.slane %v3058_v32, %v5679_v8  ;;  %v3069_v59 = vrot.slane %v3058_v32, 4 }
 0x890   :  { %v3080_v40 = vsel %vm2973_vm2, 0.0, %v3079_v1 }
 0x891   :  { %v3070_v9 = vsel %vm2973_vm2, 0.0, %v3069_v59 }
 0x896   :  { %2937 = vrot.lane.b32.xlu1 %v2794_v36, %s4746_s24  ;;  %v2930_v16 = vpop.permute.xlu0 %2929 }
 0x897   :  { %3329 = vrot.lane.b32.xlu2 %v2998_v49, %s4750_s25  ;;  %v3059_v49 = vrot.slane %v3054_v10, 4  ;;  %v2951_v43 = vsel %vm2947_vm15, %v5633_v17, %v2930_v16 }
 0x899   :  { %v3060_v27 = vsel %vm2973_vm2, 0.0, %v3059_v49 }
 0x89a   :  { %v5753_v0 = vperm.slane %v3060_v27, %v5679_v8 }
 0x89f   :  { %3377 = vrot.lane.b32.xlu2 %v3010_v29, %s4751_s3  ;;  %v3081_v29 = vrot.slane %v5753_v0, 4 }
 0x8a1   :  { %v3082_v52 = vsel %vm2973_vm2, 0.0, %v3081_v29 }
 0x8a9   :  { %v2854_v11 = vpop.xlane.xlu2 %2853 }
 0x8aa   :  { %v2870_v30 = vsub.f32 %v2830_v20, %v2854_v11  ;;  %v2831_v11 = vmul.f32 %v5665_v53, %v5599_v41 }
 0x8ac   :  { %v2878_v36 = vmax.f32 %v2870_v30, 0.0 }
 0x8ad   :  { %v2848_v51 = vpop.xlane.xlu1 %2847 }
 0x8ae   :  { %v2868_v46 = vsub.f32 %v2828_v5, %v2848_v51  ;;  %v2959_v50 = vsel %vm2445_vm13, %v2951_v43, %v2878_v36  ;;  %v3078_v51 = vperm.slane %v3070_v9, %v5679_v8 }
 0x8af   :  { %v2967_v62 = vsel %vm2454_vm14, %v2959_v50, 0.0 }
 0x8b0   :  { %v2876_v63 = vmax.f32 %v2868_v46, 0.0  ;;  %v3092_v5 = vperm.slane %v2967_v62, %v5672_v21 }
 0x8b2   :  { %v2957_v13 = vsel %vm2445_vm13, %v2949_v26, %v2876_v63  ;;  %v5774_v46 = vperm.slane %v3092_v5, %v5679_v8  ;;  %v3005_v63 = vrot.slane %v5684_v55, 4  ;;  %v3087_v26 = vrot.slane %v2967_v62, 4 }
 0x8b3   :  { %v2965_v7 = vsel %vm2454_vm14, %v2957_v13, 0.0  ;;  %v3085_v55 = vrot.slane %v3078_v51, 4 }
 0x8b4   :  { %v3011_v25 = vrot.slane %v2965_v7, 4  ;;  %v3016_v15 = vperm.slane %v2965_v7, %v5672_v21  ;;  %v3117_v7 = vrot.slane %v5774_v46, 4  ;;  %v3006_v10 = vsel %vm2973_vm2, 0.0, %v3005_v63 }
 0x8b6   :  { %v3012_v14 = vsel %vm2973_vm2, 0.0, %v3011_v25  ;;  %v3021_v28 = vrot.slane %v3016_v15, 4  ;;  %v5727_v3 = vperm.slane %v3016_v15, %v5679_v8  ;;  %v3118_v25 = vsel %vm2973_vm2, 0.0, %v3117_v7 }
 0x8b7   :  { %v3020_v48 = vperm.slane %v3012_v14, %v5672_v21  ;;  %v3088_v15 = vsel %vm2973_vm2, 0.0, %v3087_v26 }
 0x8b8   :  { %3393 = vrot.lane.b32.xlu0 %v5727_v3, %s4737_s21  ;;  %v3022_v2 = vsel %vm2973_vm2, 0.0, %v3021_v28  ;;  %v5791_v14 = vperm.slane %v3088_v15, %v5672_v21  ;;  %v3086_v28 = vsel %vm2973_vm2, 0.0, %v3085_v55  ;;  %v3041_v33 = vrot.slane %v5727_v3, 4 }
 0x8b9   :  { %v3030_v37 = vperm.slane %v3022_v2, %v5679_v8  ;;  %v5738_v34 = vperm.slane %v3020_v48, %v5679_v8  ;;  %v3031_v44 = vrot.slane %v3020_v48, 4  ;;  %v3097_v48 = vrot.slane %v3092_v5, 4 }
 0x8ba   :  { %v3112_v2 = vperm.slane %v5791_v14, %v5679_v8  ;;  %v3042_v49 = vsel %vm2973_vm2, 0.0, %v3041_v33 }
 0x8bb   :  { %3425 = vrot.lane.b32.xlu2 %v3030_v37, %s4752_s26  ;;  %v3045_v24 = vrot.slane %v5738_v34, 4  ;;  %v3043_v4 = vrot.slane %v3030_v37, 4  ;;  %v3032_v19 = vsel %vm2973_vm2, 0.0, %v3031_v44  ;;  %v3098_v37 = vsel %vm2973_vm2, 0.0, %v3097_v48 }
 0x8bc   :  { %v5780_v13 = vperm.slane %v3032_v19, %v5679_v8  ;;  %v5803_v35 = vperm.slane %v3098_v37, %v5679_v8 }
 0x8bd   :  { %v3046_v18 = vsel %vm2973_vm2, 0.0, %v3045_v24  ;;  %v3044_v17 = vsel %vm2973_vm2, 0.0, %v3043_v4  ;;  %v2934_v24 = vpop.permute.xlu2 %2933 }
 0x8be   :  { %v3047_v19 = vrot.slane %v5780_v13, 4 }
 0x8c0   :  { %2865 = vadd.xlane.f32.xlu1 %v2864_v45  ;;  %3283 = vrot.lane.b32.xlu0 %v3080_v40, %s4742_s20  ;;  %v3048_v15 = vsel %vm2973_vm2, 0.0, %v3047_v19 }
 0x8c1   :  { %v2860_v3 = vpop.xlane.xlu0 %2859 }
 0x8c2   :  { %v2872_v30 = vsub.f32 %v2832_v6, %v2860_v3 }
 0x8c3   :  { %3473 = vrot.lane.b32.xlu2 %v3046_v18, %s4753_s28 }
 0x8c4   :  { %v2880_v36 = vmax.f32 %v2872_v30, 0.0 }
 0x8c5   :  { %v2932_v1 = vpop.permute.xlu1 %2931 }
 0x8c6   :  { %v2952_v18 = vsel %vm2947_vm15, %v5642_v22, %v2932_v1  ;;  %v2953_v22 = vsel %vm2947_vm15, %v5655_v47, %v2934_v24  ;;  %v3119_v24 = vrot.slane %v5803_v35, 4 }
 0x8c7   :  { %v2961_v59 = vsel %vm2445_vm13, %v2953_v22, %v2880_v36 }
 0x8c8   :  { %3331 = vrot.lane.b32.xlu0 %v5757_v39, %s4750_s25  ;;  %v2969_v4 = vsel %vm2454_vm14, %v2961_v59, 0.0 }
 0x8c9   :  { %v3168_v44 = vperm.slane %v2969_v4, %v5672_v21 }
 0x8cb   :  { %3315 = vrot.lane.b32.xlu2 %v3082_v52, %s4754_s19  ;;  %v3083_v52 = vrot.slane %v5757_v39, 4  ;;  %v3178_v55 = vperm.slane %v3168_v44, %v5679_v8 }
 0x8cd   :  { %v3084_v5 = vsel %vm2973_vm2, 0.0, %v3083_v52 }
 0x8d0   :  { %3441 = vrot.lane.b32.xlu0 %v3044_v17, %s4755_s4 }
 0x8d3   :  { %3363 = vrot.lane.b32.xlu2 %v3078_v51, %s4756_s16  ;;  %v2833_v51 = vmul.f32 %v5707_v12, %v5611_v60 }
 0x8d4   :  { %v2936_v60 = vpop.permute.xlu0 %2935 }
 0x8d5   :  { %v2954_v37 = vsel %vm2947_vm15, %v5662_v57, %v2936_v60 }
 0x8d8   :  { %3489 = vrot.lane.b32.xlu0 %v5780_v13, %s4757_s17  ;;  %v3163_v13 = vrot.slane %v2969_v4, 4 }
 0x8d9   :  { %3313 = vrot.lane.b32.xlu1 %v3006_v10, %s4754_s19  ;;  %v3173_v10 = vrot.slane %v3168_v44, 4 }
 0x8db   :  { %3411 = vrot.lane.b32.xlu2 %v3118_v25, %s4758_s29 }
 0x8e0   :  { %3379 = vrot.lane.b32.xlu0 %v3086_v28, %s4751_s3  ;;  %v3174_v28 = vsel %vm2973_vm2, 0.0, %v3173_v10  ;;  %v2834_v10 = vmul.f32 %v5667_v61, %v5617_v58 }
 0x8e1   :  { %3361 = vrot.lane.b32.xlu1 %v5703_v38, %s4756_s16  ;;  %v3121_v38 = vrot.slane %v3112_v2, 4  ;;  %v5868_v33 = vperm.slane %v3174_v28, %v5679_v8 }
 0x8e3   :  { %3459 = vrot.lane.b32.xlu2 %v3112_v2, %s4759_s0  ;;  %v3122_v20 = vsel %vm2973_vm2, 0.0, %v3121_v38  ;;  %v3193_v2 = vrot.slane %v3178_v55, 4  ;;  %v3195_v57 = vrot.slane %v5868_v33, 4 }
 0x8e4   :  { %v5889_v30 = vpop.permute.xlu0 %3297 }
 0x8e5   :  { %v3194_v38 = vsel %vm2973_vm2, 0.0, %v3193_v2 }
 0x8e8   :  { %3427 = vrot.lane.b32.xlu0 %v5803_v35, %s4752_s26 }
 0x8e9   :  { %3409 = vrot.lane.b32.xlu1 %v3042_v49, %s4758_s29  ;;  %v3164_v49 = vsel %vm2973_vm2, 0.0, %v3163_v13 }
 0x8ea   :  { %v2863_v29 = vpop.xlane.xlu2 %2862 }
 0x8eb   :  { %v2873_v7 = vsub.f32 %v2833_v51, %v2863_v29 }
 0x8ed   :  { %v2881_v12 = vmax.f32 %v2873_v7, 0.0 }
 0x8ef   :  { %v2962_v1 = vsel %vm2445_vm13, %v2954_v37, %v2881_v12 }
 0x8f0   :  { %v2857_v45 = vpop.xlane.xlu1 %2856  ;;  %3475 = vrot.lane.b32.xlu0 %v3122_v20, %s4753_s28  ;;  %v3172_v20 = vperm.slane %v3164_v49, %v5672_v21 }
 0x8f1   :  { %v2871_v40 = vsub.f32 %v2831_v11, %v2857_v45  ;;  %3457 = vrot.lane.b32.xlu1 %v5738_v34, %s4759_s0  ;;  %v2970_v11 = vsel %vm2454_vm14, %v2962_v1, 0.0 }
 0x8f2   :  { %v5845_v17 = vpop.permute.xlu2 %3281  ;;  %v3206_v45 = vperm.slane %v2970_v11, %v5672_v21  ;;  %v3201_v3 = vrot.slane %v2970_v11, 4  ;;  %v3183_v6 = vrot.slane %v3172_v20, 4 }
 0x8f3   :  { %v2879_v27 = vmax.f32 %v2871_v40, 0.0  ;;  %v3196_v40 = vsel %vm2973_vm2, 0.0, %v3195_v57 }
 0x8f4   :  { %v3211_v35 = vrot.slane %v3206_v45, 4 }
 0x8f5   :  { %v2960_v41 = vsel %vm2445_vm13, %v2952_v18, %v2879_v27  ;;  %v3120_v18 = vsel %vm2973_vm2, 0.0, %v3119_v24 }
 0x8f6   :  { %v2968_v53 = vsel %vm2454_vm14, %v2960_v41, 0.0  ;;  %v3107_v41 = vrot.slane %v5791_v14, 4  ;;  %v5905_v14 = vperm.slane %v3206_v45, %v5679_v8 }
 0x8f7   :  { %v3125_v32 = vrot.slane %v2968_v53, 4  ;;  %v5822_v16 = vperm.slane %v2968_v53, %v5672_v21  ;;  %v3184_v53 = vsel %vm2973_vm2, 0.0, %v3183_v6 }
 0x8f8   :  { %v5899_v36 = vperm.slane %v3184_v53, %v5679_v8  ;;  %v3108_v29 = vsel %vm2973_vm2, 0.0, %v3107_v41  ;;  %v3231_v59 = vrot.slane %v5905_v14, 4 }
 0x8f9   :  { %3299 = vrot.lane.b32.xlu1 %v5753_v0, %s4735_s27  ;;  %v3135_v56 = vrot.slane %v5822_v16, 4  ;;  %v3126_v42 = vsel %vm2973_vm2, 0.0, %v3125_v32  ;;  %v3202_v32 = vsel %vm2973_vm2, 0.0, %v3201_v3  ;;  %v5912_v22 = vperm.slane %v3108_v29, %v5679_v8 }
 0x8fa   :  { %v3134_v34 = vperm.slane %v3126_v42, %v5672_v21  ;;  %v5863_v48 = vpop.permute.xlu2 %3329  ;;  %v3210_v42 = vperm.slane %v3202_v32, %v5672_v21  ;;  %v3518_v29 = vsel %vm3517_vm3, %v5694_v23, %v5845_v17 }
 0x8fb   :  { %v3136_v43 = vsel %vm2973_vm2, 0.0, %v3135_v56  ;;  %v3212_v56 = vsel %vm2973_vm2, 0.0, %v3211_v35 }
 0x8fc   :  { %v3144_v50 = vperm.slane %v3136_v43, %v5679_v8  ;;  %v5836_v62 = vperm.slane %v3134_v34, %v5679_v8  ;;  %v3145_v9 = vrot.slane %v3134_v34, 4  ;;  %v5915_v43 = vperm.slane %v3212_v56, %v5679_v8 }
 0x8fd   :  { %v3226_v52 = vperm.slane %v3210_v42, %v5679_v8 }
 0x8fe   :  { %v3157_v0 = vrot.slane %v3144_v50, 4  ;;  %3301 = vrot.lane.b32.xlu2 %v3144_v50, %s4735_s27  ;;  %v3159_v39 = vrot.slane %v5836_v62, 4  ;;  %v3146_v63 = vsel %vm2973_vm2, 0.0, %v3145_v9  ;;  %v5919_v50 = vperm.slane %v5822_v16, %v5679_v8 }
 0x8ff   :  { %v5855_v25 = vperm.slane %v3146_v63, %v5679_v8  ;;  %v3221_v16 = vrot.slane %v3210_v42, 4  ;;  %v3233_v42 = vrot.slane %v5915_v43, 4 }
 0x900   :  { %v3158_v47 = vsel %vm2973_vm2, 0.0, %v3157_v0  ;;  %v3160_v26 = vsel %vm2973_vm2, 0.0, %v3159_v39  ;;  %v5927_v0 = vpop.permute.xlu0 %3345  ;;  %v3155_v4 = vrot.slane %v5919_v50, 4 }
 0x901   :  { %3347 = vrot.lane.b32.xlu1 %v3084_v5, %s4749_s9  ;;  %3317 = vrot.lane.b32.xlu0 %v3158_v47, %s4754_s19  ;;  %v3235_v5 = vrot.slane %v3226_v52, 4  ;;  %v3232_v47 = vsel %vm2973_vm2, 0.0, %v3231_v59  ;;  %v3222_v19 = vsel %vm2973_vm2, 0.0, %v3221_v16  ;;  %v3161_v13 = vrot.slane %v5855_v25, 4 }
 0x902   :  { %v5883_v27 = vpop.permute.xlu2 %3377  ;;  %v3156_v39 = vsel %vm2973_vm2, 0.0, %v3155_v4  ;;  %v3123_v4 = vrot.slane %v5912_v22, 4 }
 0x903   :  { %v3236_v44 = vsel %vm2973_vm2, 0.0, %v3235_v5  ;;  %v3162_v37 = vsel %vm2973_vm2, 0.0, %v3161_v13 }
 0x904   :  { %v3124_v16 = vsel %vm2973_vm2, 0.0, %v3123_v4 }
 0x906   :  { %3349 = vrot.lane.b32.xlu2 %v3160_v26, %s4749_s9  ;;  %v5942_v26 = vperm.slane %v3222_v19, %v5679_v8 }
 0x908   :  { %v2938_v63 = vpop.permute.xlu1 %2937  ;;  %v3237_v7 = vrot.slane %v5942_v26, 4 }
 0x909   :  { %3505 = vrot.lane.b32.xlu1 %v3048_v15, %s4760_s7  ;;  %3365 = vrot.lane.b32.xlu0 %v5855_v25, %s4756_s16 }
 0x90a   :  { %v3238_v28 = vsel %vm2973_vm2, 0.0, %v3237_v7 }
 0x90e   :  { %3397 = vrot.lane.b32.xlu2 %v3178_v55, %s4737_s21 }
 0x911   :  { %3395 = vrot.lane.b32.xlu1 %v5774_v46, %s4737_s21  ;;  %3413 = vrot.lane.b32.xlu0 %v3194_v38, %s4758_s29  ;;  %v5887_v46 = vperm.slane %v3172_v20, %v5679_v8 }
 0x913   :  { %v3197_v6 = vrot.slane %v5887_v46, 4 }
 0x915   :  { %v5907_v34 = vpop.permute.xlu2 %3425  ;;  %v3198_v32 = vsel %vm2973_vm2, 0.0, %v3197_v6 }
 0x916   :  { %3445 = vrot.lane.b32.xlu2 %v3196_v40, %s4755_s4 }
 0x919   :  { %3443 = vrot.lane.b32.xlu1 %v3120_v18, %s4755_s4  ;;  %3461 = vrot.lane.b32.xlu0 %v5887_v46, %s4759_s0 }
 0x91d   :  { %v5932_v9 = vpop.permute.xlu2 %3473 }
 0x91e   :  { %3493 = vrot.lane.b32.xlu2 %v5899_v36, %s4757_s17 }
 0x921   :  { %3491 = vrot.lane.b32.xlu1 %v5912_v22, %s4757_s17  ;;  %3303 = vrot.lane.b32.xlu0 %v5915_v43, %s4735_s27  ;;  %v3234_v43 = vsel %vm2973_vm2, 0.0, %v3233_v42 }
 0x925   :  { %v5950_v15 = vpop.permute.xlu2 %3315 }
 0x926   :  { %3287 = vrot.lane.b32.xlu2 %v3232_v47, %s4742_s20 }
 0x929   :  { %3285 = vrot.lane.b32.xlu1 %v3156_v39, %s4742_s20  ;;  %3351 = vrot.lane.b32.xlu0 %v3236_v44, %s4749_s9 }
 0x92a   :  { %v5938_v51 = vpop.permute.xlu0 %3393 }
 0x92d   :  { %v5964_v25 = vpop.permute.xlu2 %3363 }
 0x92e   :  { %3335 = vrot.lane.b32.xlu2 %v3226_v52, %s4750_s25  ;;  %v3522_v52 = vsel %vm196_vm0, %v3518_v29, %v5889_v30 }
 0x931   :  { %3333 = vrot.lane.b32.xlu1 %v5836_v62, %s4750_s25  ;;  %v2955_v62 = vsel %vm2947_vm15, %v5660_v54, %v2938_v63  ;;  %vm3585_vm15 = vcmask 982016  }
 0x932   :  { %v5952_v55 = vpop.permute.xlu0 %3283 }
 0x933   :  { %v2866_v60 = vpop.xlane.xlu1 %2865 }
 0x934   :  { %v2874_v12 = vsub.f32 %v2834_v10, %v2866_v60 }
 0x935   :  { %v5983_v35 = vpop.permute.xlu2 %3411 }
 0x936   :  { %v2882_v2 = vmax.f32 %v2874_v12, 0.0  ;;  %3383 = vrot.lane.b32.xlu2 %v3238_v28, %s4751_s3 }
 0x938   :  { %v2963_v58 = vsel %vm2445_vm13, %v2955_v62, %v2882_v2  ;;  %vm3575_vm13 = vcmask 850944  }
 0x939   :  { %3381 = vrot.lane.b32.xlu1 %v3162_v37, %s4751_s3  ;;  %v2971_v61 = vsel %vm2454_vm14, %v2963_v58, 0.0  ;;  %vm3580_vm14 = vcmask 916480  }
 0x93a   :  { %v3239_v1 = vrot.slane %v2971_v61, 4  ;;  %v3244_v49 = vperm.slane %v2971_v61, %v5672_v21  ;;  %v5966_v38 = vpop.permute.xlu0 %3331 }
 0x93c   :  { %v3240_v11 = vsel %vm2973_vm2, 0.0, %v3239_v1  ;;  %v3249_v57 = vrot.slane %v3244_v49, 4  ;;  %v3254_v54 = vperm.slane %v3244_v49, %v5679_v8 }
 0x93d   :  { %v3248_v20 = vperm.slane %v3240_v11, %v5672_v21  ;;  %v6001_v17 = vpop.permute.xlu2 %3459 }
 0x93e   :  { %3399 = vrot.lane.b32.xlu0 %v3254_v54, %s4737_s21  ;;  %v3250_v24 = vsel %vm2973_vm2, 0.0, %v3249_v57  ;;  %v3269_v7 = vrot.slane %v3254_v54, 4  ;;  %s4761_s21 = smov [#allocation13]  }
 0x93f   :  { %v3258_v45 = vperm.slane %v3250_v24, %v5679_v8  ;;  %v5975_v3 = vperm.slane %v3248_v20, %v5679_v8  ;;  %v3259_v41 = vrot.slane %v3248_v20, 4  ;;  %s3598_s20 = sshll.u32 %s4761_s21, 4  ;;  %s3599_s20 = int_to_ptr.vmem [resolvable:$true] %s3598_s20 }
 0x940   :  { %v3270_v12 = vsel %vm2973_vm2, 0.0, %v3269_v7 }
 0x941   :  { %3429 = vrot.lane.b32.xlu1 %v5868_v33, %s4752_s26  ;;  %3431 = vrot.lane.b32.xlu2 %v3258_v45, %s4752_s26  ;;  %v3271_v40 = vrot.slane %v3258_v45, 4  ;;  %v3273_v18 = vrot.slane %v5975_v3, 4  ;;  %v3260_v46 = vsel %vm2973_vm2, 0.0, %v3259_v41 }
 0x942   :  { %v3442_v53 = vpop.permute.xlu0 %3441  ;;  %v3268_v59 = vperm.slane %v3260_v46, %v5679_v8  ;;  %v3199_v8 = vrot.slane %v5899_v36, 4 }
 0x943   :  { %v3272_v21 = vsel %vm2973_vm2, 0.0, %v3271_v40  ;;  %v3274_v33 = vsel %vm2973_vm2, 0.0, %v3273_v18 }
 0x944   :  { %v3200_v44 = vsel %vm2973_vm2, 0.0, %v3199_v8  ;;  %v3275_v61 = vrot.slane %v3268_v59, 4 }
 0x946   :  { %3447 = vrot.lane.b32.xlu0 %v3272_v21, %s4755_s4  ;;  %v3276_v57 = vsel %vm2973_vm2, 0.0, %v3275_v61 }
 0x949   :  { %3477 = vrot.lane.b32.xlu1 %v3198_v32, %s4753_s28  ;;  %3479 = vrot.lane.b32.xlu2 %v3274_v33, %s4753_s28 }
 0x94a   :  { %v3490_v5 = vpop.permute.xlu0 %3489 }
 0x94b   :  { %v3314_v56 = vpop.permute.xlu1 %3313 }
 0x94c   :  { %v3527_v23 = vsel %vm3526_vm4, %v3522_v52, %v3314_v56 }
 0x94d   :  { %v3532_v47 = vsel %vm3531_vm5, %v3527_v23, %v5863_v48 }
 0x94e   :  { %3495 = vrot.lane.b32.xlu0 %v3268_v59, %s4757_s17  ;;  %v3537_v22 = vsel %vm3536_vm6, %v3532_v47, %v5927_v0 }
 0x951   :  { %3319 = vrot.lane.b32.xlu1 %v3234_v43, %s4754_s19  ;;  %3507 = vrot.lane.b32.xlu2 %v3124_v16, %s4760_s7 }
 0x952   :  { %v3380_v36 = vpop.permute.xlu0 %3379 }
 0x953   :  { %v3362_v30 = vpop.permute.xlu1 %3361 }
 0x954   :  { %v3542_v39 = vsel %vm3541_vm7, %v3537_v22, %v3362_v30 }
 0x955   :  { %v3547_v48 = vsel %vm3546_vm8, %v3542_v39, %v5883_v27 }
 0x956   :  { %3509 = vrot.lane.b32.xlu0 %v3200_v44, %s4760_s7  ;;  %v3551_v0 = vsel %vm286_vm1, %v3547_v48, %v5938_v51 }
 0x958   :  { %v6017_v19 = vpop.permute.xlu2 %3301 }
 0x959   :  { %3367 = vrot.lane.b32.xlu1 %v5942_v26, %s4756_s16 }
 0x95a   :  { %v3428_v28 = vpop.permute.xlu0 %3427 }
 0x95b   :  { %v3410_v63 = vpop.permute.xlu1 %3409 }
 0x95c   :  { %v3556_v10 = vsel %vm3555_vm9, %v3551_v0, %v3410_v63 }
 0x95d   :  { %v3561_v27 = vsel %vm3560_vm10, %v3556_v10, %v5907_v34  ;;  %v3519_v34 = vsel %vm3517_vm3, %v5730_v31, %v5952_v55 }
 0x95e   :  { %v3566_v13 = vsel %vm3565_vm11, %v3561_v27, %v3442_v53 }
 0x960   :  { %v3350_v60 = vpop.permute.xlu2 %3349 }
 0x961   :  { %3415 = vrot.lane.b32.xlu1 %v3270_v12, %s4758_s29 }
 0x962   :  { %v3476_v49 = vpop.permute.xlu0 %3475 }
 0x963   :  { %v3458_v26 = vpop.permute.xlu1 %3457 }
 0x964   :  { %v3571_v51 = vsel %vm3570_vm12, %v3566_v13, %v3458_v26 }
 0x965   :  { %v3576_v2 = vsel %vm3575_vm13, %v3571_v51, %v5932_v9 }
 0x966   :  { %v3581_v45 = vsel %vm3580_vm14, %v3576_v2, %v3490_v5 }
 0x968   :  { %v3398_v62 = vpop.permute.xlu2 %3397 }
 0x969   :  { %3463 = vrot.lane.b32.xlu1 %v5975_v3, %s4759_s0 }
 0x96b   :  { %v3300_v37 = vpop.permute.xlu1 %3299 }
 0x96c   :  { %v3523_v58 = vsel %vm196_vm0, %v3519_v34, %v3300_v37 }
 0x96d   :  { %v3528_v1 = vsel %vm3526_vm4, %v3523_v58, %v5950_v15 }
 0x96e   :  { %v3533_v11 = vsel %vm3531_vm5, %v3528_v1, %v5966_v38 }
 0x970   :  { %v3446_v9 = vpop.permute.xlu2 %3445 }
 0x971   :  { %3511 = vrot.lane.b32.xlu1 %v3276_v57, %s4760_s7 }
 0x973   :  { %v3348_v54 = vpop.permute.xlu1 %3347  ;;  %v3318_v55 = vpop.permute.xlu0 %3317 }
 0x974   :  { %v3538_v20 = vsel %vm3536_vm6, %v3533_v11, %v3348_v54 }
 0x975   :  { %v3543_v31 = vsel %vm3541_vm7, %v3538_v20, %v5964_v25 }
 0x976   :  { %v3548_v18 = vsel %vm3546_vm8, %v3543_v31, %v3380_v36 }
 0x978   :  { %v3494_v24 = vpop.permute.xlu2 %3493 }
 0x97b   :  { %v3506_v15 = vpop.permute.xlu1 %3505  ;;  %v3366_v3 = vpop.permute.xlu0 %3365 }
 0x97c   :  { %v3586_v38 = vsel %vm3585_vm15, %v3581_v45, %v3506_v15 }
 0x97d   :  { %3590 = vst [vmem:[#allocation13] sm:$0x1] %v3586_v38 }
 0x980   :  { %v3288_v40 = vpop.permute.xlu2 %3287 }
 0x983   :  { %v3396_v6 = vpop.permute.xlu1 %3395  ;;  %v3414_v53 = vpop.permute.xlu0 %3413 }
 0x984   :  { %v3552_v21 = vsel %vm286_vm1, %v3548_v18, %v3396_v6 }
 0x985   :  { %v3557_v25 = vsel %vm3555_vm9, %v3552_v21, %v5983_v35 }
 0x986   :  { %v3562_v33 = vsel %vm3560_vm10, %v3557_v25, %v3428_v28 }
 0x988   :  { %v3336_v41 = vpop.permute.xlu2 %3335 }
 0x98b   :  { %v3444_v32 = vpop.permute.xlu1 %3443  ;;  %v3462_v52 = vpop.permute.xlu0 %3461 }
 0x98c   :  { %v3567_v29 = vsel %vm3565_vm11, %v3562_v33, %v3444_v32 }
 0x98d   :  { %v3572_v46 = vsel %vm3570_vm12, %v3567_v29, %v6001_v17 }
 0x98e   :  { %v3577_v22 = vsel %vm3575_vm13, %v3572_v46, %v3476_v49 }
 0x990   :  { %v3384_v56 = vpop.permute.xlu2 %3383 }
 0x993   :  { %v3492_v42 = vpop.permute.xlu1 %3491  ;;  %v3304_v5 = vpop.permute.xlu0 %3303 }
 0x994   :  { %v3582_v39 = vsel %vm3580_vm14, %v3577_v22, %v3492_v42 }
 0x99b   :  { %v3286_v59 = vpop.permute.xlu1 %3285  ;;  %v3432_v4 = vpop.permute.xlu2 %3431 }
 0x99c   :  { %v3520_v23 = vsel %vm3517_vm3, %v5919_v50, %v3286_v59  ;;  %v3352_v30 = vpop.permute.xlu0 %3351 }
 0x99d   :  { %v3524_v35 = vsel %vm196_vm0, %v3520_v23, %v6017_v19 }
 0x99e   :  { %v3529_v43 = vsel %vm3526_vm4, %v3524_v35, %v3318_v55 }
 0x9a3   :  { %v3334_v47 = vpop.permute.xlu1 %3333  ;;  %v3480_v16 = vpop.permute.xlu2 %3479 }
 0x9a4   :  { %v3534_v8 = vsel %vm3531_vm5, %v3529_v43, %v3334_v47 }
 0x9a5   :  { %v3539_v17 = vsel %vm3536_vm6, %v3534_v8, %v3350_v60 }
 0x9a6   :  { %v3544_v50 = vsel %vm3541_vm7, %v3539_v17, %v3366_v3 }
 0x9ab   :  { %v3382_v48 = vpop.permute.xlu1 %3381  ;;  %v3508_v44 = vpop.permute.xlu2 %3507 }
 0x9ac   :  { %v3549_v36 = vsel %vm3546_vm8, %v3544_v50, %v3382_v48  ;;  %v3587_v19 = vsel %vm3585_vm15, %v3582_v39, %v3508_v44 }
 0x9ad   :  { %v3553_v63 = vsel %vm286_vm1, %v3549_v36, %v3398_v62  ;;  %3591 = vst [vmem:[#allocation13 + $0x1] sm:$0x1] %v3587_v19  ;;  %v3521_v62 = vsel %vm3517_vm3, %v5905_v14, %v3288_v40 }
 0x9ae   :  { %v3558_v10 = vsel %vm3555_vm9, %v3553_v63, %v3414_v53  ;;  %v3525_v34 = vsel %vm196_vm0, %v3521_v62, %v3304_v5 }
 0x9b0   :  { %v3400_v0 = vpop.permute.xlu0 %3399 }
 0x9b3   :  { %v3430_v7 = vpop.permute.xlu1 %3429 }
 0x9b4   :  { %v3563_v27 = vsel %vm3560_vm10, %v3558_v10, %v3430_v7 }
 0x9b5   :  { %v3568_v60 = vsel %vm3565_vm11, %v3563_v27, %v3446_v9 }
 0x9b6   :  { %v3573_v13 = vsel %vm3570_vm12, %v3568_v60, %v3462_v52 }
 0x9b8   :  { %v3448_v12 = vpop.permute.xlu0 %3447 }
 0x9bb   :  { %v3478_v26 = vpop.permute.xlu1 %3477 }
 0x9bc   :  { %v3578_v28 = vsel %vm3575_vm13, %v3573_v13, %v3478_v26 }
 0x9bd   :  { %v3583_v51 = vsel %vm3580_vm14, %v3578_v28, %v3494_v24 }
 0x9c0   :  { %v3496_v2 = vpop.permute.xlu0 %3495 }
 0x9c3   :  { %v3320_v37 = vpop.permute.xlu1 %3319 }
 0x9c4   :  { %v3530_v58 = vsel %vm3526_vm4, %v3525_v34, %v3320_v37 }
 0x9c5   :  { %v3535_v61 = vsel %vm3531_vm5, %v3530_v58, %v3336_v41 }
 0x9c6   :  { %v3540_v9 = vsel %vm3536_vm6, %v3535_v61, %v3352_v30 }
 0x9c8   :  { %v3510_v1 = vpop.permute.xlu0 %3509 }
 0x9c9   :  { %v3588_v49 = vsel %vm3585_vm15, %v3583_v51, %v3510_v1 }
 0x9ca   :  { %3592 = vst [vmem:[#allocation13 + $0x2] sm:$0x1] %v3588_v49 }
 0x9cb   :  { %v3368_v11 = vpop.permute.xlu1 %3367 }
 0x9cc   :  { %v3545_v57 = vsel %vm3541_vm7, %v3540_v9, %v3368_v11 }
 0x9cd   :  { %v3550_v54 = vsel %vm3546_vm8, %v3545_v57, %v3384_v56 }
 0x9ce   :  { %v3554_v14 = vsel %vm286_vm1, %v3550_v54, %v3400_v0 }
 0x9d3   :  { %v3416_v20 = vpop.permute.xlu1 %3415 }
 0x9d4   :  { %v3559_v31 = vsel %vm3555_vm9, %v3554_v14, %v3416_v20 }
 0x9d5   :  { %v3564_v55 = vsel %vm3560_vm10, %v3559_v31, %v3432_v4 }
 0x9d6   :  { %v3569_v15 = vsel %vm3565_vm11, %v3564_v55, %v3448_v12 }
 0x9db   :  { %v3464_v24 = vpop.permute.xlu1 %3463 }
 0x9dc   :  { %v3574_v45 = vsel %vm3570_vm12, %v3569_v15, %v3464_v24 }
 0x9dd   :  { %v3579_v38 = vsel %vm3575_vm13, %v3574_v45, %v3480_v16 }
 0x9de   :  { %v3584_v40 = vsel %vm3580_vm14, %v3579_v38, %v3496_v2 }
 0x9e3   :  { %v3512_v3 = vpop.permute.xlu1 %3511 }
 0x9e4   :  { %v3589_v6 = vsel %vm3585_vm15, %v3584_v40, %v3512_v3 }
 0x9e5   :  { %3593 = vst [vmem:[#allocation13 + $0x3] sm:$0x1] %v3589_v6 }
 0x9e6   :  { %3606 = dma.vmem_to_hbm [thread:$0]  %s3599_s20, 64, %s3601_s30, [#allocation4], %s4735_s27, %s4735_s27, %s4746_s24  }
 0x9e7   :  { %4730 = dma.done.wait [#allocation4], 64  }
 0x9e8   :  { %4731 = vsyncadd [#allocation4], 4294967232 }
 0x9e9   :  { %3611 = vsyncpa [#allocation3], 1 }
 0x9ea   :  { %3612 = vsyncpa [#allocation6], 1 }
 0x9eb   :  { %3613 = vsyncpa [#allocation9], 1 }
 0x9ec   :  { %3614 = vsyncpa [#allocation12], 1 }
 0x9ed   :  { %3615 = vsyncpa [#allocation4], 1 }

</bundles_post_ra>
